<compile_context>
chip_gen: v5e
topology: v5e:2x2
jax: 0.10.0
libtpu: 0.0.40
codegen_flags: <defaults>
</compile_context>

<pallas_src>
import functools
import math

import jax
import jax.numpy as jnp
from jax.experimental import pallas as pl
from jax.experimental.pallas import tpu as pltpu

# --- module hyper-parameters (args.aemb, args.speaker_head_num) -------------
D_K = 16          # d_k == d_v == args.aemb
D_V = 16
N_HEADS = 4       # args.speaker_head_num
LN_EPS = 1e-5
_HDK = N_HEADS * D_K
_HDV = N_HEADS * D_V


def _mha_kernel(*refs, matmul_dtype, fuse_kv, store_attn):
    """Fused MHA over a block of `Bt` batches (one grid step).

    Ref order (fuse_kv=False):
      xq (Bt*Lq,Hq), xk (Bt*Lk,Hk), xv (Bt*Lk,Hk), bias (Bt,Lq,Lk),
      wq (Hq,H*Dk), wk (Hk,H*Dk), wv (Hk,H*Dv), wfc (H*Dv,Hq), gb (2,Hq),
      out (Bt*Lq,Hq) [, attn (Bt*H,Lq,Lk)]
    Ref order (fuse_kv=True): xq, xkv, bias, wq, wkv (Hk, H*(Dk+Dv)), wfc, gb, out [, attn]
    """
    md = matmul_dtype
    if fuse_kv:
        (xq_ref, xkv_ref, bias_ref, wq_ref, wkv_ref,
         wfc_ref, gb_ref, out_ref, *rest) = refs
    else:
        (xq_ref, xk_ref, xv_ref, bias_ref, wq_ref, wk_ref, wv_ref,
         wfc_ref, gb_ref, out_ref, *rest) = refs
    attn_ref = rest[0] if store_attn else None

    bt, lq, lk = bias_ref.shape
    xq = xq_ref[...].astype(jnp.float32)                        # residual (Bt*Lq, Hq)

    # --- projections (1/sqrt(d_k) already folded into W_Q wrapper-side) -----
    q = jnp.dot(xq.astype(md), wq_ref[...], preferred_element_type=jnp.float32)
    if fuse_kv:
        kv = jnp.dot(xkv_ref[...].astype(md), wkv_ref[...],
                     preferred_element_type=jnp.float32)         # (Bt*Lk, H*(Dk+Dv))
        k, v = kv[:, :_HDK], kv[:, _HDK:]
    else:
        k = jnp.dot(xk_ref[...].astype(md), wk_ref[...],
                    preferred_element_type=jnp.float32)
        v = jnp.dot(xv_ref[...].astype(md), wv_ref[...],
                    preferred_element_type=jnp.float32)

    # --- single layout transform per tensor: (Bt*rows, H*w) -> (Bt*H, rows, w)
    def to_heads(x2d, rows, width):
        x = x2d.reshape(bt, rows, N_HEADS, width)
        return jnp.transpose(x, (0, 2, 1, 3)).reshape(bt * N_HEADS, rows, width)

    qh = to_heads(q, lq, D_K).astype(md)                         # (Bt*H, Lq, Dk)
    kh = to_heads(k, lk, D_K).astype(md)                         # (Bt*H, Lk, Dk)
    vh = to_heads(v, lk, D_V).astype(md)                         # (Bt*H, Lk, Dv)

    # --- scaled-dot-product attention for all (batch, head) at once ---------
    scores = jnp.einsum('bqd,bkd->bqk', qh, kh,
                        preferred_element_type=jnp.float32)      # (Bt*H, Lq, Lk)
    # additive mask bias broadcast over heads (no per-head mask copies)
    scores = scores.reshape(bt, N_HEADS, lq, lk) + bias_ref[...][:, None, :, :]

    m = jnp.max(scores, axis=-1, keepdims=True)
    e = jnp.exp(scores - m)
    s = jnp.sum(e, axis=-1, keepdims=True)
    attn = (e / s).reshape(bt * N_HEADS, lq, lk)                 # exact softmax(dim=-1)
    if store_attn:
        attn_ref[...] = attn                                     # single block store

    ctx = jnp.einsum('bqk,bkd->bqd', attn.astype(md), vh,
                     preferred_element_type=jnp.float32)         # (Bt*H, Lq, Dv)
    # inverse transform: (Bt*H, Lq, Dv) -> (Bt*Lq, H*Dv)
    context = jnp.transpose(ctx.reshape(bt, N_HEADS, lq, D_V),
                            (0, 2, 1, 3)).reshape(bt * lq, _HDV)

    # --- fc + residual + LayerNorm -------------------------------------------
    out = jnp.dot(context.astype(md), wfc_ref[...],
                  preferred_element_type=jnp.float32) + xq       # (Bt*Lq, Hq)
    mu = jnp.mean(out, axis=-1, keepdims=True)
    var = jnp.mean(jnp.square(out - mu), axis=-1, keepdims=True)
    y = (out - mu) * jax.lax.rsqrt(var + LN_EPS)
    gb = gb_ref[...]                                             # (2, Hq): [gamma; beta]
    out_ref[...] = (y * gb[0:1, :] + gb[1:2, :]).astype(out_ref.dtype)


def _vmem_bytes_estimate(Bt, Lq, Lk, Hq, Hk, store_attn):
    io = (2 * Bt * Lq * Hq + 2 * Bt * Lk * Hk + Bt * Lq * Lk
          + Hq * _HDK + Hk * (_HDK + _HDV) + _HDV * Hq + 2 * Hq
          + (Bt * N_HEADS * Lq * Lk if store_attn else 0))
    interm = (3 * Bt * N_HEADS * Lq * Lk
              + 3 * Bt * Lq * _HDK + 2 * Bt * Lk * (_HDK + _HDV))
    return 4 * (2 * io + interm)     # f32 words, inputs/outputs double-buffered


def multi_head_attention(input_Q, input_K, input_V, attn_mask, params, *,
                         batch_block=None, matmul_dtype=jnp.bfloat16,
                         return_attn=True):
    """params = dict(wq, wk, wv, wfc, gamma, beta); linear weights stored (in, out).

    matmul_dtype=jnp.bfloat16 (default) feeds the MXU at full rate on v5e/v6e/v7x
    while keeping softmax/LayerNorm math in f32; use jnp.float32 for tight numerics.
    """
    B, Lq, Hq = input_Q.shape
    _, Lk, Hk = input_K.shape
    fuse_kv = input_K is input_V        # self-attention: one fused K/V projection

    if batch_block is None:
        # v5e/v6e have a single TensorCore: do the whole batch in one grid step
        # (no per-step overhead, tallest matmul M).  Two "parallel" steps only when
        # each half is big enough to keep both v7x TensorCores usefully busy.
        if B % 2 == 0 and (B // 2) * Lq >= 256:
            batch_block = B // 2
        else:
            batch_block = B
    assert B % batch_block == 0, "batch_block must divide the batch size"
    Bt = batch_block
    grid = (B // Bt,)

    # Wrapper-side flattening (free) so the kernel sees plain 2-D slabs.
    xq2 = input_Q.reshape(B * Lq, Hq)
    xk2 = input_K.reshape(B * Lk, Hk)
    if attn_mask is None:
        bias = jnp.zeros((B, Lq, Lk), jnp.float32)
    else:
        bias = attn_mask.astype(jnp.float32) * jnp.float32(-1e9)   # additive mask bias

    scale = jnp.float32(1.0 / math.sqrt(D_K))
    wq = (params["wq"] * scale).astype(matmul_dtype)   # fold 1/sqrt(d_k) into W_Q
    wfc = params["wfc"].astype(matmul_dtype)
    gb = jnp.stack([params["gamma"], params["beta"]]).astype(jnp.float32)  # (2, Hq)

    def rows(i): return (i, 0)
    def rows3(i): return (i, 0, 0)
    def full2(i): return (0, 0)

    if fuse_kv:
        wkv = jnp.concatenate([params["wk"], params["wv"]], axis=1).astype(matmul_dtype)
        operands = [xq2, xk2, bias, wq, wkv, wfc, gb]
        in_specs = [
            pl.BlockSpec((Bt * Lq, Hq), rows),               # input_Q rows
            pl.BlockSpec((Bt * Lk, Hk), rows),               # shared K/V rows
            pl.BlockSpec((Bt, Lq, Lk), rows3),               # additive mask bias
            pl.BlockSpec((Hq, _HDK), full2),                 # W_Q (pre-scaled)
            pl.BlockSpec((Hk, _HDK + _HDV), full2),          # [W_K | W_V] fused
            pl.BlockSpec((_HDV, Hq), full2),                 # fc
            pl.BlockSpec((2, Hq), full2),                    # LN gamma/beta
        ]
    else:
        xv2 = input_V.reshape(B * Lk, Hk)
        wk = params["wk"].astype(matmul_dtype)
        wv = params["wv"].astype(matmul_dtype)
        operands = [xq2, xk2, xv2, bias, wq, wk, wv, wfc, gb]
        in_specs = [
            pl.BlockSpec((Bt * Lq, Hq), rows),
            pl.BlockSpec((Bt * Lk, Hk), rows),
            pl.BlockSpec((Bt * Lk, Hk), rows),
            pl.BlockSpec((Bt, Lq, Lk), rows3),
            pl.BlockSpec((Hq, _HDK), full2),
            pl.BlockSpec((Hk, _HDK), full2),
            pl.BlockSpec((Hk, _HDV), full2),
            pl.BlockSpec((_HDV, Hq), full2),
            pl.BlockSpec((2, Hq), full2),
        ]

    out_shapes = [jax.ShapeDtypeStruct((B * Lq, Hq), jnp.float32)]
    out_specs = [pl.BlockSpec((Bt * Lq, Hq), rows)]
    if return_attn:
        out_shapes.append(jax.ShapeDtypeStruct((B * N_HEADS, Lq, Lk), jnp.float32))
        out_specs.append(pl.BlockSpec((Bt * N_HEADS, Lq, Lk), rows3))

    # Explicit VMEM limit only when the estimate exceeds the smallest (v5e, 16 MiB)
    # scoped default; stay well under v7x's 64 MiB physical VMEM.
    vmem_need = _vmem_bytes_estimate(Bt, Lq, Lk, Hq, Hk, return_attn)
    vmem_limit = int(min(2 * vmem_need, 60 << 20)) if vmem_need > (16 << 20) else None

    cost = pl.CostEstimate(
        flops=2 * B * (Lq * Hq * _HDK + Lk * Hk * (_HDK + _HDV)
                       + N_HEADS * Lq * Lk * (D_K + D_V) + Lq * _HDV * Hq),
        transcendentals=B * N_HEADS * Lq * Lk,
        bytes_accessed=4 * (2 * B * Lq * Hq + 2 * B * Lk * Hk + B * Lq * Lk
                            + Hq * _HDK + Hk * (_HDK + _HDV) + _HDV * Hq + 2 * Hq
                            + (B * N_HEADS * Lq * Lk if return_attn else 0)),
    )

    kernel = functools.partial(_mha_kernel, matmul_dtype=matmul_dtype,
                               fuse_kv=fuse_kv, store_attn=return_attn)
    results = pl.pallas_call(
        kernel,
        out_shape=out_shapes,
        grid_spec=pltpu.PrefetchScalarGridSpec(
            num_scalar_prefetch=0, grid=grid,
            in_specs=in_specs, out_specs=out_specs),
        compiler_params=pltpu.CompilerParams(
            dimension_semantics=("parallel",),
            vmem_limit_bytes=vmem_limit),
        cost_estimate=cost,
    )(*operands)

    out = results[0].reshape(B, Lq, Hq)
    if not return_attn:
        return out
    attn = results[1].reshape(B, N_HEADS, Lq, Lk)
    return out, attn


def _reference(input_Q, input_K, input_V, attn_mask, params):
    """Pure-JAX reference mirroring the PyTorch forward (no dropout)."""
    B, Lq, Hq = input_Q.shape
    q = (input_Q @ params["wq"]).reshape(B, Lq, N_HEADS, D_K).transpose(0, 2, 1, 3)
    k = (input_K @ params["wk"]).reshape(B, -1, N_HEADS, D_K).transpose(0, 2, 1, 3)
    v = (input_V @ params["wv"]).reshape(B, -1, N_HEADS, D_V).transpose(0, 2, 1, 3)
    scores = jnp.einsum("bhqd,bhkd->bhqk", q, k) / math.sqrt(D_K)
    mask = attn_mask[:, None, :, :].astype(bool)
    scores = jnp.where(mask, -1e9, scores)
    attn = jax.nn.softmax(scores, axis=-1)
    ctx = jnp.einsum("bhqk,bhkd->bhqd", attn, v)
    ctx = ctx.transpose(0, 2, 1, 3).reshape(B, Lq, N_HEADS * D_V)
    out = ctx @ params["wfc"] + input_Q
    mu = out.mean(-1, keepdims=True)
    var = ((out - mu) ** 2).mean(-1, keepdims=True)
    out = (out - mu) / jnp.sqrt(var + LN_EPS) * params["gamma"] + params["beta"]
    return out, attn


if __name__ == "__main__":
    key = jax.random.PRNGKey(0)
    B, Lq, Lk = 4, 8, 8
    Q_HIDDEN, K_HIDDEN = 32, 32

    keys = jax.random.split(key, 8)
    input_Q = jax.random.normal(keys[0], (B, Lq, Q_HIDDEN), jnp.float32)
    input_K = jax.random.normal(keys[1], (B, Lk, K_HIDDEN), jnp.float32)
    input_V = jax.random.normal(keys[2], (B, Lk, K_HIDDEN), jnp.float32)
    # mask: mask out the last two key positions of every query row
    attn_mask = jnp.zeros((B, Lq, Lk), jnp.int32).at[:, :, -2:].set(1)

    params = {
        "wq": 0.05 * jax.random.normal(keys[3], (Q_HIDDEN, N_HEADS * D_K), jnp.float32),
        "wk": 0.05 * jax.random.normal(keys[4], (K_HIDDEN, N_HEADS * D_K), jnp.float32),
        "wv": 0.05 * jax.random.normal(keys[5], (K_HIDDEN, N_HEADS * D_V), jnp.float32),
        "wfc": 0.05 * jax.random.normal(keys[6], (N_HEADS * D_V, Q_HIDDEN), jnp.float32),
        "gamma": jnp.ones((Q_HIDDEN,), jnp.float32),
        "beta": jnp.zeros((Q_HIDDEN,), jnp.float32),
    }

    ref_out, ref_attn = _reference(input_Q, input_K, input_V, attn_mask, params)

    # 1) f32 MXU operands, distinct K/V (tight numerics path).
    out, attn = multi_head_attention(input_Q, input_K, input_V, attn_mask, params,
                                     matmul_dtype=jnp.float32)
    out = jax.block_until_ready(out)
    attn = jax.block_until_ready(attn)
    assert jnp.allclose(attn, ref_attn, atol=5e-3), "f32 attn mismatch"
    assert jnp.allclose(out, ref_out, atol=2e-2), "f32 output mismatch"

    # 2) default bf16 MXU operands (full-rate MXU), distinct K/V.
    out_bf, attn_bf = multi_head_attention(input_Q, input_K, input_V, attn_mask, params)
    out_bf = jax.block_until_ready(out_bf)
    attn_bf = jax.block_until_ready(attn_bf)
    assert jnp.allclose(attn_bf, ref_attn, atol=1e-2), "bf16 attn mismatch"
    assert jnp.allclose(out_bf, ref_out, atol=4e-2), "bf16 output mismatch"

    # 3) self-attention (input_K is input_V) exercises the fused K/V projection path.
    ref_out_sa, ref_attn_sa = _reference(input_Q, input_K, input_K, attn_mask, params)
    out_sa, attn_sa = multi_head_attention(input_Q, input_K, input_K, attn_mask, params)
    out_sa = jax.block_until_ready(out_sa)
    attn_sa = jax.block_until_ready(attn_sa)
    assert jnp.allclose(attn_sa, ref_attn_sa, atol=1e-2), "fused-KV attn mismatch"
    assert jnp.allclose(out_sa, ref_out_sa, atol=4e-2), "fused-KV output mismatch"

    print("KERNEL_OK")
</pallas_src>

<mosaic_0001>
module attributes {stable_mosaic.version = 11 : i64} {
  func.func @_mha_kernel(%arg0: i32, %arg1: memref<32x32xf32, #tpu.memory_space<vmem>>, %arg2: memref<32x32xf32, #tpu.memory_space<vmem>>, %arg3: memref<32x32xf32, #tpu.memory_space<vmem>>, %arg4: memref<4x8x8xf32, #tpu.memory_space<vmem>>, %arg5: memref<32x64xf32, #tpu.memory_space<vmem>>, %arg6: memref<32x64xf32, #tpu.memory_space<vmem>>, %arg7: memref<32x64xf32, #tpu.memory_space<vmem>>, %arg8: memref<64x32xf32, #tpu.memory_space<vmem>>, %arg9: memref<2x32xf32, #tpu.memory_space<vmem>>, %arg10: memref<32x32xf32, #tpu.memory_space<vmem>>, %arg11: memref<16x8x8xf32, #tpu.memory_space<vmem>>) attributes {dimension_semantics = [#tpu.dimension_semantics<parallel>], iteration_bounds = array<i64: 1>, scalar_prefetch = 0 : i64, scratch_operands = 0 : i64, tpu.core_type = #tpu.core_type<tc>, window_params = [{transform_indices = @transform_0, window_bounds = array<i64: 32, 32>}, {transform_indices = @transform_1, window_bounds = array<i64: 32, 32>}, {transform_indices = @transform_2, window_bounds = array<i64: 32, 32>}, {transform_indices = @transform_3, window_bounds = array<i64: 4, 8, 8>}, {pipeline_mode = #tpu.pipeline_mode<synchronous>, transform_indices = @transform_4, window_bounds = array<i64: 32, 64>}, {pipeline_mode = #tpu.pipeline_mode<synchronous>, transform_indices = @transform_5, window_bounds = array<i64: 32, 64>}, {pipeline_mode = #tpu.pipeline_mode<synchronous>, transform_indices = @transform_6, window_bounds = array<i64: 32, 64>}, {pipeline_mode = #tpu.pipeline_mode<synchronous>, transform_indices = @transform_7, window_bounds = array<i64: 64, 32>}, {pipeline_mode = #tpu.pipeline_mode<synchronous>, transform_indices = @transform_8, window_bounds = array<i64: 2, 32>}, {transform_indices = @transform_9, window_bounds = array<i64: 32, 32>}, {transform_indices = @transform_10, window_bounds = array<i64: 16, 8, 8>}]} {
    %c0 = arith.constant 0 : index
    %c0_0 = arith.constant 0 : index
    %0 = vector.load %arg1[%c0, %c0_0] : memref<32x32xf32, #tpu.memory_space<vmem>>, vector<32x32xf32>
    %c0_1 = arith.constant 0 : index
    %c0_2 = arith.constant 0 : index
    %1 = vector.load %arg5[%c0_1, %c0_2] : memref<32x64xf32, #tpu.memory_space<vmem>>, vector<32x64xf32>
    %cst = arith.constant dense<0.000000e+00> : vector<32x64xf32>
    %2 = tpu.matmul %0, %1, %cst {dimension_numbers = #tpu.dot_dimension_numbers<[1], [0], [0], [1], [0, 0, 1, 1], [], []>} : vector<32x32xf32>, vector<32x64xf32>, vector<32x64xf32> -> vector<32x64xf32>
    %c0_3 = arith.constant 0 : index
    %c0_4 = arith.constant 0 : index
    %3 = vector.load %arg2[%c0_3, %c0_4] : memref<32x32xf32, #tpu.memory_space<vmem>>, vector<32x32xf32>
    %c0_5 = arith.constant 0 : index
    %c0_6 = arith.constant 0 : index
    %4 = vector.load %arg6[%c0_5, %c0_6] : memref<32x64xf32, #tpu.memory_space<vmem>>, vector<32x64xf32>
    %cst_7 = arith.constant dense<0.000000e+00> : vector<32x64xf32>
    %5 = tpu.matmul %3, %4, %cst_7 {dimension_numbers = #tpu.dot_dimension_numbers<[1], [0], [0], [1], [0, 0, 1, 1], [], []>} : vector<32x32xf32>, vector<32x64xf32>, vector<32x64xf32> -> vector<32x64xf32>
    %c0_8 = arith.constant 0 : index
    %c0_9 = arith.constant 0 : index
    %6 = vector.load %arg3[%c0_8, %c0_9] : memref<32x32xf32, #tpu.memory_space<vmem>>, vector<32x32xf32>
    %c0_10 = arith.constant 0 : index
    %c0_11 = arith.constant 0 : index
    %7 = vector.load %arg7[%c0_10, %c0_11] : memref<32x64xf32, #tpu.memory_space<vmem>>, vector<32x64xf32>
    %cst_12 = arith.constant dense<0.000000e+00> : vector<32x64xf32>
    %8 = tpu.matmul %6, %7, %cst_12 {dimension_numbers = #tpu.dot_dimension_numbers<[1], [0], [0], [1], [0, 0, 1, 1], [], []>} : vector<32x32xf32>, vector<32x64xf32>, vector<32x64xf32> -> vector<32x64xf32>
    %9 = vector.shape_cast %2 : vector<32x64xf32> to vector<4x8x4x16xf32>
    %10 = tpu.transpose %9, [0, 2, 1, 3] : vector<4x8x4x16xf32> -> vector<4x4x8x16xf32>
    %11 = vector.shape_cast %10 : vector<4x4x8x16xf32> to vector<16x8x16xf32>
    %12 = vector.shape_cast %5 : vector<32x64xf32> to vector<4x8x4x16xf32>
    %13 = tpu.transpose %12, [0, 2, 1, 3] : vector<4x8x4x16xf32> -> vector<4x4x8x16xf32>
    %14 = vector.shape_cast %13 : vector<4x4x8x16xf32> to vector<16x8x16xf32>
    %15 = vector.shape_cast %8 : vector<32x64xf32> to vector<4x8x4x16xf32>
    %16 = tpu.transpose %15, [0, 2, 1, 3] : vector<4x8x4x16xf32> -> vector<4x4x8x16xf32>
    %17 = vector.shape_cast %16 : vector<4x4x8x16xf32> to vector<16x8x16xf32>
    "tpu.trace_start"() <{level = 10 : i32, message = "bqd,bkd->bqk"}> : () -> ()
    %cst_13 = arith.constant dense<0.000000e+00> : vector<16x8x8xf32>
    %18 = tpu.matmul %11, %14, %cst_13 {dimension_numbers = #tpu.dot_dimension_numbers<[2], [2], [1], [1], [0, 0, 0, 1, 1, 1], [0], [0]>} : vector<16x8x16xf32>, vector<16x8x16xf32>, vector<16x8x8xf32> -> vector<16x8x8xf32>
    "tpu.trace_stop"() : () -> ()
    %19 = vector.shape_cast %18 : vector<16x8x8xf32> to vector<4x4x8x8xf32>
    %c0_14 = arith.constant 0 : index
    %c0_15 = arith.constant 0 : index
    %c0_16 = arith.constant 0 : index
    %20 = vector.load %arg4[%c0_14, %c0_15, %c0_16] : memref<4x8x8xf32, #tpu.memory_space<vmem>>, vector<4x8x8xf32>
    %21 = vector.shape_cast %20 : vector<4x8x8xf32> to vector<4x1x8x8xf32>
    %22 = vector.broadcast %21 : vector<4x1x8x8xf32> to vector<4x4x8x8xf32>
    %23 = arith.addf %19, %22 : vector<4x4x8x8xf32>
    %cst_17 = arith.constant dense<0xFF800000> : vector<4x4x8xf32>
    %24 = vector.multi_reduction <maximumf>, %23, %cst_17 [3] : vector<4x4x8x8xf32> to vector<4x4x8xf32>
    %25 = vector.shape_cast %24 : vector<4x4x8xf32> to vector<4x4x8x1xf32>
    %26 = vector.broadcast %25 : vector<4x4x8x1xf32> to vector<4x4x8x8xf32>
    %27 = arith.subf %23, %26 : vector<4x4x8x8xf32>
    %28 = math.exp %27 : vector<4x4x8x8xf32>
    %cst_18 = arith.constant dense<0.000000e+00> : vector<4x4x8xf32>
    %29 = vector.multi_reduction <add>, %28, %cst_18 [3] : vector<4x4x8x8xf32> to vector<4x4x8xf32>
    %30 = vector.shape_cast %29 : vector<4x4x8xf32> to vector<4x4x8x1xf32>
    %31 = vector.broadcast %30 : vector<4x4x8x1xf32> to vector<4x4x8x8xf32>
    %32 = arith.divf %28, %31 : vector<4x4x8x8xf32>
    %33 = vector.shape_cast %32 : vector<4x4x8x8xf32> to vector<16x8x8xf32>
    %c0_19 = arith.constant 0 : index
    %c0_20 = arith.constant 0 : index
    %c0_21 = arith.constant 0 : index
    %34 = vector.load %arg11[%c0_19, %c0_20, %c0_21] : memref<16x8x8xf32, #tpu.memory_space<vmem>>, vector<16x8x8xf32>
    tpu.vector_store %arg11[%c0_19, %c0_20, %c0_21], %33 {strides = array<i32>} : memref<16x8x8xf32, #tpu.memory_space<vmem>>, vector<16x8x8xf32>,
    "tpu.trace_start"() <{level = 10 : i32, message = "bqk,bkd->bqd"}> : () -> ()
    %cst_22 = arith.constant dense<0.000000e+00> : vector<16x8x16xf32>
    %35 = tpu.matmul %33, %17, %cst_22 {dimension_numbers = #tpu.dot_dimension_numbers<[2], [1], [1], [2], [0, 0, 0, 1, 1, 2], [0], [0]>} : vector<16x8x8xf32>, vector<16x8x16xf32>, vector<16x8x16xf32> -> vector<16x8x16xf32>
    "tpu.trace_stop"() : () -> ()
    %36 = vector.shape_cast %35 : vector<16x8x16xf32> to vector<4x4x8x16xf32>
    %37 = tpu.transpose %36, [0, 2, 1, 3] : vector<4x4x8x16xf32> -> vector<4x8x4x16xf32>
    %38 = vector.shape_cast %37 : vector<4x8x4x16xf32> to vector<32x64xf32>
    %c0_23 = arith.constant 0 : index
    %c0_24 = arith.constant 0 : index
    %39 = vector.load %arg8[%c0_23, %c0_24] : memref<64x32xf32, #tpu.memory_space<vmem>>, vector<64x32xf32>
    %cst_25 = arith.constant dense<0.000000e+00> : vector<32x32xf32>
    %40 = tpu.matmul %38, %39, %cst_25 {dimension_numbers = #tpu.dot_dimension_numbers<[1], [0], [0], [1], [0, 0, 1, 1], [], []>} : vector<32x64xf32>, vector<64x32xf32>, vector<32x32xf32> -> vector<32x32xf32>
    %41 = arith.addf %40, %0 : vector<32x32xf32>
    %cst_26 = arith.constant dense<0.000000e+00> : vector<32xf32>
    %42 = vector.multi_reduction <add>, %41, %cst_26 [1] : vector<32x32xf32> to vector<32xf32>
    %43 = vector.shape_cast %42 : vector<32xf32> to vector<32x1xf32>
    %cst_27 = arith.constant 3.200000e+01 : f32
    %44 = vector.broadcast %cst_27 : f32 to vector<32x1xf32>
    %45 = arith.divf %43, %44 : vector<32x1xf32>
    %46 = vector.broadcast %45 : vector<32x1xf32> to vector<32x32xf32>
    %47 = arith.subf %41, %46 : vector<32x32xf32>
    %48 = arith.mulf %47, %47 : vector<32x32xf32>
    %cst_28 = arith.constant dense<0.000000e+00> : vector<32xf32>
    %49 = vector.multi_reduction <add>, %48, %cst_28 [1] : vector<32x32xf32> to vector<32xf32>
    %50 = vector.shape_cast %49 : vector<32xf32> to vector<32x1xf32>
    %cst_29 = arith.constant 3.200000e+01 : f32
    %51 = vector.broadcast %cst_29 : f32 to vector<32x1xf32>
    %52 = arith.divf %50, %51 : vector<32x1xf32>
    %53 = vector.broadcast %45 : vector<32x1xf32> to vector<32x32xf32>
    %54 = arith.subf %41, %53 : vector<32x32xf32>
    %cst_30 = arith.constant 9.99999974E-6 : f32
    %55 = vector.broadcast %cst_30 : f32 to vector<32x1xf32>
    %56 = arith.addf %52, %55 : vector<32x1xf32>
    %57 = math.rsqrt %56 : vector<32x1xf32>
    %58 = vector.broadcast %57 : vector<32x1xf32> to vector<32x32xf32>
    %59 = arith.mulf %54, %58 : vector<32x32xf32>
    %c0_31 = arith.constant 0 : index
    %c0_32 = arith.constant 0 : index
    %60 = vector.load %arg9[%c0_31, %c0_32] : memref<2x32xf32, #tpu.memory_space<vmem>>, vector<2x32xf32>
    %61 = vector.extract_strided_slice %60 {offsets = [0, 0], sizes = [1, 32], strides = [1, 1]} : vector<2x32xf32> to vector<1x32xf32>
    %62 = vector.broadcast %61 : vector<1x32xf32> to vector<32x32xf32>
    %63 = arith.mulf %59, %62 : vector<32x32xf32>
    %64 = vector.extract_strided_slice %60 {offsets = [1, 0], sizes = [1, 32], strides = [1, 1]} : vector<2x32xf32> to vector<1x32xf32>
    %65 = vector.broadcast %64 : vector<1x32xf32> to vector<32x32xf32>
    %66 = arith.addf %63, %65 : vector<32x32xf32>
    %c0_33 = arith.constant 0 : index
    %c0_34 = arith.constant 0 : index
    %67 = vector.load %arg10[%c0_33, %c0_34] : memref<32x32xf32, #tpu.memory_space<vmem>>, vector<32x32xf32>
    tpu.vector_store %arg10[%c0_33, %c0_34], %66 {strides = array<i32>} : memref<32x32xf32, #tpu.memory_space<vmem>>, vector<32x32xf32>,
    return
  }
  func.func @transform_0(%arg0: i32) -> (i32, i32) {
    %c0_i32 = arith.constant 0 : i32
    %c0_i32_0 = arith.constant 0 : i32
    return %arg0, %c0_i32 : i32, i32
  }
  func.func @transform_1(%arg0: i32) -> (i32, i32) {
    %c0_i32 = arith.constant 0 : i32
    %c0_i32_0 = arith.constant 0 : i32
    return %arg0, %c0_i32 : i32, i32
  }
  func.func @transform_2(%arg0: i32) -> (i32, i32) {
    %c0_i32 = arith.constant 0 : i32
    %c0_i32_0 = arith.constant 0 : i32
    return %arg0, %c0_i32 : i32, i32
  }
  func.func @transform_3(%arg0: i32) -> (i32, i32, i32) {
    %c0_i32 = arith.constant 0 : i32
    %c0_i32_0 = arith.constant 0 : i32
    %c0_i32_1 = arith.constant 0 : i32
    return %arg0, %c0_i32, %c0_i32_0 : i32, i32, i32
  }
  func.func @transform_4(%arg0: i32) -> (i32, i32) {
    %c0_i32 = arith.constant 0 : i32
    %c0_i32_0 = arith.constant 0 : i32
    %c0_i32_1 = arith.constant 0 : i32
    return %c0_i32, %c0_i32_0 : i32, i32
  }
  func.func @transform_5(%arg0: i32) -> (i32, i32) {
    %c0_i32 = arith.constant 0 : i32
    %c0_i32_0 = arith.constant 0 : i32
    %c0_i32_1 = arith.constant 0 : i32
    return %c0_i32, %c0_i32_0 : i32, i32
  }
  func.func @transform_6(%arg0: i32) -> (i32, i32) {
    %c0_i32 = arith.constant 0 : i32
    %c0_i32_0 = arith.constant 0 : i32
    %c0_i32_1 = arith.constant 0 : i32
    return %c0_i32, %c0_i32_0 : i32, i32
  }
  func.func @transform_7(%arg0: i32) -> (i32, i32) {
    %c0_i32 = arith.constant 0 : i32
    %c0_i32_0 = arith.constant 0 : i32
    %c0_i32_1 = arith.constant 0 : i32
    return %c0_i32, %c0_i32_0 : i32, i32
  }
  func.func @transform_8(%arg0: i32) -> (i32, i32) {
    %c0_i32 = arith.constant 0 : i32
    %c0_i32_0 = arith.constant 0 : i32
    %c0_i32_1 = arith.constant 0 : i32
    return %c0_i32, %c0_i32_0 : i32, i32
  }
  func.func @transform_9(%arg0: i32) -> (i32, i32) {
    %c0_i32 = arith.constant 0 : i32
    %c0_i32_0 = arith.constant 0 : i32
    return %arg0, %c0_i32 : i32, i32
  }
  func.func @transform_10(%arg0: i32) -> (i32, i32, i32) {
    %c0_i32 = arith.constant 0 : i32
    %c0_i32_0 = arith.constant 0 : i32
    %c0_i32_1 = arith.constant 0 : i32
    return %arg0, %c0_i32, %c0_i32_0 : i32, i32, i32
  }
}

</mosaic_0001>

<bundles_post_ra>
// kernel: tpu_custom_call.1
= control target key start
LH: loop header
LB: loop body
LE: loop exit
PB: predicated region body
PF: predicated region fallthrough
CT: control target
= control target key end

     0   :  { %16 = vsyncpa [#allocation3], 0  ;;  %s5509_s0 = inlined_call_operand.vmem [shape: f32[32,32], index: 0, kind: input, shape index: {}]   ;;  %s5510_s1 = inlined_call_operand.vmem [shape: f32[32,32], index: 1, kind: input, shape index: {}]   ;;  %s5511_s2 = inlined_call_operand.vmem [shape: f32[32,32], index: 2, kind: input, shape index: {}]   ;;  %s5512_s3 = inlined_call_operand.hbm [shape: f32[4,8,8], index: 3, kind: input, shape index: {}]   ;;  %s5513_s4 = inlined_call_operand.hbm [shape: f32[32,64], index: 4, kind: input, shape index: {}]   ;;  %s5514_s5 = inlined_call_operand.hbm [shape: f32[32,64], index: 5, kind: input, shape index: {}]   ;;  %s5515_s6 = inlined_call_operand.hbm [shape: f32[32,64], index: 6, kind: input, shape index: {}]   ;;  %s5516_s7 = inlined_call_operand.vmem [shape: f32[64,32], index: 7, kind: input, shape index: {}]   ;;  %s5517_s8 = inlined_call_operand.vmem [shape: f32[2,32], index: 8, kind: input, shape index: {}]   ;;  %s5518_s9 = inlined_call_operand.hbm [shape: f32[32,32], index: 9, kind: output, shape index: {0}]   ;;  %s5519_s10 = inlined_call_operand.vmem [shape: f32[16,8,8], index: 10, kind: output, shape index: {1}]  }
   0x1   :  { %17 = vsyncpa [#allocation6], 0 }
   0x2   :  { %18 = vsyncpa [#allocation9], 0 }
   0x3   :  { %19 = vsyncpa [#allocation4], 0  ;;  %s43_s15 = sshll.u32 %s5513_s4, 4  ;;  %s3895_s16 = smov [#allocation5]   ;;  %s44_s15 = int_to_ptr.hbm [resolvable:$true] %s43_s15 }
   0x4   :  { %s45_s17 = sshll.u32 %s3895_s16, 4  ;;  %s30_s20 = sshll.u32 %s5512_s3, 4  ;;  %s46_s17 = int_to_ptr.vmem [resolvable:$true] %s45_s17  ;;  %s31_s20 = int_to_ptr.hbm [resolvable:$true] %s30_s20 }
   0x5   :  { %s3896_s21 = smov 128   ;;  %s3897_s22 = smov 8  }
   0x6   :  { %51 = dma.hbm_to_vmem [thread:$0]  %s44_s15, 512, %s46_s17, [#allocation6], %s3896_s21, %s3896_s21, %s3897_s22  }
   0x7   :  { %s3898_s23 = smov [#allocation2]   ;;  %s56_s4 = sshll.u32 %s5514_s5, 4  ;;  %s57_s4 = int_to_ptr.hbm [resolvable:$true] %s56_s4 }
   0x8   :  { %s32_s24 = sshll.u32 %s3898_s23, 4  ;;  %s69_s28 = sshll.u32 %s5515_s6, 4  ;;  %s33_s24 = int_to_ptr.vmem [resolvable:$true] %s32_s24  ;;  %s70_s28 = int_to_ptr.hbm [resolvable:$true] %s69_s28 }
   0x9   :  { %38 = dma.hbm_to_vmem [thread:$0]  %s31_s20, 512, %s33_s24, [#allocation3], %s3896_s21, %s3896_s21, %s3897_s22  }
   0xa   :  { %s3899_s29 = smov [#allocation7]   ;;  %s3900_s11 = smov [#allocation8]  }
   0xb   :  { %s58_s30 = sshll.u32 %s3899_s29, 4  ;;  %s71_s5 = sshll.u32 %s3900_s11, 4  ;;  %s59_s30 = int_to_ptr.vmem [resolvable:$true] %s58_s30  ;;  %s72_s5 = int_to_ptr.vmem [resolvable:$true] %s71_s5 }
   0xc   :  { %64 = dma.hbm_to_vmem [thread:$0]  %s57_s4, 512, %s59_s30, [#allocation6], %s3896_s21, %s3896_s21, %s3897_s22  }
   0xd   :  { %77 = dma.hbm_to_vmem [thread:$0]  %s70_s28, 512, %s72_s5, [#allocation9], %s3896_s21, %s3896_s21, %s3897_s22  }
   0xe   :  { %3887 = dma.done.wait [#allocation3], 512  }
   0xf   :  { %3888 = vsyncadd [#allocation3], 4294966784 }
  0x10   :  { %3889 = dma.done.wait [#allocation6], 1024  }
  0x11   :  { %3890 = vsyncadd [#allocation6], 4294966272 }
  0x12   :  { %3891 = dma.done.wait [#allocation9], 512  }
  0x13   :  { %3892 = vsyncadd [#allocation9], 4294966784  ;;  %v155_v0 = vld [vmem:[#allocation7 + $0x18] sm:$0xff]  ;;  %v154_v1 = vld [vmem:[#allocation7 + $0x10] sm:$0xff]  ;;  %vm106_vm0 = vcmask 261120   ;;  %s3901_s11 = smov 80  }
  0x14   :  { %180 = vmatpush.msra.mxu1 %v155_v0  ;;  %v105_v2 = vld [vmem:[#allocation5 + $0x18] sm:$0xff]  ;;  %v153_v3 = vld [vmem:[#allocation7 + $0x8] sm:$0xff]  ;;  %v104_v4 = vld [vmem:[#allocation5 + $0x10] sm:$0xff]  ;;  %s3902_s5 = smov 96   ;;  %v3904_v37 = vmov 1983009808  }
  0x15   :  { %131 = vmatpush.msra.mxu0 %v105_v2  ;;  %v103_v5 = vld [vmem:[#allocation5 + $0x8] sm:$0xff]  ;;  %v152_v6 = vld [vmem:[#allocation7] sm:$0xff]  ;;  %v204_v9 = vld [vmem:[#allocation8 + $0x18] sm:$0xff]  ;;  %v292_v38 = vunpack.c.l.s4 %v3904_v37  ;;  %vm287_vm1 = vcmask 1047556   ;;  %v3905_v54 = vmov 1934713408  }
  0x16   :  { %181 = vmatpush.msra.mxu1 %v154_v1  ;;  %v148_v7 = vld [vmem:[%s5510_s1] sm:$0xff]  ;;  %229 = vmatpush.msra.mxu2 %v204_v9  ;;  %v203_v11 = vld [vmem:[#allocation8 + $0x10] sm:$0xff]  ;;  %v202_v12 = vld [vmem:[#allocation8 + $0x8] sm:$0xff]  ;;  %v316_v55 = vunpack.c.l.s4 %v3905_v54  ;;  %vm1687_vm2 = vcmask 130048   ;;  %vm2124_vm3 = vcmask 64512   ;;  %s3907_s24 = smov 48  }
  0x17   :  { %132 = vmatpush.msra.mxu0 %v104_v4  ;;  %v102_v8 = vld [vmem:[#allocation5] sm:$0xff]  ;;  %v149_v15 = vld [vmem:[%s5510_s1 + $0x8] sm:$0xff]  ;;  %v150_v18 = vld [vmem:[%s5510_s1 + $0x10] sm:$0xff]  ;;  %v4112_v42 = vunpack.c.0.s8 %v292_v38  ;;  %s3908_s25 = smov 16   ;;  %s3560_s3 = sshll.u32 %s5518_s9, 4  ;;  %s3561_s3 = int_to_ptr.hbm [resolvable:$true] %s3560_s3 }
  0x18   :  { %182 = vmatpush.msra.mxu1 %v153_v3  ;;  %v98_v10 = vld [vmem:[%s5509_s0] sm:$0xff]  ;;  %230 = vmatpush.msra.mxu2 %v203_v11  ;;  %v99_v16 = vld [vmem:[%s5509_s0 + $0x8] sm:$0xff]  ;;  %v100_v19 = vld [vmem:[%s5509_s0 + $0x10] sm:$0xff]  ;;  %v4136_v3 = vunpack.c.0.s8 %v316_v55 }
  0x19   :  { %133 = vmatpush.msra.mxu0 %v103_v5  ;;  %v201_v13 = vld [vmem:[#allocation8] sm:$0xff]  ;;  %v198_v17 = vld [vmem:[%s5511_s2 + $0x8] sm:$0xff]  ;;  %v151_v20 = vld [vmem:[%s5510_s1 + $0x18] sm:$0xff]  ;;  %s3903_s1 = smov 112  }
  0x1a   :  { %183 = vmatpush.msra.mxu1 %v152_v6  ;;  %231 = vmatpush.msra.mxu2 %v202_v12  ;;  %v197_v14 = vld [vmem:[%s5511_s2] sm:$0xff]  ;;  %v101_v21 = vld [vmem:[%s5509_s0 + $0x18] sm:$0xff]  ;;  %v199_v35 = vld [vmem:[%s5511_s2 + $0x10] sm:$0xff] }
  0x1b   :  { %3583 = vmatmul.msk.f32.vlgmr.msra.gmra.mxu1 %vm106_vm0, %v148_v7  ;;  %134 = vmatpush.msra.mxu0 %v102_v8  ;;  %v200_v44 = vld [vmem:[%s5511_s2 + $0x18] sm:$0xff] }
  0x1c   :  { %3579 = vmatmul.msk.f32.vlgmr.msra.gmra.mxu0 %vm106_vm0, %v98_v10  ;;  %232 = vmatpush.msra.mxu2 %v201_v13 }
  0x1d   :  { %3587 = vmatmul.msk.f32.vlgmr.msra.gmra.mxu2 %vm106_vm0, %v197_v14 }
  0x23   :  { %3584 = vmatmul.msk.f32.gmra.mxu1 %vm106_vm0, %v149_v15 }
  0x24   :  { %3580 = vmatmul.msk.f32.gmra.mxu0 %vm106_vm0, %v99_v16 }
  0x25   :  { %3588 = vmatmul.msk.f32.gmra.mxu2 %vm106_vm0, %v198_v17 }
  0x2b   :  { %3585 = vmatmul.msk.f32.gmra.mxu1 %vm106_vm0, %v150_v18 }
  0x2c   :  { %3581 = vmatmul.msk.f32.gmra.mxu0 %vm106_vm0, %v100_v19 }
  0x2d   :  { %3589 = vmatmul.msk.f32.gmra.mxu2 %vm106_vm0, %v199_v35 }
  0x33   :  { %3586 = vmatmul.msk.f32.gmra.mxu1 %vm106_vm0, %v151_v20 }
  0x34   :  { %3582 = vmatmul.msk.f32.gmra.mxu0 %vm106_vm0, %v101_v21 }
  0x35   :  { %3590 = vmatmul.msk.f32.gmra.mxu2 %vm106_vm0, %v200_v44 }
  0x98   :  { %v4030_v22 = vpop.f32.mrf.mxu1 }
  0x99   :  { %755 = vrot.lane.b32.xlu1 %v4030_v22, %s3901_s11  ;;  %743 = vrot.lane.b32.xlu0 %v4030_v22, %s3902_s5  ;;  %v4036_v23 = vpop.f32.mrf.mxu0  ;;  %v769_v49 = vrot.slane %v4030_v22, 4 }
  0x9a   :  { %250 = vrot.lane.b32.xlu2 %v4036_v23, %s3903_s1  ;;  %v289_v56 = vrot.slane %v4036_v23, 4 }
  0xa0   :  { %v4046_v24 = vpop.f32.mrf.mxu1  ;;  %v4094_v30 = vpop.f32.mrf.mxu2 }
  0xa1   :  { %731 = vrot.lane.b32.xlu0 %v4030_v22, %s3903_s1  ;;  %262 = vrot.lane.b32.xlu1 %v4036_v23, %s3902_s5  ;;  %v4054_v25 = vpop.f32.mrf.mxu0  ;;  %v825_v58 = vrot.slane %v4046_v24, 4 }
  0xa2   :  { %274 = vrot.lane.b32.xlu2 %v4036_v23, %s3901_s11  ;;  %v345_v59 = vrot.slane %v4054_v25, 4 }
  0xa8   :  { %v4062_v26 = vpop.f32.mrf.mxu1  ;;  %v4096_v31 = vpop.f32.mrf.mxu2 }
  0xa9   :  { %733 = vrot.lane.b32.xlu0 %v4046_v24, %s3903_s1  ;;  %745 = vrot.lane.b32.xlu1 %v4046_v24, %s3902_s5  ;;  %v4070_v27 = vpop.f32.mrf.mxu0  ;;  %v4100_v32 = vpack.i.bf16 %v4096_v31, %v4094_v30  ;;  %v881_v60 = vrot.slane %v4062_v26, 4 }
  0xaa   :  { %757 = vrot.lane.b32.xlu2 %v4046_v24, %s3901_s11  ;;  %v401_v63 = vrot.slane %v4070_v27, 4 }
  0xb0   :  { %v4078_v28 = vpop.f32.mrf.mxu1 }
  0xb1   :  { %264 = vrot.lane.b32.xlu1 %v4054_v25, %s3902_s5  ;;  %252 = vrot.lane.b32.xlu0 %v4054_v25, %s3903_s1  ;;  %v4086_v29 = vpop.f32.mrf.mxu0  ;;  %v937_v0 = vrot.slane %v4078_v28, 4 }
  0xb2   :  { %276 = vrot.lane.b32.xlu2 %v4054_v25, %s3901_s11  ;;  %v457_v6 = vrot.slane %v4086_v29, 4 }
  0xb9   :  { %747 = vrot.lane.b32.xlu1 %v4062_v26, %s3902_s5  ;;  %735 = vrot.lane.b32.xlu0 %v4062_v26, %s3903_s1 }
  0xba   :  { %759 = vrot.lane.b32.xlu2 %v4062_v26, %s3901_s11 }
  0xc1   :  { %266 = vrot.lane.b32.xlu1 %v4070_v27, %s3902_s5  ;;  %254 = vrot.lane.b32.xlu0 %v4070_v27, %s3903_s1 }
  0xc2   :  { %278 = vrot.lane.b32.xlu2 %v4070_v27, %s3901_s11 }
  0xc9   :  { %749 = vrot.lane.b32.xlu1 %v4078_v28, %s3902_s5  ;;  %737 = vrot.lane.b32.xlu0 %v4078_v28, %s3903_s1 }
  0xca   :  { %761 = vrot.lane.b32.xlu2 %v4078_v28, %s3901_s11 }
  0xd1   :  { %268 = vrot.lane.b32.xlu1 %v4086_v29, %s3902_s5  ;;  %256 = vrot.lane.b32.xlu0 %v4086_v29, %s3903_s1 }
  0xd2   :  { %280 = vrot.lane.b32.xlu2 %v4086_v29, %s3901_s11 }
  0xd9   :  { %3665 = vrot.lane.b32.xlu1 %v4100_v32, %s3902_s5  ;;  %3660 = vrot.lane.b32.xlu0 %v4100_v32, %s3903_s1 }
  0xda   :  { %3670 = vrot.lane.b32.xlu2 %v4100_v32, %s3901_s11 }
  0xf4   :  { %v251_v33 = vpop.permute.xlu2 %250 }
  0xf5   :  { %v301_v39 = vrot.slane %v251_v33, 4 }
  0xfc   :  { %v275_v34 = vpop.permute.xlu2 %274 }
  0xfd   :  { %v299_v40 = vrot.slane %v275_v34, 4  ;;  %v302_v47 = vsel %vm287_vm1, %v275_v34, %v301_v39 }
  0xfe   :  { %v310_v53 = vperm.slane %v302_v47, %v4112_v42 }
  0xff   :  { %v300_v46 = vsel %vm287_vm1, %v299_v40, %v251_v33 }
 0x100   :  { %v306_v52 = vperm.slane %v300_v46, %v4112_v42  ;;  %v323_v2 = vrot.slane %v310_v53, 4 }
 0x102   :  { %v311_v1 = vrot.slane %v306_v52, 4 }
 0x104   :  { %v4109_v36 = vpop.permute.xlu2 %757 }
 0x105   :  { %v835_v14 = vrot.slane %v4109_v36, 4 }
 0x10b   :  { %v756_v41 = vpop.permute.xlu1 %755  ;;  %v744_v43 = vpop.permute.xlu0 %743 }
 0x10c   :  { %v767_v45 = vrot.slane %v744_v43, 4  ;;  %v4119_v48 = vpop.permute.xlu2 %276  ;;  %v770_v51 = vsel %vm287_vm1, %v744_v43, %v769_v49  ;;  %v779_v61 = vrot.slane %v756_v41, 4 }
 0x10d   :  { %v778_v62 = vperm.slane %v770_v51, %v4112_v42  ;;  %v355_v19 = vrot.slane %v4119_v48, 4 }
 0x10e   :  { %v768_v50 = vsel %vm287_vm1, %v767_v45, %v4030_v22 }
 0x10f   :  { %v774_v57 = vperm.slane %v768_v50, %v4112_v42  ;;  %v805_v16 = vrot.slane %v778_v62, 4 }
 0x111   :  { %v793_v11 = vrot.slane %v774_v57, 4 }
 0x113   :  { %v732_v4 = vpop.permute.xlu0 %731  ;;  %v263_v5 = vpop.permute.xlu1 %262 }
 0x114   :  { %v780_v7 = vsel %vm287_vm1, %v779_v61, %v732_v4  ;;  %v781_v8 = vrot.slane %v732_v4, 4  ;;  %v286_v9 = vrot.slane %v263_v5, 4  ;;  %v290_v10 = vsel %vm287_vm1, %v263_v5, %v289_v56  ;;  %v4144_v15 = vpop.permute.xlu2 %759 }
 0x115   :  { %v786_v12 = vperm.slane %v780_v7, %v4112_v42  ;;  %v298_v13 = vperm.slane %v290_v10, %v4112_v42  ;;  %v891_v38 = vrot.slane %v4144_v15, 4 }
 0x116   :  { %v782_v17 = vsel %vm287_vm1, %v756_v41, %v781_v8  ;;  %v288_v18 = vsel %vm287_vm1, %v286_v9, %v4036_v23 }
 0x117   :  { %v790_v20 = vperm.slane %v782_v17, %v4112_v42  ;;  %v791_v21 = vrot.slane %v786_v12, 4  ;;  %v794_v22 = vsel %vm287_vm1, %v786_v12, %v793_v11  ;;  %v294_v33 = vperm.slane %v288_v18, %v4112_v42 }
 0x118   :  { %v802_v34 = vperm.slane %v794_v22, %v4136_v3  ;;  %v324_v35 = vsel %vm287_vm1, %v323_v2, %v298_v13  ;;  %v325_v37 = vrot.slane %v298_v13, 4 }
 0x119   :  { %v792_v39 = vsel %vm287_vm1, %v791_v21, %v774_v57  ;;  %v803_v40 = vrot.slane %v790_v20, 4  ;;  %v806_v23 = vsel %vm287_vm1, %v790_v20, %v805_v16  ;;  %v312_v41 = vsel %vm287_vm1, %v311_v1, %v294_v33 }
 0x11a   :  { %v798_v43 = vperm.slane %v792_v39, %v4136_v3  ;;  %v814_v44 = vperm.slane %v806_v23, %v4136_v3  ;;  %v817_v45 = vrot.slane %v802_v34, 4  ;;  %v313_v46 = vrot.slane %v294_v33, 4 }
 0x11b   :  { %v804_v47 = vsel %vm287_vm1, %v803_v40, %v778_v62  ;;  %v4163_v49 = vperm.slane %v312_v41, %v4136_v3  ;;  %v326_v50 = vsel %vm287_vm1, %v310_v53, %v325_v37  ;;  %v330_v51 = vperm.slane %v324_v35, %v4136_v3  ;;  %v734_v54 = vpop.permute.xlu0 %733  ;;  %v746_v55 = vpop.permute.xlu1 %745 }
 0x11c   :  { %v4168_v56 = vperm.slane %v804_v47, %v4136_v3  ;;  %v815_v57 = vrot.slane %v798_v43, 4  ;;  %v4171_v61 = vsel %vm287_vm1, 0.0, %v817_v45  ;;  %v4173_v1 = vrot.slane %v814_v44, 4 }
 0x11d   :  { %v991_v62 = vsel %vm287_vm1, %v817_v45, %v798_v43  ;;  %v996_v2 = vrot.slane %v4171_v61, 4  ;;  %v314_v4 = vsel %vm287_vm1, %v306_v52, %v313_v46  ;;  %v334_v53 = vperm.slane %v326_v50, %v4136_v3 }
 0x11e   :  { %v4180_v5 = vsel %vm287_vm1, 0.0, %v815_v57  ;;  %v4184_v7 = vsel %vm287_vm1, 0.0, %v4173_v1  ;;  %v4187_v8 = vperm.slane %v991_v62, %v4112_v42  ;;  %v322_v9 = vperm.slane %v314_v4, %v4136_v3 }
 0x11f   :  { %v1007_v10 = vrot.slane %v4184_v7, 4  ;;  %v335_v11 = vrot.slane %v4163_v49, 4  ;;  %v339_v12 = vrot.slane %v330_v51, 4  ;;  %v341_v52 = vrot.slane %v334_v53, 4 }
 0x120   :  { %v4192_v13 = vrot.slane %v322_v9, 4  ;;  %v836_v16 = vsel %vm287_vm1, %v835_v14, %v734_v54  ;;  %v837_v17 = vrot.slane %v734_v54, 4  ;;  %v823_v18 = vrot.slane %v746_v55, 4 }
 0x121   :  { %v4196_v20 = vsel %vm287_vm1, 0.0, %v335_v11  ;;  %v4199_v21 = vsel %vm287_vm1, 0.0, %v339_v12  ;;  %v4202_v22 = vsel %vm287_vm1, 0.0, %v341_v52  ;;  %v4205_v33 = vsel %vm287_vm1, %v341_v52, %v330_v51 }
 0x122   :  { %v4209_v34 = vsel %vm287_vm1, 0.0, %v4192_v13  ;;  %v527_v14 = vrot.slane %v4202_v22, 4  ;;  %v838_v35 = vsel %vm287_vm1, %v4109_v36, %v837_v17  ;;  %v842_v37 = vperm.slane %v836_v16, %v4112_v42 }
 0x123   :  { %v516_v39 = vrot.slane %v4209_v34, 4  ;;  %v846_v40 = vperm.slane %v838_v35, %v4112_v42  ;;  %v824_v23 = vsel %vm287_vm1, %v823_v18, %v4046_v24  ;;  %v826_v41 = vsel %vm287_vm1, %v746_v55, %v825_v58  ;;  %v265_v43 = vpop.permute.xlu1 %264  ;;  %v253_v44 = vpop.permute.xlu0 %252 }
 0x124   :  { %v847_v45 = vrot.slane %v842_v37, 4  ;;  %v830_v46 = vperm.slane %v824_v23, %v4112_v42  ;;  %v834_v36 = vperm.slane %v826_v41, %v4112_v42  ;;  %v343_v47 = vrot.slane %v265_v43, 4 }
 0x125   :  { %v859_v50 = vrot.slane %v846_v40, 4  ;;  %v346_v51 = vsel %vm287_vm1, %v265_v43, %v345_v59  ;;  %v356_v54 = vsel %vm287_vm1, %v355_v19, %v253_v44  ;;  %v357_v24 = vrot.slane %v253_v44, 4 }
 0x126   :  { %v848_v58 = vsel %vm287_vm1, %v847_v45, %v830_v46  ;;  %v849_v55 = vrot.slane %v830_v46, 4  ;;  %v861_v57 = vrot.slane %v834_v36, 4  ;;  %v344_v62 = vsel %vm287_vm1, %v343_v47, %v4054_v25 }
 0x127   :  { %v854_v4 = vperm.slane %v848_v58, %v4136_v3  ;;  %v860_v53 = vsel %vm287_vm1, %v859_v50, %v834_v36  ;;  %v350_v9 = vperm.slane %v344_v62, %v4112_v42  ;;  %v354_v59 = vperm.slane %v346_v51, %v4112_v42 }
 0x128   :  { %v850_v11 = vsel %vm287_vm1, %v842_v37, %v849_v55  ;;  %v862_v19 = vsel %vm287_vm1, %v846_v40, %v861_v57  ;;  %v866_v12 = vperm.slane %v860_v53, %v4136_v3  ;;  %v358_v52 = vsel %vm287_vm1, %v4119_v48, %v357_v24 }
 0x129   :  { %v858_v16 = vperm.slane %v850_v11, %v4136_v3  ;;  %v870_v25 = vperm.slane %v862_v19, %v4136_v3  ;;  %v871_v17 = vrot.slane %v854_v4, 4  ;;  %v369_v18 = vrot.slane %v350_v9, 4 }
 0x12a   :  { %v875_v35 = vrot.slane %v866_v12, 4  ;;  %v381_v23 = vrot.slane %v354_v59, 4  ;;  %v362_v41 = vperm.slane %v356_v54, %v4112_v42  ;;  %v366_v43 = vperm.slane %v358_v52, %v4112_v42 }
 0x12b   :  { %v4247_v37 = vsel %vm287_vm1, 0.0, %v871_v17  ;;  %v873_v40 = vrot.slane %v858_v16, 4  ;;  %v877_v44 = vrot.slane %v870_v25, 4  ;;  %v819_v45 = vrot.slane %v4168_v56, 4 }
 0x12c   :  { %v876_v48 = vsel %vm287_vm1, 0.0, %v875_v35  ;;  %v367_v46 = vrot.slane %v362_v41, 4  ;;  %v370_v36 = vsel %vm287_vm1, %v362_v41, %v369_v18  ;;  %v379_v47 = vrot.slane %v366_v43, 4 }
 0x12d   :  { %v4253_v50 = vsel %vm287_vm1, 0.0, %v873_v40  ;;  %v878_v51 = vsel %vm287_vm1, 0.0, %v877_v44  ;;  %v4257_v54 = vsel %vm287_vm1, %v873_v40, %v854_v4  ;;  %v1056_v24 = vsel %vm287_vm1, %v877_v44, %v866_v12 }
 0x12e   :  { %v1050_v58 = vrot.slane %v4253_v50, 4  ;;  %v4262_v55 = vperm.slane %v1056_v24, %v4112_v42  ;;  %v1061_v57 = vrot.slane %v878_v51, 4  ;;  %v368_v62 = vsel %vm287_vm1, %v367_v46, %v350_v9  ;;  %v736_v24 = vpop.permute.xlu0 %735 }
 0x12f   :  { %v374_v53 = vperm.slane %v368_v62, %v4136_v3  ;;  %v378_v11 = vperm.slane %v370_v36, %v4136_v3  ;;  %v380_v19 = vsel %vm287_vm1, %v379_v47, %v354_v59  ;;  %v382_v52 = vsel %vm287_vm1, %v366_v43, %v381_v23 }
 0x130   :  { %v1062_v4 = vsel %vm287_vm1, %v1061_v57, %v876_v48  ;;  %v1081_v12 = vrot.slane %v4262_v55, 4  ;;  %v386_v16 = vperm.slane %v380_v19, %v4136_v3  ;;  %v390_v25 = vperm.slane %v382_v52, %v4136_v3 }
 0x131   :  { %v4274_v17 = vperm.slane %v1062_v4, %v4112_v42  ;;  %v391_v9 = vrot.slane %v374_v53, 4  ;;  %v393_v18 = vrot.slane %v378_v11, 4  ;;  %v820_v35 = vsel %vm287_vm1, 0.0, %v819_v45 }
 0x132   :  { %v395_v41 = vrot.slane %v386_v16, 4  ;;  %v397_v40 = vrot.slane %v390_v25, 4  ;;  %v997_v59 = vsel %vm287_vm1, %v996_v2, %v4180_v5  ;;  %v1002_v23 = vsel %vm287_vm1, %v4173_v1, %v4168_v56  ;;  %v748_v5 = vpop.permute.xlu1 %747 }
 0x133   :  { %v392_v43 = vsel %vm287_vm1, 0.0, %v391_v9  ;;  %v394_v44 = vsel %vm287_vm1, 0.0, %v393_v18  ;;  %v565_v48 = vsel %vm287_vm1, %v393_v18, %v374_v53  ;;  %v1001_v46 = vperm.slane %v997_v59, %v4112_v42 }
 0x134   :  { %v4289_v45 = vsel %vm287_vm1, 0.0, %v395_v41  ;;  %v4292_v36 = vsel %vm287_vm1, 0.0, %v397_v40  ;;  %v4295_v61 = vperm.slane %v565_v48, %v4112_v42  ;;  %v570_v2 = vrot.slane %v394_v44, 4 }
 0x135   :  { %v576_v56 = vsel %vm287_vm1, %v397_v40, %v386_v16  ;;  %v581_v1 = vrot.slane %v4292_v36, 4  ;;  %v1006_v47 = vperm.slane %v1002_v23, %v4112_v42  ;;  %v1008_v51 = vsel %vm287_vm1, %v1007_v10, %v820_v35 }
 0x136   :  { %v4304_v57 = vsel %vm287_vm1, %v570_v2, %v392_v43  ;;  %v4307_v62 = vperm.slane %v576_v56, %v4112_v42  ;;  %v1012_v53 = vperm.slane %v1008_v51, %v4112_v42  ;;  %v1015_v11 = vrot.slane %v4187_v8, 4 }
 0x137   :  { %v1027_v19 = vrot.slane %v1006_v47, 4  ;;  %v1013_v52 = vrot.slane %v1001_v46, 4  ;;  %v879_v4 = vrot.slane %v748_v5, 4  ;;  %v882_v10 = vsel %vm287_vm1, %v748_v5, %v881_v60 }
 0x138   :  { %v1016_v16 = vsel %vm287_vm1, %v1001_v46, %v1015_v11  ;;  %v1025_v7 = vrot.slane %v1012_v53, 4  ;;  %v892_v25 = vsel %vm287_vm1, %v891_v38, %v736_v24  ;;  %v890_v44 = vperm.slane %v882_v10, %v4112_v42 }
 0x139   :  { %v1024_v9 = vperm.slane %v1016_v16, %v4136_v3  ;;  %v1028_v18 = vsel %vm287_vm1, %v1012_v53, %v1027_v19  ;;  %v1014_v35 = vsel %vm287_vm1, %v1013_v52, %v4187_v8  ;;  %v880_v41 = vsel %vm287_vm1, %v879_v4, %v4062_v26  ;;  %v4331_v26 = vpop.permute.xlu2 %278 }
 0x13a   :  { %v1036_v40 = vperm.slane %v1028_v18, %v4136_v3  ;;  %v1020_v59 = vperm.slane %v1014_v35, %v4136_v3  ;;  %v1026_v60 = vsel %vm287_vm1, %v1025_v7, %v1006_v47  ;;  %v886_v23 = vperm.slane %v880_v41, %v4112_v42 }
 0x13b   :  { %v1043_v43 = vrot.slane %v1024_v9, 4  ;;  %v1032_v38 = vperm.slane %v1026_v60, %v4136_v3  ;;  %v893_v48 = vrot.slane %v736_v24, 4  ;;  %v898_v5 = vperm.slane %v892_v25, %v4112_v42 }
 0x13c   :  { %v1039_v46 = vrot.slane %v1020_v59, 4  ;;  %v1041_v2 = vrot.slane %v1036_v40, 4  ;;  %v905_v8 = vrot.slane %v886_v23, 4  ;;  %v917_v51 = vrot.slane %v890_v44, 4 }
 0x13d   :  { %v1044_v56 = vsel %vm287_vm1, %v1036_v40, %v1043_v43  ;;  %v894_v47 = vsel %vm287_vm1, %v4144_v15, %v893_v48  ;;  %v1037_v53 = vrot.slane %v1032_v38, 4  ;;  %v903_v52 = vrot.slane %v898_v5, 4 }
 0x13e   :  { %3597 = vmatpush.xpose.msk.msra.mxu3 %vm1687_vm2, %v1044_v56  ;;  %v1040_v11 = vsel %vm287_vm1, %v1032_v38, %v1039_v46  ;;  %v1042_v24 = vsel %vm287_vm1, %v1041_v2, %v1024_v9  ;;  %v902_v19 = vperm.slane %v894_v47, %v4112_v42  ;;  %v906_v4 = vsel %vm287_vm1, %v898_v5, %v905_v8 }
 0x13f   :  { %3593 = vmatpush.xpose.msk.msrb.mxu1 %vm1687_vm2, %v1040_v11  ;;  %3595 = vmatpush.xpose.msk.msrb.mxu2 %vm1687_vm2, %v1042_v24  ;;  %v1038_v16 = vsel %vm287_vm1, %v1037_v53, %v1020_v59  ;;  %v511_v15 = vsel %vm287_vm1, %v4192_v13, %v4163_v49  ;;  %v411_v7 = vrot.slane %v4331_v26, 4  ;;  %v904_v10 = vsel %vm287_vm1, %v903_v52, %v886_v23 }
 0x140   :  { %v914_v25 = vperm.slane %v906_v4, %v4136_v3  ;;  %v915_v9 = vrot.slane %v902_v19, 4  ;;  %v918_v18 = vsel %vm287_vm1, %v902_v19, %v917_v51  ;;  %3591 = vmatpush.xpose.msk.msrb.mxu0 %vm1687_vm2, %v1038_v16  ;;  %v910_v35 = vperm.slane %v904_v10, %v4136_v3 }
 0x141   :  { %v926_v41 = vperm.slane %v918_v18, %v4136_v3  ;;  %v515_v40 = vperm.slane %v511_v15, %v4112_v42  ;;  %v517_v49 = vsel %vm287_vm1, %v516_v39, %v4196_v20  ;;  %v526_v23 = vperm.slane %v4205_v33, %v4112_v42 }
 0x142   :  { %v916_v13 = vsel %vm287_vm1, %v915_v9, %v890_v44  ;;  %v929_v59 = vrot.slane %v914_v25, 4  ;;  %v521_v60 = vperm.slane %v517_v49, %v4112_v42  ;;  %v927_v38 = vrot.slane %v910_v35, 4  ;;  %v267_v9 = vpop.permute.xlu1 %266 }
 0x143   :  { %v922_v43 = vperm.slane %v916_v13, %v4136_v3  ;;  %v933_v48 = vrot.slane %v926_v41, 4  ;;  %v528_v46 = vsel %vm287_vm1, %v527_v14, %v4199_v21  ;;  %v535_v44 = vrot.slane %v515_v40, 4 }
 0x144   :  { %v930_v34 = vsel %vm287_vm1, 0.0, %v929_v59  ;;  %v1099_v20 = vsel %vm287_vm1, %v929_v59, %v910_v35  ;;  %v532_v39 = vperm.slane %v528_v46, %v4112_v42  ;;  %v928_v2 = vsel %vm287_vm1, 0.0, %v927_v38 }
 0x145   :  { %v931_v8 = vrot.slane %v922_v43, 4  ;;  %v4373_v33 = vsel %vm287_vm1, 0.0, %v933_v48  ;;  %v4376_v5 = vperm.slane %v1099_v20, %v4112_v42  ;;  %v1104_v56 = vrot.slane %v930_v34, 4 }
 0x146   :  { %v1110_v22 = vsel %vm287_vm1, %v933_v48, %v922_v43  ;;  %v1115_v21 = vrot.slane %v4373_v33, 4  ;;  %v536_v14 = vsel %vm287_vm1, %v521_v60, %v535_v44  ;;  %v547_v11 = vrot.slane %v526_v23, 4 }
 0x147   :  { %v4382_v51 = vsel %vm287_vm1, 0.0, %v931_v8  ;;  %v4385_v47 = vperm.slane %v1110_v22, %v4112_v42  ;;  %v544_v53 = vperm.slane %v536_v14, %v4136_v3  ;;  %v4389_v24 = vsel %vm287_vm1, %v1104_v56, %v928_v2  ;;  %v4427_v56 = vpop.permute.xlu2 %761 }
 0x148   :  { %v533_v19 = vrot.slane %v521_v60, 4  ;;  %v545_v52 = vrot.slane %v532_v39, 4  ;;  %v1049_v4 = vperm.slane %v4257_v54, %v4112_v42  ;;  %v548_v16 = vsel %vm287_vm1, %v532_v39, %v547_v11 }
 0x149   :  { %v563_v15 = vrot.slane %v544_v53, 4  ;;  %v1051_v10 = vsel %vm287_vm1, %v1050_v58, %v4247_v37  ;;  %v1082_v25 = vsel %vm287_vm1, %v4274_v17, %v1081_v12  ;;  %v556_v18 = vperm.slane %v548_v16, %v4136_v3 }
 0x14a   :  { %v534_v35 = vsel %vm287_vm1, %v533_v19, %v515_v40  ;;  %v546_v54 = vsel %vm287_vm1, %v545_v52, %v526_v23  ;;  %v1055_v41 = vperm.slane %v1051_v10, %v4112_v42  ;;  %v1069_v13 = vrot.slane %v1049_v4, 4  ;;  %v255_v40 = vpop.permute.xlu0 %254 }
 0x14b   :  { %v540_v49 = vperm.slane %v534_v35, %v4136_v3  ;;  %v552_v50 = vperm.slane %v546_v54, %v4136_v3  ;;  %v1090_v37 = vperm.slane %v1082_v25, %v4136_v3  ;;  %v564_v58 = vsel %vm287_vm1, %v556_v18, %v563_v15 }
 0x14c   :  { %v561_v59 = vrot.slane %v556_v18, 4  ;;  %v399_v12 = vrot.slane %v267_v9, 4  ;;  %v402_v60 = vsel %vm287_vm1, %v267_v9, %v401_v63  ;;  %3598 = vmatmul.msk.f32.vlgmr.msra.gmra.mxu3 %vm1687_vm2, %v564_v58  ;;  %v1070_v38 = vsel %vm287_vm1, %v1055_v41, %v1069_v13 }
 0x14d   :  { %v559_v23 = vrot.slane %v540_v49, 4  ;;  %v557_v43 = vrot.slane %v552_v50, 4  ;;  %v1095_v48 = vrot.slane %v1090_v37, 4  ;;  %v1078_v34 = vperm.slane %v1070_v38, %v4136_v3 }
 0x14e   :  { %v562_v46 = vsel %vm287_vm1, %v561_v59, %v544_v53  ;;  %v400_v20 = vsel %vm287_vm1, %v399_v12, %v4070_v27  ;;  %v410_v39 = vperm.slane %v402_v60, %v4112_v42  ;;  %v412_v8 = vsel %vm287_vm1, %v411_v7, %v255_v40 }
 0x14f   :  { %3596 = vmatmul.msk.f32.vlgmr.msrb.gmra.mxu2 %vm1687_vm2, %v562_v46  ;;  %v560_v63 = vsel %vm287_vm1, %v552_v50, %v559_v23  ;;  %v558_v44 = vsel %vm287_vm1, %v557_v43, %v540_v49  ;;  %v406_v2 = vperm.slane %v400_v20, %v4112_v42  ;;  %v1096_v27 = vsel %vm287_vm1, %v1095_v48, %v1078_v34 }
 0x150   :  { %3594 = vmatmul.msk.f32.vlgmr.msrb.gmra.mxu1 %vm1687_vm2, %v560_v63  ;;  %3592 = vmatmul.msk.f32.vlgmr.msrb.gmra.mxu0 %vm1687_vm2, %v558_v44  ;;  %v437_v22 = vrot.slane %v410_v39, 4  ;;  %v413_v14 = vrot.slane %v255_v40, 4  ;;  %v418_v53 = vperm.slane %v412_v8, %v4112_v42  ;;  %v1067_v19 = vrot.slane %v1055_v41, 4 }
 0x151   :  { %3603 = vmatpush.xpose.msk.msra.mxu1 %vm1687_vm2, %v1096_v27  ;;  %v425_v11 = vrot.slane %v406_v2, 4  ;;  %v1079_v52 = vrot.slane %v4274_v17, 4  ;;  %v1097_v15 = vrot.slane %v1078_v34, 4  ;;  %v947_v10 = vrot.slane %v4427_v56, 4 }
 0x152   :  { %v414_v7 = vsel %vm287_vm1, %v4331_v26, %v413_v14  ;;  %v423_v16 = vrot.slane %v418_v53, 4  ;;  %v1068_v18 = vsel %vm287_vm1, %v1067_v19, %v1049_v4  ;;  %v575_v40 = vperm.slane %v4304_v57, %v4112_v42  ;;  %v738_v44 = vpop.permute.xlu0 %737 }
 0x153   :  { %v422_v25 = vperm.slane %v414_v7, %v4112_v42  ;;  %v426_v9 = vsel %vm287_vm1, %v418_v53, %v425_v11  ;;  %v1080_v35 = vsel %vm287_vm1, %v1079_v52, %v4262_v55  ;;  %v1074_v54 = vperm.slane %v1068_v18, %v4136_v3 }
 0x154   :  { %v424_v17 = vsel %vm287_vm1, %v423_v16, %v406_v2  ;;  %v434_v26 = vperm.slane %v426_v9, %v4136_v3  ;;  %v1086_v41 = vperm.slane %v1080_v35, %v4136_v3  ;;  %v1098_v32 = vsel %vm287_vm1, %v1090_v37, %v1097_v15 }
 0x155   :  { %v430_v49 = vperm.slane %v424_v17, %v4136_v3  ;;  %v435_v50 = vrot.slane %v422_v25, 4  ;;  %v438_v13 = vsel %vm287_vm1, %v422_v25, %v437_v22  ;;  %v1093_v55 = vrot.slane %v1074_v54, 4  ;;  %3605 = vmatpush.xpose.msk.msra.mxu2 %vm1687_vm2, %v1098_v32 }
 0x156   :  { %v446_v4 = vperm.slane %v438_v13, %v4136_v3  ;;  %v449_v58 = vrot.slane %v434_v26, 4  ;;  %v1091_v59 = vrot.slane %v1086_v41, 4  ;;  %v582_v23 = vsel %vm287_vm1, %v581_v1, %v4289_v45 }
 0x157   :  { %v436_v12 = vsel %vm287_vm1, %v435_v50, %v410_v39  ;;  %v447_v60 = vrot.slane %v430_v49, 4  ;;  %v750_v39 = vpop.permute.xlu1 %749  ;;  %v1094_v1 = vsel %vm287_vm1, %v1086_v41, %v1093_v55  ;;  %v586_v22 = vperm.slane %v582_v23, %v4112_v42 }
 0x158   :  { %v442_v37 = vperm.slane %v436_v12, %v4136_v3  ;;  %v450_v43 = vsel %vm287_vm1, 0.0, %v449_v58  ;;  %v453_v38 = vrot.slane %v446_v4, 4  ;;  %v619_v48 = vsel %vm287_vm1, %v449_v58, %v430_v49  ;;  %3601 = vmatpush.xpose.msk.msra.mxu0 %vm1687_vm2, %v1094_v1 }
 0x159   :  { %v448_v46 = vsel %vm287_vm1, 0.0, %v447_v60  ;;  %v4466_v34 = vperm.slane %v619_v48, %v4112_v42  ;;  %v624_v20 = vrot.slane %v450_v43, 4  ;;  %v1092_v57 = vsel %vm287_vm1, %v1091_v59, %v1074_v54 }
 0x15a   :  { %v451_v63 = vrot.slane %v442_v37, 4  ;;  %v4470_v36 = vsel %vm287_vm1, 0.0, %v453_v38  ;;  %v630_v45 = vsel %vm287_vm1, %v453_v38, %v442_v37  ;;  %3599 = vmatpush.xpose.msk.msrb.mxu3 %vm1687_vm2, %v1092_v57  ;;  %v589_v53 = vrot.slane %v4295_v61, 4 }
 0x15b   :  { %v4476_v2 = vsel %vm287_vm1, %v624_v20, %v448_v46  ;;  %v4479_v8 = vperm.slane %v630_v45, %v4112_v42  ;;  %v635_v27 = vrot.slane %v4470_v36, 4  ;;  %v601_v11 = vrot.slane %v4307_v62, 4 }
 0x15c   :  { %v4485_v14 = vsel %vm287_vm1, 0.0, %v451_v63  ;;  %v935_v19 = vrot.slane %v750_v39, 4  ;;  %v938_v52 = vsel %vm287_vm1, %v750_v39, %v937_v0  ;;  %v948_v7 = vsel %vm287_vm1, %v947_v10, %v738_v44 }
 0x15d   :  { %v949_v16 = vrot.slane %v738_v44, 4  ;;  %v587_v15 = vrot.slane %v575_v40, 4  ;;  %v590_v25 = vsel %vm287_vm1, %v575_v40, %v589_v53  ;;  %v602_v9 = vsel %vm287_vm1, %v586_v22, %v601_v11 }
 0x15e   :  { %v936_v18 = vsel %vm287_vm1, %v935_v19, %v4078_v28  ;;  %v946_v35 = vperm.slane %v938_v52, %v4112_v42  ;;  %v598_v17 = vperm.slane %v590_v25, %v4136_v3  ;;  %v610_v26 = vperm.slane %v602_v9, %v4136_v3 }
 0x15f   :  { %v942_v54 = vperm.slane %v936_v18, %v4112_v42  ;;  %v950_v0 = vsel %vm287_vm1, %v4427_v56, %v949_v16  ;;  %v954_v41 = vperm.slane %v948_v7, %v4112_v42  ;;  %v588_v50 = vsel %vm287_vm1, %v587_v15, %v4295_v61  ;;  %v281_v61 = vpop.permute.xlu2 %280 }
 0x160   :  { %v973_v10 = vrot.slane %v946_v35, 4  ;;  %v958_v49 = vperm.slane %v950_v0, %v4112_v42  ;;  %v615_v28 = vrot.slane %v610_v26, 4  ;;  %v594_v32 = vperm.slane %v588_v50, %v4136_v3 }
 0x161   :  { %v961_v13 = vrot.slane %v942_v54, 4  ;;  %v599_v4 = vrot.slane %v586_v22, 4  ;;  %v959_v58 = vrot.slane %v954_v41, 4  ;;  %v617_v12 = vrot.slane %v598_v17, 4 }
 0x162   :  { %v971_v59 = vrot.slane %v958_v49, 4  ;;  %v974_v55 = vsel %vm287_vm1, %v958_v49, %v973_v10  ;;  %v616_v56 = vsel %vm287_vm1, %v615_v28, %v598_v17  ;;  %v613_v39 = vrot.slane %v594_v32, 4  ;;  %v257_v17 = vpop.permute.xlu0 %256 }
 0x163   :  { %v962_v60 = vsel %vm287_vm1, %v954_v41, %v961_v13  ;;  %v982_v40 = vperm.slane %v974_v55, %v4136_v3  ;;  %v600_v23 = vsel %vm287_vm1, %v599_v4, %v4307_v62  ;;  %3604 = vmatmul.msk.f32.vlgmr.msra.gmra.mxu1 %vm1687_vm2, %v616_v56  ;;  %v960_v37 = vsel %vm287_vm1, %v959_v58, %v942_v54 }
 0x164   :  { %v970_v43 = vperm.slane %v962_v60, %v4136_v3  ;;  %v972_v38 = vsel %vm287_vm1, %v971_v59, %v946_v35  ;;  %v606_v48 = vperm.slane %v600_v23, %v4136_v3  ;;  %v966_v46 = vperm.slane %v960_v37, %v4136_v3  ;;  %v269_v35 = vpop.permute.xlu1 %268 }
 0x165   :  { %v978_v20 = vperm.slane %v972_v38, %v4136_v3  ;;  %v989_v57 = vrot.slane %v982_v40, 4  ;;  %v618_v62 = vsel %vm287_vm1, %v610_v26, %v617_v12  ;;  %v467_v1 = vrot.slane %v281_v61, 4 }
 0x166   :  { %v985_v63 = vrot.slane %v970_v43, 4  ;;  %v611_v45 = vrot.slane %v606_v48, 4  ;;  %v983_v44 = vrot.slane %v966_v46, 4  ;;  %3606 = vmatmul.msk.f32.vlgmr.msra.gmra.mxu2 %vm1687_vm2, %v618_v62  ;;  %v614_v54 = vsel %vm287_vm1, %v606_v48, %v613_v39 }
 0x167   :  { %v987_v22 = vrot.slane %v978_v20, 4  ;;  %v4523_v53 = vsel %vm287_vm1, 0.0, %v989_v57  ;;  %v1164_v11 = vsel %vm287_vm1, %v989_v57, %v978_v20  ;;  %v1109_v0 = vperm.slane %v4389_v24, %v4112_v42  ;;  %3602 = vmatmul.msk.f32.vlgmr.msra.gmra.mxu0 %vm1687_vm2, %v614_v54 }
 0x168   :  { %v986_v19 = vsel %vm287_vm1, 0.0, %v985_v63  ;;  %v1153_v52 = vsel %vm287_vm1, %v985_v63, %v966_v46  ;;  %v4530_v7 = vperm.slane %v1164_v11, %v4112_v42  ;;  %v1169_v16 = vrot.slane %v4523_v53, 4 }
 0x169   :  { %v984_v15 = vsel %vm287_vm1, 0.0, %v983_v44  ;;  %v4535_v25 = vsel %vm287_vm1, 0.0, %v987_v22  ;;  %v4538_v9 = vperm.slane %v1153_v52, %v4112_v42  ;;  %v1158_v18 = vrot.slane %v986_v19, 4 }
 0x16a   :  { %v612_v26 = vsel %vm287_vm1, %v611_v45, %v594_v32  ;;  %v1116_v10 = vsel %vm287_vm1, %v1115_v21, %v4382_v51  ;;  %v1123_v50 = vrot.slane %v4376_v5, 4  ;;  %v1135_v28 = vrot.slane %v4385_v47, 4 }
 0x16b   :  { %v4549_v41 = vsel %vm287_vm1, %v1158_v18, %v984_v15  ;;  %3600 = vmatmul.msk.f32.vlgmr.msrb.gmra.mxu3 %vm1687_vm2, %v612_v26  ;;  %v1120_v49 = vperm.slane %v1116_v10, %v4112_v42  ;;  %v455_v13 = vrot.slane %v269_v35, 4  ;;  %v458_v33 = vsel %vm287_vm1, %v269_v35, %v457_v6 }
 0x16c   :  { %v468_v21 = vsel %vm287_vm1, %v467_v1, %v257_v17  ;;  %v469_v51 = vrot.slane %v257_v17, 4  ;;  %v1124_v24 = vsel %vm287_vm1, %v1109_v0, %v1123_v50  ;;  %v466_v4 = vperm.slane %v458_v33, %v4112_v42 }
 0x16d   :  { %v1136_v32 = vsel %vm287_vm1, %v1120_v49, %v1135_v28  ;;  %v474_v58 = vperm.slane %v468_v21, %v4112_v42  ;;  %v1132_v59 = vperm.slane %v1124_v24, %v4136_v3  ;;  %v456_v12 = vsel %vm287_vm1, %v455_v13, %v4086_v29 }
 0x16e   :  { %v1144_v55 = vperm.slane %v1136_v32, %v4136_v3  ;;  %v470_v6 = vsel %vm287_vm1, %v281_v61, %v469_v51  ;;  %v462_v56 = vperm.slane %v456_v12, %v4112_v42  ;;  %v493_v60 = vrot.slane %v466_v4, 4 }
 0x16f   :  { %v478_v40 = vperm.slane %v470_v6, %v4112_v42  ;;  %v479_v23 = vrot.slane %v474_v58, 4  ;;  %v1121_v43 = vrot.slane %v1109_v0, 4  ;;  %v1133_v38 = vrot.slane %v1120_v49, 4 }
 0x170   :  { %v1149_v37 = vrot.slane %v1144_v55, 4  ;;  %v1151_v48 = vrot.slane %v1132_v59, 4  ;;  %v481_v46 = vrot.slane %v462_v56, 4  ;;  %v629_v17 = vperm.slane %v4476_v2, %v4112_v42 }
 0x171   :  { %v480_v20 = vsel %vm287_vm1, %v479_v23, %v462_v56  ;;  %v491_v57 = vrot.slane %v478_v40, 4  ;;  %v494_v39 = vsel %vm287_vm1, %v478_v40, %v493_v60  ;;  %v1122_v45 = vsel %vm287_vm1, %v1121_v43, %v4376_v5 }
 0x172   :  { %v1150_v29 = vsel %vm287_vm1, %v1149_v37, %v1132_v59  ;;  %v486_v61 = vperm.slane %v480_v20, %v4136_v3  ;;  %v502_v63 = vperm.slane %v494_v39, %v4136_v3  ;;  %v482_v62 = vsel %vm287_vm1, %v474_v58, %v481_v46 }
 0x173   :  { %3611 = vmatpush.xpose.msk.msrb.mxu1 %vm1687_vm2, %v1150_v29  ;;  %v492_v1 = vsel %vm287_vm1, %v491_v57, %v466_v4  ;;  %v1128_v44 = vperm.slane %v1122_v45, %v4136_v3  ;;  %v1134_v22 = vsel %vm287_vm1, %v1133_v38, %v4385_v47  ;;  %v490_v11 = vperm.slane %v482_v62, %v4136_v3 }
 0x174   :  { %v498_v19 = vperm.slane %v492_v1, %v4136_v3  ;;  %v503_v52 = vrot.slane %v486_v61, 4  ;;  %v509_v15 = vrot.slane %v502_v63, 4  ;;  %v1140_v18 = vperm.slane %v1134_v22, %v4136_v3 }
 0x175   :  { %v1152_v5 = vsel %vm287_vm1, %v1144_v55, %v1151_v48  ;;  %v1147_v35 = vrot.slane %v1128_v44, 4  ;;  %v505_v54 = vrot.slane %v490_v11, 4  ;;  %v636_v4 = vsel %vm287_vm1, %v635_v27, %v4485_v14 }
 0x176   :  { %v504_v26 = vsel %vm287_vm1, 0.0, %v503_v52  ;;  %v507_v0 = vrot.slane %v498_v19, 4  ;;  %v510_v47 = vsel %vm287_vm1, 0.0, %v509_v15  ;;  %3613 = vmatpush.xpose.msk.msrb.mxu2 %vm1687_vm2, %v1152_v5  ;;  %v684_v10 = vsel %vm287_vm1, %v509_v15, %v498_v19 }
 0x177   :  { %v689_v49 = vrot.slane %v510_v47, 4  ;;  %v1145_v50 = vrot.slane %v1140_v18, 4  ;;  %v1148_v28 = vsel %vm287_vm1, %v1140_v18, %v1147_v35  ;;  %v506_v13 = vsel %vm287_vm1, 0.0, %v505_v54 }
 0x178   :  { %v508_v33 = vsel %vm287_vm1, 0.0, %v507_v0  ;;  %v673_v2 = vsel %vm287_vm1, %v505_v54, %v486_v61  ;;  %v4599_v21 = vperm.slane %v684_v10, %v4112_v42  ;;  %3609 = vmatpush.xpose.msk.msrb.mxu0 %vm1687_vm2, %v1148_v28  ;;  %v678_v24 = vrot.slane %v506_v13, 4 }
 0x179   :  { %v4603_v51 = vperm.slane %v673_v2, %v4112_v42  ;;  %v1146_v32 = vsel %vm287_vm1, %v1145_v50, %v1128_v44  ;;  %v640_v58 = vperm.slane %v636_v4, %v4112_v42  ;;  %v643_v59 = vrot.slane %v4466_v34, 4 }
 0x17a   :  { %3607 = vmatpush.xpose.msk.msra.mxu3 %vm1687_vm2, %v1146_v32  ;;  %v655_v55 = vrot.slane %v4479_v8, 4  ;;  %v641_v12 = vrot.slane %v629_v17, 4  ;;  %v679_v6 = vsel %vm287_vm1, %v678_v24, %v504_v26  ;;  %v1163_v56 = vperm.slane %v4549_v41, %v4112_v42 }
 0x17b   :  { %v1170_v36 = vsel %vm287_vm1, %v1169_v16, %v4535_v25  ;;  %v1177_v27 = vrot.slane %v4538_v9, 4  ;;  %v644_v14 = vsel %vm287_vm1, %v629_v17, %v643_v59  ;;  %v653_v23 = vrot.slane %v640_v58, 4 }
 0x17c   :  { %v656_v60 = vsel %vm287_vm1, %v640_v58, %v655_v55  ;;  %v642_v40 = vsel %vm287_vm1, %v641_v12, %v4466_v34  ;;  %v652_v37 = vperm.slane %v644_v14, %v4136_v3  ;;  %v1174_v53 = vperm.slane %v1170_v36, %v4112_v42 }
 0x17d   :  { %v664_v43 = vperm.slane %v656_v60, %v4136_v3  ;;  %v648_v41 = vperm.slane %v642_v40, %v4136_v3  ;;  %v654_v16 = vsel %vm287_vm1, %v653_v23, %v4479_v8  ;;  %v1178_v25 = vsel %vm287_vm1, %v1163_v56, %v1177_v27 }
 0x17e   :  { %v1189_v38 = vrot.slane %v4530_v7, 4  ;;  %v1175_v48 = vrot.slane %v1163_v56, 4  ;;  %v660_v34 = vperm.slane %v654_v16, %v4136_v3  ;;  %v671_v20 = vrot.slane %v652_v37, 4 }
 0x17f   :  { %v669_v46 = vrot.slane %v664_v43, 4  ;;  %v667_v57 = vrot.slane %v648_v41, 4  ;;  %v1186_v39 = vperm.slane %v1178_v25, %v4136_v3  ;;  %v1187_v63 = vrot.slane %v1174_v53, 4 }
 0x180   :  { %v1190_v29 = vsel %vm287_vm1, %v1174_v53, %v1189_v38  ;;  %v1176_v61 = vsel %vm287_vm1, %v1175_v48, %v4538_v9  ;;  %v665_v45 = vrot.slane %v660_v34, 4  ;;  %v672_v62 = vsel %vm287_vm1, %v664_v43, %v671_v20  ;;  %v3661_v43 = vpop.permute.xlu0 %3660 }
 0x181   :  { %v670_v8 = vsel %vm287_vm1, %v669_v46, %v652_v37  ;;  %v668_v1 = vsel %vm287_vm1, %v660_v34, %v667_v57  ;;  %3614 = vmatmul.msk.f32.vlgmr.msrb.gmra.mxu2 %vm1687_vm2, %v672_v62  ;;  %v1198_v44 = vperm.slane %v1190_v29, %v4136_v3  ;;  %v1182_v22 = vperm.slane %v1176_v61, %v4136_v3 }
 0x182   :  { %3612 = vmatmul.msk.f32.vlgmr.msrb.gmra.mxu1 %vm1687_vm2, %v670_v8  ;;  %v1188_v11 = vsel %vm287_vm1, %v1187_v63, %v4530_v7  ;;  %v1205_v9 = vrot.slane %v1186_v39, 4  ;;  %v666_v19 = vsel %vm287_vm1, %v665_v45, %v648_v41  ;;  %3610 = vmatmul.msk.f32.vlgmr.msrb.gmra.mxu0 %vm1687_vm2, %v668_v1  ;;  %v683_v15 = vperm.slane %v679_v6, %v4112_v42  ;;  %v3671_v63 = vpop.permute.xlu2 %3670 }
 0x183   :  { %v1194_v52 = vperm.slane %v1188_v11, %v4136_v3  ;;  %v690_v18 = vsel %vm287_vm1, %v689_v49, %v508_v33  ;;  %3608 = vmatmul.msk.f32.vlgmr.msra.gmra.mxu3 %vm1687_vm2, %v666_v19  ;;  %v1203_v5 = vrot.slane %v1198_v44, 4  ;;  %v1201_v17 = vrot.slane %v1182_v22, 4 }
 0x184   :  { %v1206_v35 = vsel %vm287_vm1, %v1198_v44, %v1205_v9  ;;  %v694_v26 = vperm.slane %v690_v18, %v4112_v42  ;;  %v697_v54 = vrot.slane %v4603_v51, 4  ;;  %v709_v0 = vrot.slane %v4599_v21, 4 }
 0x185   :  { %v1199_v7 = vrot.slane %v1194_v52, 4  ;;  %3621 = vmatpush.xpose.msk.msra.mxu2 %vm1687_vm2, %v1206_v35  ;;  %v695_v47 = vrot.slane %v683_v15, 4  ;;  %v1204_v10 = vsel %vm287_vm1, %v1203_v5, %v1186_v39  ;;  %v1202_v49 = vsel %vm287_vm1, %v1194_v52, %v1201_v17 }
 0x186   :  { %v707_v50 = vrot.slane %v694_v26, 4  ;;  %3619 = vmatpush.xpose.msk.msra.mxu1 %vm1687_vm2, %v1204_v10  ;;  %3617 = vmatpush.xpose.msk.msra.mxu0 %vm1687_vm2, %v1202_v49  ;;  %v698_v13 = vsel %vm287_vm1, %v683_v15, %v697_v54  ;;  %v710_v33 = vsel %vm287_vm1, %v694_v26, %v709_v0  ;;  %v1249_v23 = vrot.slane %v4094_v30, 4 }
 0x187   :  { %v1200_v28 = vsel %vm287_vm1, %v1199_v7, %v1182_v22  ;;  %v706_v2 = vperm.slane %v698_v13, %v4136_v3  ;;  %v718_v24 = vperm.slane %v710_v33, %v4136_v3  ;;  %v696_v32 = vsel %vm287_vm1, %v695_v47, %v4603_v51  ;;  %v3666_v51 = vpop.permute.xlu1 %3665 }
 0x188   :  { %3615 = vmatpush.xpose.msk.msrb.mxu3 %vm1687_vm2, %v1200_v28  ;;  %v708_v4 = vsel %vm287_vm1, %v707_v50, %v4599_v21  ;;  %v702_v58 = vperm.slane %v696_v32, %v4136_v3  ;;  %v3667_v60 = vunpack.i.l.bf16 %v3666_v51  ;;  %v3668_v40 = vunpack.i.h.bf16 %v3666_v51 }
 0x189   :  { %v714_v59 = vperm.slane %v708_v4, %v4136_v3  ;;  %v723_v55 = vrot.slane %v718_v24, 4  ;;  %v725_v12 = vrot.slane %v706_v2, 4  ;;  %v1305_v37 = vrot.slane %v4096_v31, 4 }
 0x18a   :  { %v721_v56 = vrot.slane %v702_v58, 4  ;;  %v1247_v41 = vrot.slane %v3667_v60, 4  ;;  %v1303_v53 = vrot.slane %v3668_v40, 4  ;;  %v1250_v25 = vsel %vm287_vm1, %v3667_v60, %v1249_v23 }
 0x18b   :  { %v719_v6 = vrot.slane %v714_v59, 4  ;;  %v724_v36 = vsel %vm287_vm1, %v723_v55, %v706_v2  ;;  %v726_v27 = vsel %vm287_vm1, %v718_v24, %v725_v12  ;;  %v1306_v16 = vsel %vm287_vm1, %v3668_v40, %v1305_v37 }
 0x18c   :  { %3620 = vmatmul.msk.f32.vlgmr.msra.gmra.mxu1 %vm1687_vm2, %v724_v36  ;;  %3622 = vmatmul.msk.f32.vlgmr.msra.gmra.mxu2 %vm1687_vm2, %v726_v27  ;;  %v722_v21 = vsel %vm287_vm1, %v714_v59, %v721_v56  ;;  %v3663_v38 = vunpack.i.h.bf16 %v3661_v43  ;;  %v3662_v48 = vunpack.i.l.bf16 %v3661_v43  ;;  %v1248_v46 = vsel %vm287_vm1, %v1247_v41, %v4094_v30 }
 0x18d   :  { %v720_v14 = vsel %vm287_vm1, %v719_v6, %v702_v58  ;;  %3618 = vmatmul.msk.f32.vlgmr.msra.gmra.mxu0 %vm1687_vm2, %v722_v21  ;;  %v1304_v34 = vsel %vm287_vm1, %v1303_v53, %v4096_v31  ;;  %v1314_v20 = vperm.slane %v1306_v16, %v4112_v42  ;;  %v1258_v57 = vperm.slane %v1250_v25, %v4112_v42 }
 0x18e   :  { %3616 = vmatmul.msk.f32.vlgmr.msrb.gmra.mxu3 %vm1687_vm2, %v720_v14  ;;  %v1317_v39 = vrot.slane %v3663_v38, 4  ;;  %v1261_v29 = vrot.slane %v3662_v48, 4  ;;  %v1254_v61 = vperm.slane %v1248_v46, %v4112_v42  ;;  %v1310_v8 = vperm.slane %v1304_v34, %v4112_v42 }
 0x18f   :  { %v3673_v45 = vunpack.i.h.bf16 %v3671_v63  ;;  %v3672_v62 = vunpack.i.l.bf16 %v3671_v63  ;;  %v1341_v1 = vrot.slane %v1314_v20, 4  ;;  %v1285_v44 = vrot.slane %v1258_v57, 4 }
 0x190   :  { %v1273_v9 = vrot.slane %v1254_v61, 4  ;;  %v1329_v15 = vrot.slane %v1310_v8, 4 }
 0x191   :  { %v1315_v22 = vrot.slane %v3673_v45, 4  ;;  %v1259_v30 = vrot.slane %v3672_v62, 4  ;;  %v1262_v11 = vsel %vm287_vm1, %v3672_v62, %v1261_v29  ;;  %v1318_v31 = vsel %vm287_vm1, %v3673_v45, %v1317_v39  ;;  %v4729_v29 = vpop.f32.mrf.mxu2 }
 0x192   :  { %v1270_v19 = vperm.slane %v1262_v11, %v4112_v42  ;;  %v1326_v52 = vperm.slane %v1318_v31, %v4112_v42 }
 0x193   :  { %v1260_v18 = vsel %vm287_vm1, %v1259_v30, %v3662_v48  ;;  %v1316_v5 = vsel %vm287_vm1, %v1315_v22, %v3663_v38 }
 0x194   :  { %v1266_v35 = vperm.slane %v1260_v18, %v4112_v42  ;;  %v1283_v17 = vrot.slane %v1270_v19, 4  ;;  %v1286_v26 = vsel %vm287_vm1, %v1270_v19, %v1285_v44  ;;  %v1322_v7 = vperm.slane %v1316_v5, %v4112_v42 }
 0x195   :  { %v1294_v54 = vperm.slane %v1286_v26, %v4136_v3  ;;  %v1339_v0 = vrot.slane %v1326_v52, 4  ;;  %v1342_v47 = vsel %vm287_vm1, %v1326_v52, %v1341_v1 }
 0x196   :  { %v1271_v10 = vrot.slane %v1266_v35, 4  ;;  %v1274_v49 = vsel %vm287_vm1, %v1266_v35, %v1273_v9  ;;  %v1284_v50 = vsel %vm287_vm1, %v1283_v17, %v1258_v57  ;;  %v1327_v28 = vrot.slane %v1322_v7, 4 }
 0x197   :  { %v1282_v13 = vperm.slane %v1274_v49, %v4136_v3  ;;  %v1290_v33 = vperm.slane %v1284_v50, %v4136_v3  ;;  %v1301_v2 = vrot.slane %v1294_v54, 4  ;;  %v1330_v24 = vsel %vm287_vm1, %v1322_v7, %v1329_v15 }
 0x198   :  { %v1272_v32 = vsel %vm287_vm1, %v1271_v10, %v1254_v61  ;;  %v1328_v4 = vsel %vm287_vm1, %v1327_v28, %v1310_v8  ;;  %v1338_v58 = vperm.slane %v1330_v24, %v4136_v3  ;;  %v1340_v59 = vsel %vm287_vm1, %v1339_v0, %v1314_v20 }
 0x199   :  { %v1278_v55 = vperm.slane %v1272_v32, %v4136_v3  ;;  %v1297_v12 = vrot.slane %v1282_v13, 4  ;;  %v1299_v6 = vrot.slane %v1290_v33, 4  ;;  %v1302_v56 = vsel %vm287_vm1, 0.0, %v1301_v2 }
 0x19a   :  { %v1334_v36 = vperm.slane %v1328_v4, %v4136_v3  ;;  %v1346_v27 = vperm.slane %v1340_v59, %v4136_v3  ;;  %v1350_v14 = vperm.slane %v1342_v47, %v4136_v3  ;;  %v1353_v21 = vrot.slane %v1338_v58, 4 }
 0x19b   :  { %v1295_v51 = vrot.slane %v1278_v55, 4  ;;  %v1298_v60 = vsel %vm287_vm1, 0.0, %v1297_v12  ;;  %v1300_v40 = vsel %vm287_vm1, 0.0, %v1299_v6  ;;  %v1487_v23 = vrot.slane %v1302_v56, 4 }
 0x19c   :  { %v1351_v37 = vrot.slane %v1334_v36, 4  ;;  %v1354_v43 = vsel %vm287_vm1, 0.0, %v1353_v21  ;;  %v1355_v41 = vrot.slane %v1346_v27, 4  ;;  %v1357_v53 = vrot.slane %v1350_v14, 4 }
 0x19d   :  { %v1476_v16 = vrot.slane %v1298_v60, 4  ;;  %v1530_v25 = vrot.slane %v1354_v43, 4  ;;  %v1296_v38 = vsel %vm287_vm1, 0.0, %v1295_v51  ;;  %v1471_v48 = vsel %vm287_vm1, %v1297_v12, %v1278_v55 }
 0x19e   :  { %v1356_v46 = vsel %vm287_vm1, 0.0, %v1355_v41  ;;  %v1358_v34 = vsel %vm287_vm1, 0.0, %v1357_v53  ;;  %v1475_v20 = vperm.slane %v1471_v48, %v4112_v42  ;;  %v1482_v57 = vsel %vm287_vm1, %v1301_v2, %v1290_v33 }
 0x19f   :  { %v1541_v39 = vrot.slane %v1358_v34, 4  ;;  %v1477_v61 = vsel %vm287_vm1, %v1476_v16, %v1296_v38  ;;  %v1486_v63 = vperm.slane %v1482_v57, %v4112_v42  ;;  %v1488_v8 = vsel %vm287_vm1, %v1487_v23, %v1300_v40 }
 0x1a0   :  { %v1481_v45 = vperm.slane %v1477_v61, %v4112_v42  ;;  %v1492_v62 = vperm.slane %v1488_v8, %v4112_v42  ;;  %v1495_v1 = vrot.slane %v1475_v20, 4  ;;  %v1352_v44 = vsel %vm287_vm1, 0.0, %v1351_v37  ;;  %v2104_v37 = vld [vmem:[#allocation2] sm:$0xff] }
 0x1a1   :  { %v1507_v22 = vrot.slane %v1486_v63, 4  ;;  %v1525_v30 = vsel %vm287_vm1, %v1353_v21, %v1334_v36  ;;  %v1531_v11 = vsel %vm287_vm1, %v1530_v25, %v1352_v44  ;;  %v1536_v31 = vsel %vm287_vm1, %v1357_v53, %v1346_v27  ;;  %v4759_v36 = vpop.f32.mrf.mxu2 }
 0x1a2   :  { %v1493_v9 = vrot.slane %v1481_v45, 4  ;;  %v1505_v19 = vrot.slane %v1492_v62, 4  ;;  %v1496_v52 = vsel %vm287_vm1, %v1481_v45, %v1495_v1  ;;  %v1529_v15 = vperm.slane %v1525_v30, %v4112_v42 }
 0x1a3   :  { %v1504_v18 = vperm.slane %v1496_v52, %v4136_v3  ;;  %v1508_v5 = vsel %vm287_vm1, %v1492_v62, %v1507_v22  ;;  %v1535_v35 = vperm.slane %v1531_v11, %v4112_v42  ;;  %v1540_v17 = vperm.slane %v1536_v31, %v4112_v42  ;;  %v2105_v22 = vld [vmem:[#allocation2 + $0x8] sm:$0xff] }
 0x1a4   :  { %v1494_v26 = vsel %vm287_vm1, %v1493_v9, %v1475_v20  ;;  %v1506_v7 = vsel %vm287_vm1, %v1505_v19, %v1486_v63  ;;  %v1516_v54 = vperm.slane %v1508_v5, %v4136_v3  ;;  %v1542_v0 = vsel %vm287_vm1, %v1541_v39, %v1356_v46 }
 0x1a5   :  { %v1500_v47 = vperm.slane %v1494_v26, %v4136_v3  ;;  %v1512_v10 = vperm.slane %v1506_v7, %v4136_v3  ;;  %v1523_v49 = vrot.slane %v1504_v18, 4  ;;  %v1546_v50 = vperm.slane %v1542_v0, %v4112_v42  ;;  %v2106_v7 = vld [vmem:[#allocation2 + $0x10] sm:$0xff] }
 0x1a6   :  { %v1521_v28 = vrot.slane %v1516_v54, 4  ;;  %v1547_v13 = vrot.slane %v1535_v35, 4  ;;  %v1549_v33 = vrot.slane %v1529_v15, 4  ;;  %v1561_v2 = vrot.slane %v1540_v17, 4 }
 0x1a7   :  { %v1517_v24 = vrot.slane %v1512_v10, 4  ;;  %v1519_v32 = vrot.slane %v1500_v47, 4  ;;  %v1524_v4 = vsel %vm287_vm1, %v1516_v54, %v1523_v49  ;;  %v1559_v58 = vrot.slane %v1546_v50, 4 }
 0x1a8   :  { %v1522_v59 = vsel %vm287_vm1, %v1521_v28, %v1504_v18  ;;  %2612 = vmatpush.msrb.mxu2 %v1524_v4  ;;  %v1548_v55 = vsel %vm287_vm1, %v1547_v13, %v1529_v15  ;;  %v1550_v12 = vsel %vm287_vm1, %v1535_v35, %v1549_v33  ;;  %v1562_v6 = vsel %vm287_vm1, %v1546_v50, %v1561_v2  ;;  %v2107_v4 = vld [vmem:[#allocation2 + $0x18] sm:$0xff] }
 0x1a9   :  { %v1518_v56 = vsel %vm287_vm1, %v1517_v24, %v1500_v47  ;;  %v1520_v27 = vsel %vm287_vm1, %v1512_v10, %v1519_v32  ;;  %2589 = vmatpush.msrb.mxu1 %v1522_v59  ;;  %v1554_v14 = vperm.slane %v1548_v55, %v4136_v3  ;;  %v1560_v21 = vsel %vm287_vm1, %v1559_v58, %v1540_v17 }
 0x1aa   :  { %2543 = vmatpush.msra.mxu3 %v1518_v56  ;;  %2566 = vmatpush.msrb.mxu0 %v1520_v27  ;;  %v1566_v51 = vperm.slane %v1560_v21, %v4136_v3  ;;  %v1558_v60 = vperm.slane %v1550_v12, %v4136_v3  ;;  %v1570_v40 = vperm.slane %v1562_v6, %v4136_v3 }
 0x1ab   :  { %v1573_v23 = vrot.slane %v1554_v14, 4 }
 0x1ac   :  { %v1571_v43 = vrot.slane %v1566_v51, 4  ;;  %v1575_v41 = vrot.slane %v1570_v40, 4  ;;  %v1577_v53 = vrot.slane %v1558_v60, 4 }
 0x1ad   :  { %v1574_v16 = vsel %vm287_vm1, %v1566_v51, %v1573_v23  ;;  %v3684_v23 = vpack.i.bf16 %v4759_v36, %v4729_v29 }
 0x1ae   :  { %v1572_v48 = vsel %vm287_vm1, %v1571_v43, %v1554_v14  ;;  %2658 = vmatpush.msra.mxu0 %v1574_v16  ;;  %v1576_v46 = vsel %vm287_vm1, %v1575_v41, %v1558_v60  ;;  %v1578_v34 = vsel %vm287_vm1, %v1570_v40, %v1577_v53 }
 0x1af   :  { %2635 = vmatpush.msrb.mxu3 %v1572_v48  ;;  %2681 = vmatpush.msra.mxu1 %v1576_v46 }
 0x1b0   :  { %2704 = vmatpush.msra.mxu2 %v1578_v34 }
 0x1cd   :  { %v1737_v25 = vpop.f32.mrf.mxu1  ;;  %v1711_v38 = vpop.f32.mrf.mxu0 }
 0x1ce   :  { %v4771_v20 = vadd.f32 %v2104_v37, %v1737_v25  ;;  %v4773_v57 = vadd.f32 %v2104_v37, %v1711_v38 }
 0x1cf   :  { %v1789_v39 = vpop.f32.mrf.mxu3 }
 0x1d0   :  { %v2128_v61 = vsel %vm2124_vm3, %v4771_v20, -inf  ;;  %v2125_v63 = vsel %vm2124_vm3, %v4773_v57, -inf  ;;  %v4779_v8 = vadd.f32 %v2104_v37, %v1789_v39 }
 0x1d1   :  { %2129 = vmax.xlane.f32.xlu2 %v2128_v61  ;;  %2126 = vmax.xlane.f32.xlu0 %v2125_v63 }
 0x1d2   :  { %v1763_v45 = vpop.f32.mrf.mxu2  ;;  %v2134_v62 = vsel %vm2124_vm3, %v4779_v8, -inf }
 0x1d3   :  { %v4783_v1 = vadd.f32 %v2104_v37, %v1763_v45  ;;  %2135 = vmax.xlane.f32.xlu1 %v2134_v62 }
 0x1d5   :  { %v2131_v44 = vsel %vm2124_vm3, %v4783_v1, -inf }
 0x1d9   :  { %2132 = vmax.xlane.f32.xlu2 %v2131_v44 }
 0x1e0   :  { %v1867_v30 = vpop.f32.mrf.mxu1 }
 0x1e1   :  { %v4787_v11 = vadd.f32 %v2105_v22, %v1867_v30 }
 0x1e3   :  { %v2143_v31 = vsel %vm2124_vm3, %v4787_v11, -inf }
 0x1e4   :  { %2144 = vmax.xlane.f32.xlu2 %v2143_v31  ;;  %v1841_v9 = vpop.f32.mrf.mxu0 }
 0x1e5   :  { %v4791_v19 = vadd.f32 %v2105_v22, %v1841_v9 }
 0x1e7   :  { %v2140_v18 = vsel %vm2124_vm3, %v4791_v19, -inf }
 0x1e8   :  { %2141 = vmax.xlane.f32.xlu0 %v2140_v18 }
 0x1e9   :  { %v1893_v52 = vpop.f32.mrf.mxu2 }
 0x1ea   :  { %v4793_v15 = vadd.f32 %v2105_v22, %v1893_v52 }
 0x1ec   :  { %v2146_v5 = vsel %vm2124_vm3, %v4793_v15, -inf }
 0x1ed   :  { %2147 = vmax.xlane.f32.xlu1 %v2146_v5 }
 0x1ee   :  { %v1815_v35 = vpop.f32.mrf.mxu3 }
 0x1ef   :  { %v4799_v17 = vadd.f32 %v2105_v22, %v1815_v35 }
 0x1f1   :  { %v2137_v26 = vsel %vm2124_vm3, %v4799_v17, -inf }
 0x1f2   :  { %2138 = vmax.xlane.f32.xlu0 %v2137_v26 }
 0x1ff   :  { %v1971_v54 = vpop.f32.mrf.mxu1  ;;  %v1945_v47 = vpop.f32.mrf.mxu0 }
 0x200   :  { %v4803_v0 = vadd.f32 %v2106_v7, %v1971_v54  ;;  %v4805_v10 = vadd.f32 %v2106_v7, %v1945_v47 }
 0x202   :  { %v2155_v49 = vsel %vm2124_vm3, %v4803_v0, -inf  ;;  %v2152_v50 = vsel %vm2124_vm3, %v4805_v10, -inf }
 0x203   :  { %2156 = vmax.xlane.f32.xlu0 %v2155_v49  ;;  %2153 = vmax.xlane.f32.xlu1 %v2152_v50 }
 0x204   :  { %v1997_v28 = vpop.f32.mrf.mxu2 }
 0x205   :  { %v4811_v13 = vadd.f32 %v2106_v7, %v1997_v28 }
 0x206   :  { %v1919_v33 = vpop.f32.mrf.mxu3 }
 0x207   :  { %v4813_v2 = vadd.f32 %v2106_v7, %v1919_v33  ;;  %v2158_v24 = vsel %vm2124_vm3, %v4811_v13, -inf }
 0x208   :  { %2159 = vmax.xlane.f32.xlu2 %v2158_v24 }
 0x209   :  { %v2149_v32 = vsel %vm2124_vm3, %v4813_v2, -inf  ;;  %v2075_v59 = vpop.f32.mrf.mxu1 }
 0x20a   :  { %v2049_v58 = vpop.f32.mrf.mxu0  ;;  %v4823_v6 = vadd.f32 %v2107_v4, %v2075_v59 }
 0x20b   :  { %2150 = vmax.xlane.f32.xlu1 %v2149_v32  ;;  %v4819_v55 = vadd.f32 %v2107_v4, %v2049_v58 }
 0x20c   :  { %v2167_v21 = vsel %vm2124_vm3, %v4823_v6, -inf }
 0x20d   :  { %v2164_v12 = vsel %vm2124_vm3, %v4819_v55, -inf }
 0x20f   :  { %v2101_v56 = vpop.f32.mrf.mxu2 }
 0x210   :  { %v4825_v27 = vadd.f32 %v2107_v4, %v2101_v56  ;;  %2165 = vmax.xlane.f32.xlu2 %v2164_v12 }
 0x211   :  { %v2023_v14 = vpop.f32.mrf.mxu3 }
 0x212   :  { %v2170_v51 = vsel %vm2124_vm3, %v4825_v27, -inf  ;;  %v4831_v60 = vadd.f32 %v2107_v4, %v2023_v14 }
 0x213   :  { %2168 = vmax.xlane.f32.xlu1 %v2167_v21  ;;  %2171 = vmax.xlane.f32.xlu0 %v2170_v51 }
 0x214   :  { %v2161_v40 = vsel %vm2124_vm3, %v4831_v60, -inf }
 0x218   :  { %2162 = vmax.xlane.f32.xlu2 %v2161_v40 }
 0x227   :  { %3685 = vrot.lane.b32.xlu0 %v3684_v23, %s3901_s11 }
 0x22c   :  { %3680 = vrot.lane.b32.xlu1 %v3684_v23, %s3902_s5 }
 0x230   :  { %3675 = vrot.lane.b32.xlu2 %v3684_v23, %s3903_s1 }
 0x244   :  { %v2130_v37 = vpop.xlane.xlu2 %2129  ;;  %v2127_v43 = vpop.xlane.xlu0 %2126 }
 0x245   :  { %v2173_v41 = vsub.f32 %v4773_v57, %v2127_v43  ;;  %v2174_v25 = vsub.f32 %v4771_v20, %v2130_v37 }
 0x246   :  { %v2136_v16 = vpop.xlane.xlu1 %2135 }
 0x247   :  { %v2189_v53 = vmul.f32 1.442695, %v2173_v41  ;;  %v2176_v38 = vsub.f32 %v4779_v8, %v2136_v16  ;;  %v2191_v46 = vmul.f32 1.442695, %v2174_v25 }
 0x249   :  { %3689 = vpow2.f32 %v2189_v53  ;;  %v2195_v48 = vmul.f32 1.442695, %v2176_v38 }
 0x24b   :  { %3691 = vpow2.f32 %v2195_v48 }
 0x24c   :  { %v2133_v34 = vpop.xlane.xlu2 %2132  ;;  %3693 = vpow2.f32 %v2191_v46 }
 0x24d   :  { %v2175_v39 = vsub.f32 %v4783_v1, %v2133_v34 }
 0x24f   :  { %v2193_v61 = vmul.f32 1.442695, %v2175_v39  ;;  %v4844_v63 = vpop.eup %3689 }
 0x250   :  { %v2221_v57 = vsel %vm2124_vm3, %v4844_v63, 0.0 }
 0x251   :  { %3695 = vpow2.f32 %v2193_v61  ;;  %v4848_v45 = vpop.eup %3691  ;;  %2222 = vadd.xlane.f32.xlu0 %v2221_v57 }
 0x252   :  { %v2230_v20 = vsel %vm2124_vm3, %v4848_v45, 0.0  ;;  %v4852_v8 = vpop.eup %3693 }
 0x253   :  { %v2224_v30 = vsel %vm2124_vm3, %v4852_v8, 0.0 }
 0x256   :  { %2231 = vadd.xlane.f32.xlu1 %v2230_v20 }
 0x257   :  { %v4854_v62 = vpop.eup %3695  ;;  %v2145_v1 = vpop.xlane.xlu2 %2144 }
 0x258   :  { %v2227_v44 = vsel %vm2124_vm3, %v4854_v62, 0.0  ;;  %v2179_v22 = vsub.f32 %v4787_v11, %v2145_v1 }
 0x259   :  { %2228 = vadd.xlane.f32.xlu2 %v2227_v44  ;;  %2225 = vadd.xlane.f32.xlu0 %v2224_v30 }
 0x25a   :  { %v2201_v31 = vmul.f32 1.442695, %v2179_v22 }
 0x25b   :  { %v2142_v9 = vpop.xlane.xlu0 %2141 }
 0x25c   :  { %3697 = vpow2.f32 %v2201_v31  ;;  %v2178_v52 = vsub.f32 %v4791_v19, %v2142_v9 }
 0x25e   :  { %v2199_v5 = vmul.f32 1.442695, %v2178_v52 }
 0x260   :  { %v2148_v18 = vpop.xlane.xlu1 %2147  ;;  %3699 = vpow2.f32 %v2199_v5 }
 0x261   :  { %v2180_v35 = vsub.f32 %v4793_v15, %v2148_v18 }
 0x262   :  { %v4863_v26 = vpop.eup %3697 }
 0x263   :  { %v2203_v7 = vmul.f32 1.442695, %v2180_v35  ;;  %v2239_v11 = vsel %vm2124_vm3, %v4863_v26, 0.0  ;;  %v1361_v35 = vrot.slane %v4729_v29, 4 }
 0x264   :  { %2240 = vadd.xlane.f32.xlu0 %v2239_v11 }
 0x265   :  { %3701 = vpow2.f32 %v2203_v7  ;;  %v2139_v54 = vpop.xlane.xlu0 %2138 }
 0x266   :  { %v2177_v47 = vsub.f32 %v4799_v17, %v2139_v54  ;;  %v4868_v49 = vpop.eup %3699 }
 0x267   :  { %v2236_v19 = vsel %vm2124_vm3, %v4868_v49, 0.0 }
 0x268   :  { %v2197_v50 = vmul.f32 1.442695, %v2177_v47  ;;  %2237 = vadd.xlane.f32.xlu2 %v2236_v19 }
 0x26a   :  { %3703 = vpow2.f32 %v2197_v50 }
 0x26b   :  { %v4872_v28 = vpop.eup %3701 }
 0x26c   :  { %v2242_v15 = vsel %vm2124_vm3, %v4872_v28, 0.0 }
 0x26d   :  { %2243 = vadd.xlane.f32.xlu0 %v2242_v15 }
 0x270   :  { %v4876_v33 = vpop.eup %3703 }
 0x271   :  { %v2233_v24 = vsel %vm2124_vm3, %v4876_v33, 0.0 }
 0x272   :  { %2234 = vadd.xlane.f32.xlu1 %v2233_v24 }
 0x276   :  { %v2157_v17 = vpop.xlane.xlu0 %2156  ;;  %v2154_v4 = vpop.xlane.xlu1 %2153 }
 0x277   :  { %v2183_v32 = vsub.f32 %v4803_v0, %v2157_v17  ;;  %v2182_v40 = vsub.f32 %v4805_v10, %v2154_v4 }
 0x279   :  { %v2209_v58 = vmul.f32 1.442695, %v2183_v32  ;;  %v2207_v43 = vmul.f32 1.442695, %v2182_v40 }
 0x27b   :  { %3705 = vpow2.f32 %v2209_v58  ;;  %v2160_v59 = vpop.xlane.xlu2 %2159 }
 0x27c   :  { %v2184_v12 = vsub.f32 %v4811_v13, %v2160_v59 }
 0x27e   :  { %v2211_v56 = vmul.f32 1.442695, %v2184_v12  ;;  %v2151_v14 = vpop.xlane.xlu1 %2150 }
 0x27f   :  { %v2181_v21 = vsub.f32 %v4813_v2, %v2151_v14 }
 0x280   :  { %3707 = vpow2.f32 %v2211_v56 }
 0x281   :  { %v4883_v51 = vpop.eup %3705  ;;  %v2205_v23 = vmul.f32 1.442695, %v2181_v21 }
 0x282   :  { %v2251_v37 = vsel %vm2124_vm3, %v4883_v51, 0.0 }
 0x283   :  { %2252 = vadd.xlane.f32.xlu2 %v2251_v37  ;;  %3709 = vpow2.f32 %v2205_v23  ;;  %v2166_v0 = vpop.xlane.xlu2 %2165 }
 0x284   :  { %3711 = vpow2.f32 %v2207_v43  ;;  %v2186_v61 = vsub.f32 %v4819_v55, %v2166_v0  ;;  %v1417_v0 = vrot.slane %v4759_v36, 4 }
 0x286   :  { %v4888_v41 = vpop.eup %3707  ;;  %v2169_v13 = vpop.xlane.xlu1 %2168 }
 0x287   :  { %v2172_v53 = vpop.xlane.xlu0 %2171  ;;  %v2254_v2 = vsel %vm2124_vm3, %v4888_v41, 0.0  ;;  %v2187_v10 = vsub.f32 %v4823_v6, %v2169_v13  ;;  %v2215_v6 = vmul.f32 1.442695, %v2186_v61 }
 0x288   :  { %v2188_v16 = vsub.f32 %v4825_v27, %v2172_v53  ;;  %2255 = vadd.xlane.f32.xlu0 %v2254_v2 }
 0x289   :  { %v4893_v25 = vpop.eup %3709  ;;  %v2217_v39 = vmul.f32 1.442695, %v2187_v10 }
 0x28a   :  { %v2219_v38 = vmul.f32 1.442695, %v2188_v16  ;;  %v2245_v48 = vsel %vm2124_vm3, %v4893_v25, 0.0  ;;  %v4900_v27 = vpop.eup %3711 }
 0x28b   :  { %2246 = vadd.xlane.f32.xlu1 %v2245_v48  ;;  %v2163_v46 = vpop.xlane.xlu2 %2162  ;;  %v2248_v1 = vsel %vm2124_vm3, %v4900_v27, 0.0 }
 0x28c   :  { %3713 = vpow2.f32 %v2219_v38  ;;  %v2185_v34 = vsub.f32 %v4831_v60, %v2163_v46 }
 0x28e   :  { %v2213_v57 = vmul.f32 1.442695, %v2185_v34 }
 0x290   :  { %3715 = vpow2.f32 %v2213_v57 }
 0x291   :  { %3717 = vpow2.f32 %v2217_v39 }
 0x292   :  { %v4902_v20 = vpop.eup %3713  ;;  %3719 = vpow2.f32 %v2215_v6 }
 0x293   :  { %2249 = vadd.xlane.f32.xlu1 %v2248_v1  ;;  %v2266_v44 = vsel %vm2124_vm3, %v4902_v20, 0.0  ;;  %v3676_v9 = vpop.permute.xlu2 %3675 }
 0x294   :  { %2267 = vadd.xlane.f32.xlu0 %v2266_v44  ;;  %v3677_v7 = vunpack.i.l.bf16 %v3676_v9  ;;  %v3678_v53 = vunpack.i.h.bf16 %v3676_v9 }
 0x296   :  { %v4908_v60 = vpop.eup %3715  ;;  %v1373_v15 = vrot.slane %v3677_v7, 4  ;;  %v1429_v57 = vrot.slane %v3678_v53, 4 }
 0x297   :  { %v4910_v55 = vpop.eup %3717  ;;  %v2257_v22 = vsel %vm2124_vm3, %v4908_v60, 0.0 }
 0x298   :  { %2258 = vadd.xlane.f32.xlu2 %v2257_v22  ;;  %v2263_v30 = vsel %vm2124_vm3, %v4910_v55, 0.0  ;;  %v4916_v31 = vpop.eup %3719 }
 0x299   :  { %v3686_v18 = vpop.permute.xlu0 %3685  ;;  %v2260_v5 = vsel %vm2124_vm3, %v4916_v31, 0.0 }
 0x29a   :  { %v3687_v54 = vunpack.i.l.bf16 %v3686_v18  ;;  %v3688_v40 = vunpack.i.h.bf16 %v3686_v18 }
 0x29b   :  { %2264 = vadd.xlane.f32.xlu1 %v2263_v30 }
 0x29c   :  { %v1371_v17 = vrot.slane %v3687_v54, 4  ;;  %v1374_v32 = vsel %vm287_vm1, %v3687_v54, %v1373_v15  ;;  %v1427_v2 = vrot.slane %v3688_v40, 4  ;;  %v1430_v9 = vsel %vm287_vm1, %v3688_v40, %v1429_v57 }
 0x29d   :  { %v1382_v59 = vperm.slane %v1374_v32, %v4112_v42 }
 0x29e   :  { %v3681_v52 = vpop.permute.xlu1 %3680  ;;  %v1372_v12 = vsel %vm287_vm1, %v1371_v17, %v3677_v7  ;;  %v1428_v6 = vsel %vm287_vm1, %v1427_v2, %v3678_v53  ;;  %v1438_v7 = vperm.slane %v1430_v9, %v4112_v42 }
 0x29f   :  { %v3682_v11 = vunpack.i.l.bf16 %v3681_v52  ;;  %v3683_v56 = vunpack.i.h.bf16 %v3681_v52  ;;  %v1378_v23 = vperm.slane %v1372_v12, %v4112_v42  ;;  %v1395_v37 = vrot.slane %v1382_v59, 4 }
 0x2a0   :  { %2261 = vadd.xlane.f32.xlu2 %v2260_v5  ;;  %v1434_v52 = vperm.slane %v1428_v6, %v4112_v42  ;;  %v1451_v32 = vrot.slane %v1438_v7, 4 }
 0x2a1   :  { %v1359_v47 = vrot.slane %v3682_v11, 4  ;;  %v1362_v50 = vsel %vm287_vm1, %v3682_v11, %v1361_v35  ;;  %v1415_v43 = vrot.slane %v3683_v56, 4  ;;  %v1383_v16 = vrot.slane %v1378_v23, 4 }
 0x2a2   :  { %v1370_v19 = vperm.slane %v1362_v50, %v4112_v42  ;;  %v1418_v10 = vsel %vm287_vm1, %v3683_v56, %v1417_v0 }
 0x2a3   :  { %v1360_v24 = vsel %vm287_vm1, %v1359_v47, %v4729_v29  ;;  %v1416_v34 = vsel %vm287_vm1, %v1415_v43, %v4759_v36  ;;  %v1426_v39 = vperm.slane %v1418_v10, %v4112_v42  ;;  %v1439_v47 = vrot.slane %v1434_v52, 4 }
 0x2a4   :  { %v1366_v4 = vperm.slane %v1360_v24, %v4112_v42  ;;  %v1397_v58 = vrot.slane %v1370_v19, 4  ;;  %v1396_v38 = vsel %vm287_vm1, %v1395_v37, %v1370_v19  ;;  %v1422_v44 = vperm.slane %v1416_v34, %v4112_v42 }
 0x2a5   :  { %v1402_v61 = vperm.slane %v1396_v38, %v4136_v3  ;;  %v1453_v18 = vrot.slane %v1426_v39, 4 }
 0x2a6   :  { %v1385_v14 = vrot.slane %v1366_v4, 4  ;;  %v1398_v21 = vsel %vm287_vm1, %v1382_v59, %v1397_v58  ;;  %v1384_v1 = vsel %vm287_vm1, %v1383_v16, %v1366_v4  ;;  %v1441_v11 = vrot.slane %v1422_v44, 4 }
 0x2a7   :  { %v1406_v29 = vperm.slane %v1398_v21, %v4136_v3  ;;  %v1390_v36 = vperm.slane %v1384_v1, %v4136_v3  ;;  %v1411_v5 = vrot.slane %v1402_v61, 4  ;;  %v1454_v15 = vsel %vm287_vm1, %v1438_v7, %v1453_v18 }
 0x2a8   :  { %v1386_v13 = vsel %vm287_vm1, %v1378_v23, %v1385_v14  ;;  %v1442_v4 = vsel %vm287_vm1, %v1434_v52, %v1441_v11  ;;  %v1462_v58 = vperm.slane %v1454_v15, %v4136_v3  ;;  %v1440_v59 = vsel %vm287_vm1, %v1439_v47, %v1422_v44 }
 0x2a9   :  { %v1394_v48 = vperm.slane %v1386_v13, %v4136_v3  ;;  %v1413_v46 = vrot.slane %v1406_v29, 4  ;;  %v1407_v50 = vrot.slane %v1390_v36, 4  ;;  %v1412_v19 = vsel %vm287_vm1, 0.0, %v1411_v5 }
 0x2aa   :  { %v1450_v14 = vperm.slane %v1442_v4, %v4136_v3  ;;  %v1452_v23 = vsel %vm287_vm1, %v1451_v32, %v1426_v39  ;;  %v1446_v37 = vperm.slane %v1440_v59, %v4136_v3  ;;  %v1469_v29 = vrot.slane %v1462_v58, 4 }
 0x2ab   :  { %v1409_v22 = vrot.slane %v1394_v48, 4  ;;  %v1414_v30 = vsel %vm287_vm1, 0.0, %v1413_v46  ;;  %v1408_v12 = vsel %vm287_vm1, 0.0, %v1407_v50  ;;  %v1590_v0 = vsel %vm287_vm1, %v1413_v46, %v1402_v61 }
 0x2ac   :  { %v1595_v35 = vrot.slane %v1414_v30, 4  ;;  %v1458_v16 = vperm.slane %v1452_v23, %v4136_v3  ;;  %v1465_v10 = vrot.slane %v1450_v14, 4  ;;  %v1594_v38 = vperm.slane %v1590_v0, %v4112_v42 }
 0x2ad   :  { %v1410_v54 = vsel %vm287_vm1, 0.0, %v1409_v22  ;;  %v1579_v21 = vsel %vm287_vm1, %v1409_v22, %v1390_v36  ;;  %v1463_v48 = vrot.slane %v1446_v37, 4  ;;  %v1470_v34 = vsel %vm287_vm1, 0.0, %v1469_v29 }
 0x2ae   :  { %v1584_v24 = vrot.slane %v1410_v54, 4  ;;  %v1596_v17 = vsel %vm287_vm1, %v1595_v35, %v1412_v19  ;;  %v1583_v13 = vperm.slane %v1579_v21, %v4112_v42  ;;  %v1466_v57 = vsel %vm287_vm1, 0.0, %v1465_v10 }
 0x2af   :  { %v1600_v56 = vperm.slane %v1596_v17, %v4112_v42  ;;  %v1467_v6 = vrot.slane %v1458_v16, 4  ;;  %v1649_v44 = vrot.slane %v1470_v34, 4  ;;  %v1615_v22 = vrot.slane %v1594_v38, 4 }
 0x2b0   :  { %v1585_v40 = vsel %vm287_vm1, %v1584_v24, %v1408_v12  ;;  %v1603_v61 = vrot.slane %v1583_v13, 4  ;;  %v1633_v30 = vsel %vm287_vm1, %v1465_v10, %v1446_v37  ;;  %v1464_v52 = vsel %vm287_vm1, 0.0, %v1463_v48 }
 0x2b1   :  { %v1589_v53 = vperm.slane %v1585_v40, %v4112_v42  ;;  %v1613_v2 = vrot.slane %v1600_v56, 4  ;;  %v1638_v36 = vrot.slane %v1466_v57, 4  ;;  %v1468_v47 = vsel %vm287_vm1, 0.0, %v1467_v6 }
 0x2b2   :  { %v4992_v50 = vperm.slane %v1633_v30, %v4112_v42  ;;  %v1644_v19 = vsel %vm287_vm1, %v1469_v29, %v1458_v16  ;;  %v1616_v24 = vsel %vm287_vm1, %v1600_v56, %v1615_v22  ;;  %v1650_v17 = vsel %vm287_vm1, %v1649_v44, %v1468_v47 }
 0x2b3   :  { %v1601_v39 = vrot.slane %v1589_v53, 4  ;;  %v1614_v46 = vsel %vm287_vm1, %v1613_v2, %v1594_v38  ;;  %v1604_v54 = vsel %vm287_vm1, %v1589_v53, %v1603_v61  ;;  %v5008_v40 = vsel %vm287_vm1, %v1638_v36, %v1464_v52 }
 0x2b4   :  { %v4980_v18 = vperm.slane %v1614_v46, %v4136_v3  ;;  %v5004_v59 = vperm.slane %v1604_v54, %v4136_v3  ;;  %v5012_v23 = vperm.slane %v1616_v24, %v4136_v3  ;;  %v5015_v37 = vperm.slane %v1644_v19, %v4112_v42 }
 0x2b5   :  { %v1602_v11 = vsel %vm287_vm1, %v1601_v39, %v1583_v13  ;;  %v5018_v29 = vperm.slane %v1650_v17, %v4112_v42 }
 0x2b6   :  { %v5000_v4 = vperm.slane %v1602_v11, %v4136_v3  ;;  %v1625_v58 = vrot.slane %v4980_v18, 4  ;;  %v1631_v48 = vrot.slane %v5004_v59, 4  ;;  %v1629_v17 = vrot.slane %v5012_v23, 4 }
 0x2b8   :  { %v1626_v38 = vsel %vm287_vm1, %v1625_v58, %v5000_v4 }
 0x2c4   :  { %v4964_v43 = vpop.xlane.xlu0 %2222 }
 0x2c5   :  { %3721 = vrcp.f32 %v4964_v43  ;;  %v2280_v32 = vand.u32 2147483648, %v4964_v43  ;;  %v2278_v21 = vand.u32 2147483647, %v4964_v43  ;;  %vm2274_vm5 = vweird.f32 %v4964_v43 }
 0x2c7   :  { %v2281_v16 = vor.u32 1.1754944e-38, %v2280_v32  ;;  %vm2279_vm7 = vcmp.eq.f32.partialorder %v2278_v21, 8.507059e+37 }
 0x2c9   :  { %v4974_v1 = vpop.xlane.xlu1 %2231 }
 0x2ca   :  { %3723 = vrcp.f32 %v4974_v1  ;;  %v2323_v13 = vand.u32 2147483647, %v4974_v1  ;;  %v2325_v53 = vand.u32 2147483648, %v4974_v1  ;;  %vm2319_vm8 = vweird.f32 %v4974_v1 }
 0x2cb   :  { %v3722_v9 = vpop.eup %3721 }
 0x2cc   :  { %v2270_v5 = vmul.f32 %v3722_v9, %v4964_v43  ;;  %v4983_v35 = vpop.xlane.xlu2 %2228  ;;  %v4985_v7 = vpop.xlane.xlu0 %2225  ;;  %vm2275_vm4 = vweird.f32 %v3722_v9  ;;  %vm5029_vm10 = vcmp.eq.f32.partialorder %v2323_v13, 8.507059e+37  ;;  %v2326_v44 = vor.u32 1.1754944e-38, %v2325_v53 }
 0x2cd   :  { %3725 = vrcp.f32 %v4983_v35  ;;  %vm2276_vm6 = vmor %vm2274_vm5, %vm2275_vm4  ;;  %v2310_v36 = vand.u32 2147483648, %v4983_v35  ;;  %v2295_v47 = vand.u32 2147483648, %v4985_v7  ;;  %vm2304_vm14 = vweird.f32 %v4983_v35 }
 0x2ce   :  { %v2271_v15 = vsub.f32 1.0, %v2270_v5  ;;  %3727 = vrcp.f32 %v4985_v7  ;;  %vm2289_vm4 = vweird.f32 %v4985_v7 }
 0x2cf   :  { %v2311_v32 = vor.u32 1.1754944e-38, %v2310_v36  ;;  %v2296_v21 = vor.u32 1.1754944e-38, %v2295_v47 }
 0x2d0   :  { %v3724_v12 = vpop.eup %3723  ;;  %v2272_v14 = vmul.f32 %v3722_v9, %v2271_v15  ;;  %v2293_v15 = vand.u32 2147483647, %v4985_v7 }
 0x2d1   :  { %v2315_v56 = vmul.f32 %v3724_v12, %v4974_v1  ;;  %vm2320_vm9 = vweird.f32 %v3724_v12 }
 0x2d2   :  { %v2273_v0 = vadd.f32 %v3722_v9, %v2272_v14  ;;  %vm2321_vm11 = vmor %vm2319_vm8, %vm2320_vm9 }
 0x2d3   :  { %v3726_v2 = vpop.eup %3725  ;;  %v2316_v10 = vsub.f32 1.0, %v2315_v56  ;;  %v1669_v56 = vrot.slane %v5015_v37, 4 }
 0x2d4   :  { %v3728_v34 = vpop.eup %3727  ;;  %v2277_v39 = vsel %vm2276_vm6, %v3722_v9, %v2273_v0  ;;  %v2300_v43 = vmul.f32 %v3726_v2, %v4983_v35  ;;  %v2308_v9 = vand.u32 2147483647, %v4983_v35  ;;  %vm2305_vm12 = vweird.f32 %v3726_v2 }
 0x2d5   :  { %v2282_v46 = vsel %vm2279_vm7, %v2281_v16, %v2277_v39  ;;  %v2317_v61 = vmul.f32 %v3724_v12, %v2316_v10  ;;  %v2285_v57 = vmul.f32 %v3728_v34, %v4985_v7  ;;  %vm2290_vm13 = vweird.f32 %v3728_v34  ;;  %vm2306_vm15 = vmor %vm2304_vm14, %vm2305_vm12 }
 0x2d6   :  { %v2301_v22 = vsub.f32 1.0, %v2300_v43  ;;  %v2283_v30 = vmul.f32 %v4844_v63, %v2282_v46  ;;  %vm2309_vm5 = vcmp.eq.f32.partialorder %v2308_v9, 8.507059e+37  ;;  %vm2291_vm6 = vmor %vm2289_vm4, %vm2290_vm13  ;;  %vm2294_vm7 = vcmp.eq.f32.partialorder %v2293_v15, 8.507059e+37 }
 0x2d7   :  { %v2318_v52 = vadd.f32 %v3724_v12, %v2317_v61  ;;  %v2286_v5 = vsub.f32 1.0, %v2285_v57  ;;  %v5036_v11 = vpop.xlane.xlu0 %2240  ;;  %v1632_v35 = vsel %vm287_vm1, %v5012_v23, %v1631_v48  ;;  %v1627_v16 = vrot.slane %v5000_v4, 4 }
 0x2d8   :  { %v2302_v54 = vmul.f32 %v3726_v2, %v2301_v22  ;;  %3729 = vrcp.f32 %v5036_v11  ;;  %2509 = vst.msk [vmem:[%s5519_s10] sm:$0xff] %vm2124_vm3, %v2283_v30  ;;  %3623 = vmatmul.msk.f32.vlgmr.msra.gmra.mxu3 %vm2124_vm3, %v2283_v30  ;;  %v1643_v10 = vperm.slane %v5008_v40, %v4112_v42  ;;  %v1657_v4 = vrot.slane %v4992_v50, 4 }
 0x2d9   :  { %v2322_v63 = vsel %vm2321_vm11, %v3724_v12, %v2318_v52  ;;  %v2287_v19 = vmul.f32 %v3728_v34, %v2286_v5  ;;  %2727 = vmatpush.msra.mxu3 %v1626_v38  ;;  %v1630_v38 = vsel %vm287_vm1, %v1629_v17, %v5004_v59  ;;  %v1670_v40 = vsel %vm287_vm1, %v5018_v29, %v1669_v56 }
 0x2da   :  { %v2327_v1 = vsel %vm5029_vm10, %v2326_v44, %v2322_v63  ;;  %v2303_v24 = vadd.f32 %v3726_v2, %v2302_v54  ;;  %v1628_v48 = vsel %vm287_vm1, %v4980_v18, %v1627_v16  ;;  %v2370_v39 = vand.u32 2147483648, %v5036_v11 }
 0x2db   :  { %v2288_v58 = vadd.f32 %v3728_v34, %v2287_v19  ;;  %v2328_v12 = vmul.f32 %v4848_v45, %v2327_v1  ;;  %v5062_v53 = vpop.xlane.xlu2 %2237  ;;  %v5093_v43 = vperm.slane %v1670_v40, %v4136_v3  ;;  %v2368_v61 = vand.u32 2147483647, %v5036_v11 }
 0x2dc   :  { %v2307_v14 = vsel %vm2306_vm15, %v3726_v2, %v2303_v24  ;;  %3731 = vrcp.f32 %v5062_v53  ;;  %v1658_v57 = vsel %vm287_vm1, %v1643_v10, %v1657_v4  ;;  %v1667_v44 = vrot.slane %v5018_v29, 4 }
 0x2dd   :  { %v2312_v0 = vsel %vm2309_vm5, %v2311_v32, %v2307_v14  ;;  %v2292_v13 = vsel %vm2291_vm6, %v3728_v34, %v2288_v58  ;;  %2512 = vst.msk [vmem:[%s5519_s10 + $0x18] sm:$0xff] %vm2124_vm3, %v2328_v12  ;;  %3626 = vmatmul.msk.f32.vlgmr.msrb.gmra.mxu2 %vm2124_vm3, %v2328_v12  ;;  %vm2364_vm9 = vweird.f32 %v5036_v11  ;;  %v2371_v36 = vor.u32 1.1754944e-38, %v2370_v39 }
 0x2de   :  { %v3730_v45 = vpop.eup %3729  ;;  %v2297_v7 = vsel %vm2294_vm7, %v2296_v21, %v2292_v13  ;;  %2796 = vmatpush.msrb.mxu2 %v1632_v35  ;;  %v2313_v2 = vmul.f32 %v4854_v62, %v2312_v0  ;;  %v1666_v5 = vperm.slane %v1658_v57, %v4136_v3  ;;  %v1683_v54 = vrot.slane %v5093_v43, 4 }
 0x2df   :  { %v2360_v34 = vmul.f32 %v3730_v45, %v5036_v11  ;;  %v2298_v62 = vmul.f32 %v4852_v8, %v2297_v7  ;;  %v1655_v8 = vrot.slane %v1643_v10, 4  ;;  %vm2365_vm8 = vweird.f32 %v3730_v45 }
 0x2e0   :  { %v5072_v23 = vpop.xlane.xlu0 %2243  ;;  %2511 = vst.msk [vmem:[%s5519_s10 + $0x10] sm:$0xff] %vm2124_vm3, %v2313_v2  ;;  %3625 = vmatmul.msk.f32.vlgmr.msrb.gmra.mxu1 %vm2124_vm3, %v2313_v2  ;;  %vm2366_vm10 = vmor %vm2364_vm9, %vm2365_vm8  ;;  %vm2369_vm11 = vcmp.eq.f32.partialorder %v2368_v61, 8.507059e+37  ;;  %v2353_v11 = vand.u32 2147483647, %v5062_v53  ;;  %v2355_v19 = vand.u32 2147483648, %v5062_v53  ;;  %vm2349_vm13 = vweird.f32 %v5062_v53 }
 0x2e1   :  { %3733 = vrcp.f32 %v5072_v23  ;;  %2773 = vmatpush.msrb.mxu1 %v1630_v38  ;;  %v2361_v59 = vsub.f32 1.0, %v2360_v34  ;;  %2510 = vst.msk [vmem:[%s5519_s10 + $0x8] sm:$0xff] %vm2124_vm3, %v2298_v62  ;;  %3624 = vmatmul.msk.f32.vlgmr.msrb.gmra.mxu0 %vm2124_vm3, %v2298_v62  ;;  %v1656_v52 = vsel %vm287_vm1, %v1655_v8, %v4992_v50  ;;  %v2385_v32 = vand.u32 2147483648, %v5072_v23 }
 0x2e2   :  { %2750 = vmatpush.msrb.mxu0 %v1628_v48  ;;  %v3732_v6 = vpop.eup %3731  ;;  %v1662_v50 = vperm.slane %v1656_v52, %v4136_v3  ;;  %v1668_v58 = vsel %vm287_vm1, %v1667_v44, %v5015_v37  ;;  %v1684_v12 = vsel %vm287_vm1, %v1683_v54, %v1666_v5  ;;  %v2383_v56 = vand.u32 2147483647, %v5072_v23 }
 0x2e3   :  { %v2362_v46 = vmul.f32 %v3730_v45, %v2361_v59  ;;  %v2345_v22 = vmul.f32 %v3732_v6, %v5062_v53  ;;  %vm2350_vm12 = vweird.f32 %v3732_v6  ;;  %vm2354_vm4 = vcmp.eq.f32.partialorder %v2353_v11, 8.507059e+37 }
 0x2e4   :  { %vm2351_vm15 = vmor %vm2349_vm13, %vm2350_vm12  ;;  %v2356_v0 = vor.u32 1.1754944e-38, %v2355_v19  ;;  %v1681_v13 = vrot.slane %v1662_v50, 4  ;;  %vm2379_vm5 = vweird.f32 %v5072_v23  ;;  %v2386_v53 = vor.u32 1.1754944e-38, %v2385_v32 }
 0x2e5   :  { %v2363_v30 = vadd.f32 %v3730_v45, %v2362_v46  ;;  %v5100_v18 = vpop.xlane.xlu1 %2234  ;;  %v2346_v29 = vsub.f32 1.0, %v2345_v22  ;;  %v1674_v2 = vperm.slane %v1668_v58, %v4136_v3  ;;  %v1685_v16 = vrot.slane %v1666_v5, 4 }
 0x2e6   :  { %3735 = vrcp.f32 %v5100_v18  ;;  %vm2384_vm7 = vcmp.eq.f32.partialorder %v2383_v56, 8.507059e+37  ;;  %v2340_v62 = vand.u32 2147483648, %v5100_v18  ;;  %vm2334_vm9 = vweird.f32 %v5100_v18 }
 0x2e7   :  { %v3734_v9 = vpop.eup %3733  ;;  %v2367_v47 = vsel %vm2366_vm10, %v3730_v45, %v2363_v30  ;;  %v2347_v1 = vmul.f32 %v3732_v6, %v2346_v29  ;;  %v1682_v40 = vsel %vm287_vm1, %v1674_v2, %v1681_v13  ;;  %v1686_v8 = vsel %vm287_vm1, %v5093_v43, %v1685_v16 }
 0x2e8   :  { %v2375_v63 = vmul.f32 %v3734_v9, %v5072_v23  ;;  %v2372_v15 = vsel %vm2369_vm11, %v2371_v36, %v2367_v47  ;;  %vm2380_vm14 = vweird.f32 %v3734_v9  ;;  %v2338_v23 = vand.u32 2147483647, %v5100_v18 }
 0x2e9   :  { %v2373_v17 = vmul.f32 %v4863_v26, %v2372_v15  ;;  %v2348_v14 = vadd.f32 %v3732_v6, %v2347_v1  ;;  %vm2381_vm6 = vmor %vm2379_vm5, %vm2380_vm14  ;;  %v2341_v39 = vor.u32 1.1754944e-38, %v2340_v62 }
 0x2ea   :  { %v2376_v24 = vsub.f32 1.0, %v2375_v63  ;;  %vm2339_vm11 = vcmp.eq.f32.partialorder %v2338_v23, 8.507059e+37 }
 0x2eb   :  { %2515 = vst.msk [vmem:[%s5519_s10 + $0x30] sm:$0xff] %vm2124_vm3, %v2373_v17  ;;  %3629 = vmatmul.msk.f32.vlgmr.msra.gmra.mxu1 %vm2124_vm3, %v2373_v17  ;;  %v2352_v37 = vsel %vm2351_vm15, %v3732_v6, %v2348_v14 }
 0x2ec   :  { %v2377_v21 = vmul.f32 %v3734_v9, %v2376_v24  ;;  %v3736_v26 = vpop.eup %3735  ;;  %2865 = vmatpush.msra.mxu1 %v1684_v12  ;;  %v2357_v7 = vsel %vm2354_vm4, %v2356_v0, %v2352_v37 }
 0x2ed   :  { %v2330_v35 = vmul.f32 %v3736_v26, %v5100_v18  ;;  %v2358_v34 = vmul.f32 %v4868_v49, %v2357_v7  ;;  %vm2335_vm8 = vweird.f32 %v3736_v26 }
 0x2ee   :  { %v2378_v45 = vadd.f32 %v3734_v9, %v2377_v21  ;;  %vm2336_vm10 = vmor %vm2334_vm9, %vm2335_vm8 }
 0x2ef   :  { %v2331_v10 = vsub.f32 1.0, %v2330_v35  ;;  %2514 = vst.msk [vmem:[%s5519_s10 + $0x28] sm:$0xff] %vm2124_vm3, %v2358_v34  ;;  %3628 = vmatmul.msk.f32.vlgmr.msra.gmra.mxu0 %vm2124_vm3, %v2358_v34 }
 0x2f0   :  { %v2382_v38 = vsel %vm2381_vm6, %v3734_v9, %v2378_v45  ;;  %2842 = vmatpush.msra.mxu0 %v1682_v40 }
 0x2f1   :  { %v2387_v4 = vsel %vm2384_vm7, %v2386_v53, %v2382_v38  ;;  %v2332_v59 = vmul.f32 %v3736_v26, %v2331_v10 }
 0x2f2   :  { %v2388_v48 = vmul.f32 %v4872_v28, %v2387_v4  ;;  %v1679_v28 = vrot.slane %v1674_v2, 4 }
 0x2f3   :  { %v2333_v49 = vadd.f32 %v3736_v26, %v2332_v59 }
 0x2f4   :  { %2516 = vst.msk [vmem:[%s5519_s10 + $0x38] sm:$0xff] %vm2124_vm3, %v2388_v48  ;;  %3630 = vmatmul.msk.f32.vlgmr.msra.gmra.mxu2 %vm2124_vm3, %v2388_v48  ;;  %v1680_v43 = vsel %vm287_vm1, %v1679_v28, %v1662_v50 }
 0x2f5   :  { %2888 = vmatpush.msra.mxu2 %v1686_v8  ;;  %v2337_v61 = vsel %vm2336_vm10, %v3736_v26, %v2333_v49 }
 0x2f6   :  { %v2253_v46 = vpop.xlane.xlu2 %2252  ;;  %v2342_v57 = vsel %vm2339_vm11, %v2341_v39, %v2337_v61 }
 0x2f7   :  { %3737 = vrcp.f32 %v2253_v46  ;;  %v2343_v6 = vmul.f32 %v4876_v33, %v2342_v57  ;;  %v2430_v33 = vand.u32 2147483648, %v2253_v46  ;;  %v2428_v5 = vand.u32 2147483647, %v2253_v46 }
 0x2f8   :  { %vm2424_vm13 = vweird.f32 %v2253_v46 }
 0x2f9   :  { %2513 = vst.msk [vmem:[%s5519_s10 + $0x20] sm:$0xff] %vm2124_vm3, %v2343_v6  ;;  %3627 = vmatmul.msk.f32.vlgmr.msrb.gmra.mxu3 %vm2124_vm3, %v2343_v6  ;;  %v2431_v11 = vor.u32 1.1754944e-38, %v2430_v33  ;;  %vm2429_vm15 = vcmp.eq.f32.partialorder %v2428_v5, 8.507059e+37 }
 0x2fa   :  { %2819 = vmatpush.msrb.mxu3 %v1680_v43 }
 0x2fb   :  { %v2256_v44 = vpop.xlane.xlu0 %2255 }
 0x2fc   :  { %3739 = vrcp.f32 %v2256_v44  ;;  %v2445_v15 = vand.u32 2147483648, %v2256_v44  ;;  %v2443_v50 = vand.u32 2147483647, %v2256_v44  ;;  %vm2439_vm5 = vweird.f32 %v2256_v44 }
 0x2fd   :  { %v3738_v22 = vpop.eup %3737 }
 0x2fe   :  { %v2420_v30 = vmul.f32 %v3738_v22, %v2253_v46  ;;  %v2247_v18 = vpop.xlane.xlu1 %2246  ;;  %vm2425_vm12 = vweird.f32 %v3738_v22  ;;  %v2446_v21 = vor.u32 1.1754944e-38, %v2445_v15  ;;  %vm2444_vm8 = vcmp.eq.f32.partialorder %v2443_v50, 8.507059e+37 }
 0x2ff   :  { %3741 = vrcp.f32 %v2247_v18  ;;  %vm2426_vm14 = vmor %vm2424_vm13, %vm2425_vm12  ;;  %v2400_v56 = vand.u32 2147483648, %v2247_v18  ;;  %v2398_v0 = vand.u32 2147483647, %v2247_v18  ;;  %vm2394_vm9 = vweird.f32 %v2247_v18 }
 0x300   :  { %v2421_v52 = vsub.f32 1.0, %v2420_v30 }
 0x301   :  { %v2401_v2 = vor.u32 1.1754944e-38, %v2400_v56  ;;  %vm2399_vm11 = vcmp.eq.f32.partialorder %v2398_v0, 8.507059e+37 }
 0x302   :  { %v2422_v9 = vmul.f32 %v3738_v22, %v2421_v52  ;;  %v3740_v36 = vpop.eup %3739 }
 0x303   :  { %v2435_v29 = vmul.f32 %v3740_v36, %v2256_v44  ;;  %vm2440_vm4 = vweird.f32 %v3740_v36 }
 0x304   :  { %v2423_v54 = vadd.f32 %v3738_v22, %v2422_v9  ;;  %vm2441_vm6 = vmor %vm2439_vm5, %vm2440_vm4 }
 0x305   :  { %v3742_v47 = vpop.eup %3741  ;;  %v2436_v19 = vsub.f32 1.0, %v2435_v29 }
 0x306   :  { %v2427_v63 = vsel %vm2426_vm14, %v3738_v22, %v2423_v54  ;;  %v2390_v1 = vmul.f32 %v3742_v47, %v2247_v18  ;;  %v5152_v24 = vpop.xlane.xlu1 %2249  ;;  %vm2395_vm7 = vweird.f32 %v3742_v47 }
 0x307   :  { %v2432_v17 = vsel %vm2429_vm15, %v2431_v11, %v2427_v63  ;;  %v2437_v32 = vmul.f32 %v3740_v36, %v2436_v19  ;;  %3743 = vrcp.f32 %v5152_v24  ;;  %v5155_v58 = vpop.xlane.xlu0 %2267  ;;  %vm2396_vm10 = vmor %vm2394_vm9, %vm2395_vm7  ;;  %v2413_v40 = vand.u32 2147483647, %v5152_v24 }
 0x308   :  { %v2391_v12 = vsub.f32 1.0, %v2390_v1  ;;  %3745 = vrcp.f32 %v5155_v58  ;;  %v2433_v13 = vmul.f32 %v4883_v51, %v2432_v17  ;;  %v2415_v59 = vand.u32 2147483648, %v5152_v24 }
 0x309   :  { %v2438_v14 = vadd.f32 %v3740_v36, %v2437_v32  ;;  %v2503_v48 = vand.u32 2147483647, %v5155_v58  ;;  %v2505_v49 = vand.u32 2147483648, %v5155_v58  ;;  %vm2409_vm12 = vweird.f32 %v5152_v24 }
 0x30a   :  { %v2392_v26 = vmul.f32 %v3742_v47, %v2391_v12  ;;  %2519 = vst.msk [vmem:[%s5519_s10 + $0x50] sm:$0xff] %vm2124_vm3, %v2433_v13  ;;  %3633 = vmatmul.msk.f32.vlgmr.msrb.gmra.mxu1 %vm2124_vm3, %v2433_v13  ;;  %vm2499_vm14 = vweird.f32 %v5155_v58  ;;  %vm2414_vm4 = vcmp.eq.f32.partialorder %v2413_v40, 8.507059e+37  ;;  %v2416_v6 = vor.u32 1.1754944e-38, %v2415_v59 }
 0x30b   :  { %v2442_v37 = vsel %vm2441_vm6, %v3740_v36, %v2438_v14  ;;  %v5159_v35 = vpop.xlane.xlu2 %2258  ;;  %vm2504_vm6 = vcmp.eq.f32.partialorder %v2503_v48, 8.507059e+37  ;;  %v2506_v22 = vor.u32 1.1754944e-38, %v2505_v49 }
 0x30c   :  { %v2447_v45 = vsel %vm2444_vm8, %v2446_v21, %v2442_v37  ;;  %v2393_v7 = vadd.f32 %v3742_v47, %v2392_v26  ;;  %3747 = vrcp.f32 %v5159_v35  ;;  %v2458_v9 = vand.u32 2147483647, %v5159_v35 }
 0x30d   :  { %v3744_v53 = vpop.eup %3743  ;;  %v2448_v51 = vmul.f32 %v4888_v41, %v2447_v45  ;;  %v2460_v33 = vand.u32 2147483648, %v5159_v35  ;;  %vm2454_vm9 = vweird.f32 %v5159_v35 }
 0x30e   :  { %v3746_v16 = vpop.eup %3745  ;;  %v2397_v10 = vsel %vm2396_vm10, %v3742_v47, %v2393_v7  ;;  %v2405_v38 = vmul.f32 %v3744_v53, %v5152_v24  ;;  %v5169_v34 = vpop.xlane.xlu1 %2264  ;;  %vm2410_vm13 = vweird.f32 %v3744_v53 }
 0x30f   :  { %v2402_v62 = vsel %vm2399_vm11, %v2401_v2, %v2397_v10  ;;  %v2495_v4 = vmul.f32 %v3746_v16, %v5155_v58  ;;  %3749 = vrcp.f32 %v5169_v34  ;;  %2520 = vst.msk [vmem:[%s5519_s10 + $0x58] sm:$0xff] %vm2124_vm3, %v2448_v51  ;;  %3634 = vmatmul.msk.f32.vlgmr.msrb.gmra.mxu2 %vm2124_vm3, %v2448_v51  ;;  %vm2500_vm15 = vweird.f32 %v3746_v16  ;;  %vm2411_vm5 = vmor %vm2409_vm12, %vm2410_vm13 }
 0x310   :  { %v2406_v41 = vsub.f32 1.0, %v2405_v38  ;;  %v2403_v8 = vmul.f32 %v4893_v25, %v2402_v62  ;;  %vm2501_vm7 = vmor %vm2499_vm14, %vm2500_vm15  ;;  %v2490_v11 = vand.u32 2147483648, %v5169_v34  ;;  %v2488_v24 = vand.u32 2147483647, %v5169_v34 }
 0x311   :  { %v2496_v23 = vsub.f32 1.0, %v2495_v4  ;;  %v2461_v17 = vor.u32 1.1754944e-38, %v2460_v33  ;;  %vm2459_vm12 = vcmp.eq.f32.partialorder %v2458_v9, 8.507059e+37  ;;  %vm2484_vm13 = vweird.f32 %v5169_v34 }
 0x312   :  { %v3748_v39 = vpop.eup %3747  ;;  %v2407_v46 = vmul.f32 %v3744_v53, %v2406_v41  ;;  %2517 = vst.msk [vmem:[%s5519_s10 + $0x40] sm:$0xff] %vm2124_vm3, %v2403_v8  ;;  %3631 = vmatmul.msk.f32.vlgmr.msra.gmra.mxu3 %vm2124_vm3, %v2403_v8  ;;  %v2491_v12 = vor.u32 1.1754944e-38, %v2490_v11  ;;  %vm2489_vm15 = vcmp.eq.f32.partialorder %v2488_v24, 8.507059e+37 }
 0x313   :  { %v2497_v61 = vmul.f32 %v3746_v16, %v2496_v23  ;;  %v2450_v28 = vmul.f32 %v3748_v39, %v5159_v35  ;;  %v5191_v57 = vpop.xlane.xlu2 %2261  ;;  %vm2455_vm8 = vweird.f32 %v3748_v39 }
 0x314   :  { %v2408_v25 = vadd.f32 %v3744_v53, %v2407_v46  ;;  %3751 = vrcp.f32 %v5191_v57  ;;  %vm2456_vm11 = vmor %vm2454_vm9, %vm2455_vm8  ;;  %v2475_v26 = vand.u32 2147483648, %v5191_v57  ;;  %v2473_v37 = vand.u32 2147483647, %v5191_v57 }
 0x315   :  { %v3750_v43 = vpop.eup %3749  ;;  %v2498_v44 = vadd.f32 %v3746_v16, %v2497_v61  ;;  %v2451_v30 = vsub.f32 1.0, %v2450_v28 }
 0x316   :  { %v2412_v18 = vsel %vm2411_vm5, %v3744_v53, %v2408_v25  ;;  %v2480_v52 = vmul.f32 %v3750_v43, %v5169_v34  ;;  %vm2485_vm10 = vweird.f32 %v3750_v43  ;;  %vm2469_vm5 = vweird.f32 %v5191_v57 }
 0x317   :  { %v2417_v36 = vsel %vm2414_vm4, %v2416_v6, %v2412_v18  ;;  %v2502_v5 = vsel %vm2501_vm7, %v3746_v16, %v2498_v44  ;;  %v2452_v54 = vmul.f32 %v3748_v39, %v2451_v30  ;;  %vm2486_vm14 = vmor %vm2484_vm13, %vm2485_vm10  ;;  %vm2474_vm7 = vcmp.eq.f32.partialorder %v2473_v37, 8.507059e+37 }
 0x318   :  { %v2507_v29 = vsel %vm2504_vm6, %v2506_v22, %v2502_v5  ;;  %v2481_v47 = vsub.f32 1.0, %v2480_v52  ;;  %v2418_v63 = vmul.f32 %v4900_v27, %v2417_v36 }
 0x319   :  { %v2453_v19 = vadd.f32 %v3748_v39, %v2452_v54  ;;  %v2508_v15 = vmul.f32 %v4902_v20, %v2507_v29 }
 0x31a   :  { %v3752_v50 = vpop.eup %3751  ;;  %v2482_v1 = vmul.f32 %v3750_v43, %v2481_v47  ;;  %2518 = vst.msk [vmem:[%s5519_s10 + $0x48] sm:$0xff] %vm2124_vm3, %v2418_v63  ;;  %3632 = vmatmul.msk.f32.vlgmr.msrb.gmra.mxu0 %vm2124_vm3, %v2418_v63 }
 0x31b   :  { %v2457_v27 = vsel %vm2456_vm11, %v3748_v39, %v2453_v19  ;;  %v2465_v32 = vmul.f32 %v3752_v50, %v5191_v57  ;;  %2524 = vst.msk [vmem:[%s5519_s10 + $0x78] sm:$0xff] %vm2124_vm3, %v2508_v15  ;;  %3638 = vmatmul.msk.f32.vlgmr.msra.gmra.mxu2 %vm2124_vm3, %v2508_v15  ;;  %vm2470_vm4 = vweird.f32 %v3752_v50 }
 0x31c   :  { %v2483_v20 = vadd.f32 %v3750_v43, %v2482_v1  ;;  %v2462_v58 = vsel %vm2459_vm12, %v2461_v17, %v2457_v27  ;;  %vm2471_vm6 = vmor %vm2469_vm5, %vm2470_vm4 }
 0x31d   :  { %v2466_v14 = vsub.f32 1.0, %v2465_v32  ;;  %v2463_v21 = vmul.f32 %v4908_v60, %v2462_v58  ;;  %v2476_v60 = vor.u32 1.1754944e-38, %v2475_v26 }
 0x31e   :  { %v2487_v56 = vsel %vm2486_vm14, %v3750_v43, %v2483_v20 }
 0x31f   :  { %v2492_v0 = vsel %vm2489_vm15, %v2491_v12, %v2487_v56  ;;  %v2467_v13 = vmul.f32 %v3752_v50, %v2466_v14  ;;  %2521 = vst.msk [vmem:[%s5519_s10 + $0x60] sm:$0xff] %vm2124_vm3, %v2463_v21  ;;  %3635 = vmatmul.msk.f32.vlgmr.msrb.gmra.mxu3 %vm2124_vm3, %v2463_v21 }
 0x320   :  { %v2493_v35 = vmul.f32 %v4910_v55, %v2492_v0 }
 0x321   :  { %v2468_v45 = vadd.f32 %v3752_v50, %v2467_v13 }
 0x322   :  { %2523 = vst.msk [vmem:[%s5519_s10 + $0x70] sm:$0xff] %vm2124_vm3, %v2493_v35  ;;  %3637 = vmatmul.msk.f32.vlgmr.msra.gmra.mxu1 %vm2124_vm3, %v2493_v35 }
 0x323   :  { %v2472_v7 = vsel %vm2471_vm6, %v3752_v50, %v2468_v45 }
 0x324   :  { %v2477_v53 = vsel %vm2474_vm7, %v2476_v60, %v2472_v7 }
 0x325   :  { %v2478_v2 = vmul.f32 %v4916_v31, %v2477_v53 }
 0x327   :  { %2522 = vst.msk [vmem:[%s5519_s10 + $0x68] sm:$0xff] %vm2124_vm3, %v2478_v2  ;;  %3636 = vmatmul.msk.f32.vlgmr.msra.gmra.mxu0 %vm2124_vm3, %v2478_v2  ;;  %s3906_s10 = smov 32   ;;  %vm3402_vm3 = vcmask 523264  }
 0x35b   :  { %v2545_v55 = vpop.f32.mrf.mxu3 }
 0x35c   :  { %v2895_v51 = vrot.slane %v2545_v55, 4 }
 0x35d   :  { %v2591_v16 = vpop.f32.mrf.mxu1 }
 0x35e   :  { %v2893_v10 = vrot.slane %v2591_v16, 4  ;;  %v2896_v38 = vsel %vm287_vm1, %v2591_v16, %v2895_v51  ;;  %v2568_v62 = vpop.f32.mrf.mxu0 }
 0x35f   :  { %v2904_v34 = vperm.slane %v2896_v38, %v4112_v42  ;;  %v2907_v41 = vrot.slane %v2568_v62, 4 }
 0x360   :  { %v2894_v4 = vsel %vm287_vm1, %v2893_v10, %v2545_v55  ;;  %v2614_v31 = vpop.f32.mrf.mxu2 }
 0x361   :  { %v2900_v40 = vperm.slane %v2894_v4, %v4112_v42  ;;  %v2931_v59 = vrot.slane %v2904_v34, 4  ;;  %v2905_v23 = vrot.slane %v2614_v31, 4  ;;  %v2908_v48 = vsel %vm287_vm1, %v2614_v31, %v2907_v41 }
 0x362   :  { %v2916_v39 = vperm.slane %v2908_v48, %v4112_v42 }
 0x363   :  { %v2919_v49 = vrot.slane %v2900_v40, 4  ;;  %v2906_v8 = vsel %vm287_vm1, %v2905_v23, %v2568_v62 }
 0x364   :  { %v2912_v46 = vperm.slane %v2906_v8, %v4112_v42  ;;  %v2929_v61 = vrot.slane %v2916_v39, 4  ;;  %v2932_v28 = vsel %vm287_vm1, %v2916_v39, %v2931_v59 }
 0x365   :  { %v2940_v6 = vperm.slane %v2932_v28, %v4136_v3 }
 0x366   :  { %v2917_v57 = vrot.slane %v2912_v46, 4  ;;  %v2920_v25 = vsel %vm287_vm1, %v2912_v46, %v2919_v49  ;;  %v2930_v44 = vsel %vm287_vm1, %v2929_v61, %v2904_v34 }
 0x367   :  { %v2928_v43 = vperm.slane %v2920_v25, %v4136_v3  ;;  %v2936_v30 = vperm.slane %v2930_v44, %v4136_v3  ;;  %v2947_v18 = vrot.slane %v2940_v6, 4 }
 0x368   :  { %v2918_v22 = vsel %vm287_vm1, %v2917_v57, %v2900_v40  ;;  %v2683_v31 = vpop.f32.mrf.mxu1 }
 0x369   :  { %v2924_v52 = vperm.slane %v2918_v22, %v4136_v3  ;;  %v2943_v9 = vrot.slane %v2928_v43, 4  ;;  %v2945_v33 = vrot.slane %v2936_v30, 4  ;;  %v2948_v36 = vsel %vm287_vm1, 0.0, %v2947_v18 }
 0x36a   :  { %v3128_v5 = vsel %vm287_vm1, %v2947_v18, %v2936_v30  ;;  %v3133_v63 = vrot.slane %v2948_v36, 4  ;;  %v2949_v48 = vrot.slane %v2683_v31, 4 }
 0x36b   :  { %v2941_v54 = vrot.slane %v2924_v52, 4  ;;  %v2944_v29 = vsel %vm287_vm1, 0.0, %v2943_v9  ;;  %v3132_v47 = vperm.slane %v3128_v5, %v4112_v42  ;;  %v2946_v11 = vsel %vm287_vm1, 0.0, %v2945_v33 }
 0x36c   :  { %v3122_v19 = vrot.slane %v2944_v29, 4  ;;  %v3117_v15 = vsel %vm287_vm1, %v2943_v9, %v2924_v52  ;;  %v3134_v24 = vsel %vm287_vm1, %v3133_v63, %v2946_v11  ;;  %v2660_v37 = vpop.f32.mrf.mxu0 }
 0x36d   :  { %v2942_v50 = vsel %vm287_vm1, 0.0, %v2941_v54  ;;  %v3121_v1 = vperm.slane %v3117_v15, %v4112_v42  ;;  %v3153_v17 = vrot.slane %v3132_v47, 4  ;;  %v3138_v32 = vperm.slane %v3134_v24, %v4112_v42 }
 0x36e   :  { %v3123_v27 = vsel %vm287_vm1, %v3122_v19, %v2942_v50  ;;  %v2963_v51 = vrot.slane %v2660_v37, 4 }
 0x36f   :  { %v3127_v20 = vperm.slane %v3123_v27, %v4112_v42  ;;  %v3141_v58 = vrot.slane %v3121_v1, 4  ;;  %v3154_v12 = vsel %vm287_vm1, %v3138_v32, %v3153_v17  ;;  %v3151_v14 = vrot.slane %v3138_v32, 4 }
 0x370   :  { %v3162_v56 = vperm.slane %v3154_v12, %v4136_v3 }
 0x371   :  { %v3142_v21 = vsel %vm287_vm1, %v3127_v20, %v3141_v58  ;;  %v3139_v26 = vrot.slane %v3127_v20, 4  ;;  %v3152_v13 = vsel %vm287_vm1, %v3151_v14, %v3132_v47 }
 0x372   :  { %v3150_v0 = vperm.slane %v3142_v21, %v4136_v3  ;;  %v3167_v35 = vrot.slane %v3162_v56, 4  ;;  %v3158_v60 = vperm.slane %v3152_v13, %v4136_v3 }
 0x373   :  { %v3140_v45 = vsel %vm287_vm1, %v3139_v26, %v3121_v1 }
 0x374   :  { %v3169_v7 = vrot.slane %v3150_v0, 4  ;;  %v3146_v53 = vperm.slane %v3140_v45, %v4136_v3  ;;  %v3168_v2 = vsel %vm287_vm1, %v3167_v35, %v3150_v0  ;;  %v3163_v55 = vrot.slane %v3158_v60, 4 }
 0x375   :  { %3353 = vrot.lane.b32.xlu1 %v3168_v2, %s3906_s10 }
 0x376   :  { %v3170_v16 = vsel %vm287_vm1, %v3162_v56, %v3169_v7  ;;  %v3165_v10 = vrot.slane %v3146_v53, 4  ;;  %v5279_v34 = vsel %vm287_vm1, %v3163_v55, %v3146_v53 }
 0x377   :  { %v2706_v38 = vpop.f32.mrf.mxu2  ;;  %3369 = vrot.lane.b32.xlu2 %v3170_v16, %s3907_s24 }
 0x378   :  { %v2961_v62 = vrot.slane %v2706_v38, 4  ;;  %v2964_v4 = vsel %vm287_vm1, %v2706_v38, %v2963_v51  ;;  %v3166_v41 = vsel %vm287_vm1, %v3158_v60, %v3165_v10 }
 0x379   :  { %3337 = vrot.lane.b32.xlu0 %v3166_v41, %s3908_s25  ;;  %v2972_v23 = vperm.slane %v2964_v4, %v4112_v42 }
 0x37a   :  { %v2962_v40 = vsel %vm287_vm1, %v2961_v62, %v2660_v37 }
 0x37b   :  { %v2968_v59 = vperm.slane %v2962_v40, %v4112_v42  ;;  %v2985_v28 = vrot.slane %v2972_v23, 4 }
 0x37c   :  { %v2637_v49 = vpop.f32.mrf.mxu3 }
 0x37d   :  { %v2973_v8 = vrot.slane %v2968_v59, 4  ;;  %v2950_v39 = vsel %vm287_vm1, %v2949_v48, %v2637_v49  ;;  %v2951_v46 = vrot.slane %v2637_v49, 4 }
 0x37e   :  { %v2956_v61 = vperm.slane %v2950_v39, %v4112_v42 }
 0x37f   :  { %v2952_v57 = vsel %vm287_vm1, %v2683_v31, %v2951_v46 }
 0x380   :  { %v2960_v25 = vperm.slane %v2952_v57, %v4112_v42  ;;  %v2975_v6 = vrot.slane %v2956_v61, 4  ;;  %v2974_v43 = vsel %vm287_vm1, %v2973_v8, %v2956_v61 }
 0x381   :  { %v2980_v44 = vperm.slane %v2974_v43, %v4136_v3 }
 0x382   :  { %v2987_v22 = vrot.slane %v2960_v25, 4  ;;  %v2976_v30 = vsel %vm287_vm1, %v2968_v59, %v2975_v6  ;;  %v2986_v18 = vsel %vm287_vm1, %v2985_v28, %v2960_v25 }
 0x383   :  { %v2984_v52 = vperm.slane %v2976_v30, %v4136_v3  ;;  %v2992_v9 = vperm.slane %v2986_v18, %v4136_v3  ;;  %v2997_v33 = vrot.slane %v2980_v44, 4 }
 0x384   :  { %v2988_v36 = vsel %vm287_vm1, %v2972_v23, %v2987_v22 }
 0x385   :  { %v2996_v5 = vperm.slane %v2988_v36, %v4136_v3  ;;  %v2999_v54 = vrot.slane %v2984_v52, 4  ;;  %v3001_v29 = vrot.slane %v2992_v9, 4  ;;  %v2998_v11 = vsel %vm287_vm1, 0.0, %v2997_v33 }
 0x387   :  { %v3000_v47 = vsel %vm287_vm1, 0.0, %v2999_v54  ;;  %v3003_v63 = vrot.slane %v2996_v5, 4  ;;  %v3171_v19 = vsel %vm287_vm1, %v2999_v54, %v2980_v44  ;;  %v3002_v20 = vsel %vm287_vm1, 0.0, %v3001_v29  ;;  %v2775_v7 = vpop.f32.mrf.mxu1 }
 0x388   :  { %v3176_v15 = vrot.slane %v3000_v47, 4  ;;  %v3175_v50 = vperm.slane %v3171_v19, %v4112_v42  ;;  %v3005_v38 = vrot.slane %v2775_v7, 4 }
 0x389   :  { %v3004_v1 = vsel %vm287_vm1, 0.0, %v3003_v63  ;;  %v3182_v24 = vsel %vm287_vm1, %v3003_v63, %v2992_v9 }
 0x38a   :  { %v3186_v17 = vperm.slane %v3182_v24, %v4112_v42  ;;  %v3187_v27 = vrot.slane %v3004_v1, 4  ;;  %v3177_v32 = vsel %vm287_vm1, %v3176_v15, %v2998_v11  ;;  %v3195_v12 = vrot.slane %v3175_v50, 4 }
 0x38b   :  { %v3181_v58 = vperm.slane %v3177_v32, %v4112_v42 }
 0x38c   :  { %v3188_v14 = vsel %vm287_vm1, %v3187_v27, %v3002_v20  ;;  %v3207_v21 = vrot.slane %v3186_v17, 4 }
 0x38d   :  { %v3192_v56 = vperm.slane %v3188_v14, %v4112_v42  ;;  %v3193_v26 = vrot.slane %v3181_v58, 4  ;;  %v3196_v0 = vsel %vm287_vm1, %v3181_v58, %v3195_v12 }
 0x38e   :  { %v3204_v55 = vperm.slane %v3196_v0, %v4136_v3 }
 0x38f   :  { %v3208_v13 = vsel %vm287_vm1, %v3192_v56, %v3207_v21  ;;  %v3194_v37 = vsel %vm287_vm1, %v3193_v26, %v3175_v50  ;;  %v3205_v35 = vrot.slane %v3192_v56, 4 }
 0x390   :  { %v3216_v45 = vperm.slane %v3208_v13, %v4136_v3  ;;  %v3200_v60 = vperm.slane %v3194_v37, %v4136_v3  ;;  %v3223_v57 = vrot.slane %v3204_v55, 4 }
 0x391   :  { %v3206_v53 = vsel %vm287_vm1, %v3205_v35, %v3186_v17 }
 0x392   :  { %v2798_v2 = vpop.f32.mrf.mxu2  ;;  %v3221_v51 = vrot.slane %v3216_v45, 4  ;;  %v3212_v16 = vperm.slane %v3206_v53, %v4136_v3  ;;  %v3219_v10 = vrot.slane %v3200_v60, 4  ;;  %v3224_v36 = vsel %vm287_vm1, %v3216_v45, %v3223_v57 }
 0x393   :  { %v3017_v31 = vrot.slane %v2798_v2, 4 }
 0x394   :  { %v3222_v62 = vsel %vm287_vm1, %v3221_v51, %v3204_v55  ;;  %v3217_v4 = vrot.slane %v3212_v16, 4  ;;  %v3220_v41 = vsel %vm287_vm1, %v3212_v16, %v3219_v10 }
 0x395   :  { %v2729_v40 = vpop.f32.mrf.mxu3  ;;  %3355 = vrot.lane.b32.xlu1 %v3222_v62, %s3906_s10  ;;  %3339 = vrot.lane.b32.xlu0 %v3220_v41, %s3908_s25 }
 0x396   :  { %v3006_v59 = vsel %vm287_vm1, %v3005_v38, %v2729_v40  ;;  %v3007_v23 = vrot.slane %v2729_v40, 4  ;;  %v5325_v49 = vsel %vm287_vm1, %v3217_v4, %v3200_v60 }
 0x397   :  { %v2752_v48 = vpop.f32.mrf.mxu0  ;;  %v3012_v8 = vperm.slane %v3006_v59, %v4112_v42 }
 0x398   :  { %v3018_v39 = vsel %vm287_vm1, %v3017_v31, %v2752_v48  ;;  %v3019_v46 = vrot.slane %v2752_v48, 4  ;;  %v3008_v61 = vsel %vm287_vm1, %v2775_v7, %v3007_v23 }
 0x399   :  { %v3024_v28 = vperm.slane %v3018_v39, %v4112_v42  ;;  %v3016_v25 = vperm.slane %v3008_v61, %v4112_v42  ;;  %v3031_v6 = vrot.slane %v3012_v8, 4 }
 0x39a   :  { %v3020_v43 = vsel %vm287_vm1, %v2798_v2, %v3019_v46 }
 0x39b   :  { %v3028_v44 = vperm.slane %v3020_v43, %v4112_v42  ;;  %v3029_v22 = vrot.slane %v3024_v28, 4  ;;  %v3043_v30 = vrot.slane %v3016_v25, 4  ;;  %v3032_v18 = vsel %vm287_vm1, %v3024_v28, %v3031_v6 }
 0x39c   :  { %v3040_v9 = vperm.slane %v3032_v18, %v4136_v3 }
 0x39d   :  { %v3030_v52 = vsel %vm287_vm1, %v3029_v22, %v3012_v8  ;;  %v3041_v33 = vrot.slane %v3028_v44, 4  ;;  %v3044_v54 = vsel %vm287_vm1, %v3028_v44, %v3043_v30  ;;  %3371 = vrot.lane.b32.xlu0 %v3224_v36, %s3907_s24 }
 0x39e   :  { %v3036_v5 = vperm.slane %v3030_v52, %v4136_v3  ;;  %v2890_v29 = vpop.f32.mrf.mxu2  ;;  %v3052_v63 = vperm.slane %v3044_v54, %v4136_v3  ;;  %v3055_v11 = vrot.slane %v3040_v9, 4 }
 0x39f   :  { %v3042_v47 = vsel %vm287_vm1, %v3041_v33, %v3016_v25  ;;  %v2867_v19 = vpop.f32.mrf.mxu1  ;;  %v3073_v1 = vrot.slane %v2890_v29, 4 }
 0x3a0   :  { %v3048_v15 = vperm.slane %v3042_v47, %v4136_v3  ;;  %v3053_v50 = vrot.slane %v3036_v5, 4  ;;  %v3056_v24 = vsel %vm287_vm1, 0.0, %v3055_v11  ;;  %v3059_v17 = vrot.slane %v3052_v63, 4 }
 0x3a1   :  { %v3225_v27 = vsel %vm287_vm1, %v3055_v11, %v3036_v5  ;;  %v3061_v32 = vrot.slane %v2867_v19, 4  ;;  %v3230_v12 = vrot.slane %v3056_v24, 4 }
 0x3a2   :  { %v3054_v20 = vsel %vm287_vm1, 0.0, %v3053_v50  ;;  %v3057_v58 = vrot.slane %v3048_v15, 4  ;;  %v2821_v14 = vpop.f32.mrf.mxu3  ;;  %v3229_v21 = vperm.slane %v3225_v27, %v4112_v42  ;;  %v3060_v56 = vsel %vm287_vm1, 0.0, %v3059_v17 }
 0x3a3   :  { %v3062_v26 = vsel %vm287_vm1, %v3061_v32, %v2821_v14  ;;  %v3063_v0 = vrot.slane %v2821_v14, 4  ;;  %v3236_v13 = vsel %vm287_vm1, %v3059_v17, %v3048_v15  ;;  %v3241_v37 = vrot.slane %v3060_v56, 4 }
 0x3a4   :  { %v3068_v35 = vperm.slane %v3062_v26, %v4112_v42  ;;  %v2844_v45 = vpop.f32.mrf.mxu0  ;;  %v3058_v60 = vsel %vm287_vm1, 0.0, %v3057_v58  ;;  %v3231_v7 = vsel %vm287_vm1, %v3230_v12, %v3054_v20  ;;  %v3240_v62 = vperm.slane %v3236_v13, %v4112_v42  ;;  %v3401_v26 = vld [vmem:[%s5516_s7 + $0x38] sm:$0xff] }
 0x3a5   :  { %v3064_v53 = vsel %vm287_vm1, %v2867_v19, %v3063_v0  ;;  %v3074_v2 = vsel %vm287_vm1, %v3073_v1, %v2844_v45  ;;  %v3075_v55 = vrot.slane %v2844_v45, 4  ;;  %v3235_v51 = vperm.slane %v3231_v7, %v4112_v42  ;;  %3423 = vmatpush.msra.mxu3 %v3401_v26  ;;  %v3400_v45 = vld [vmem:[%s5516_s7 + $0x30] sm:$0xff] }
 0x3a6   :  { %v3072_v16 = vperm.slane %v3064_v53, %v4112_v42  ;;  %v3087_v10 = vrot.slane %v3068_v35, 4  ;;  %v3080_v38 = vperm.slane %v3074_v2, %v4112_v42  ;;  %v3242_v41 = vsel %vm287_vm1, %v3241_v37, %v3058_v60 }
 0x3a7   :  { %v3076_v4 = vsel %vm287_vm1, %v2890_v29, %v3075_v55  ;;  %v3249_v31 = vrot.slane %v3229_v21, 4  ;;  %v3247_v40 = vrot.slane %v3235_v51, 4  ;;  %v3246_v46 = vperm.slane %v3242_v41, %v4112_v42  ;;  %3424 = vmatpush.msra.mxu3 %v3400_v45 }
 0x3a8   :  { %v3099_v59 = vrot.slane %v3072_v16, 4  ;;  %v3084_v23 = vperm.slane %v3076_v4, %v4112_v42  ;;  %v3085_v48 = vrot.slane %v3080_v38, 4  ;;  %v3088_v8 = vsel %vm287_vm1, %v3080_v38, %v3087_v10  ;;  %v3399_v10 = vld [vmem:[%s5516_s7 + $0x28] sm:$0xff] }
 0x3a9   :  { %v3096_v39 = vperm.slane %v3088_v8, %v4136_v3  ;;  %v3250_v61 = vsel %vm287_vm1, %v3235_v51, %v3249_v31  ;;  %v3261_v28 = vrot.slane %v3240_v62, 4  ;;  %v3248_v33 = vsel %vm287_vm1, %v3247_v40, %v3229_v21  ;;  %3425 = vmatpush.msra.mxu3 %v3399_v10 }
 0x3aa   :  { %v3086_v57 = vsel %vm287_vm1, %v3085_v48, %v3068_v35  ;;  %v3097_v25 = vrot.slane %v3084_v23, 4  ;;  %v3100_v6 = vsel %vm287_vm1, %v3084_v23, %v3099_v59  ;;  %v3258_v43 = vperm.slane %v3250_v61, %v4136_v3 }
 0x3ab   :  { %v3092_v44 = vperm.slane %v3086_v57, %v4136_v3  ;;  %v3108_v22 = vperm.slane %v3100_v6, %v4136_v3  ;;  %v3111_v30 = vrot.slane %v3096_v39, 4  ;;  %v3262_v18 = vsel %vm287_vm1, %v3246_v46, %v3261_v28 }
 0x3ac   :  { %v3098_v52 = vsel %vm287_vm1, %v3097_v25, %v3072_v16  ;;  %v3270_v9 = vperm.slane %v3262_v18, %v4136_v3  ;;  %v3259_v36 = vrot.slane %v3246_v46, 4  ;;  %v3254_v15 = vperm.slane %v3248_v33, %v4136_v3 }
 0x3ad   :  { %v3104_v5 = vperm.slane %v3098_v52, %v4136_v3  ;;  %v3109_v54 = vrot.slane %v3092_v44, 4  ;;  %v3112_v29 = vsel %vm287_vm1, 0.0, %v3111_v30  ;;  %v3115_v47 = vrot.slane %v3108_v22, 4  ;;  %v3395_v22 = vld [vmem:[%s5516_s7 + $0x8] sm:$0xff] }
 0x3ae   :  { %v3279_v63 = vsel %vm287_vm1, %v3111_v30, %v3092_v44  ;;  %v3284_v11 = vrot.slane %v3112_v29, 4  ;;  %v3275_v19 = vrot.slane %v3270_v9, 4  ;;  %v3260_v20 = vsel %vm287_vm1, %v3259_v36, %v3240_v62  ;;  %v3396_v44 = vld [vmem:[%s5516_s7 + $0x10] sm:$0xff]  ;;  %v3394_v30 = vld [vmem:[%s5516_s7] sm:$0xff] }
 0x3af   :  { %v3110_v50 = vsel %vm287_vm1, 0.0, %v3109_v54  ;;  %v3113_v1 = vrot.slane %v3104_v5, 4  ;;  %v3116_v24 = vsel %vm287_vm1, 0.0, %v3115_v47  ;;  %v3283_v17 = vperm.slane %v3279_v63, %v4112_v42 }
 0x3b0   :  { %v3295_v27 = vrot.slane %v3116_v24, 4  ;;  %v3276_v32 = vsel %vm287_vm1, %v3275_v19, %v3258_v43  ;;  %v3273_v58 = vrot.slane %v3254_v15, 4  ;;  %v3266_v12 = vperm.slane %v3260_v20, %v4136_v3 }
 0x3b1   :  { %3357 = vrot.lane.b32.xlu1 %v3276_v32, %s3906_s10  ;;  %v3277_v14 = vrot.slane %v3258_v43, 4  ;;  %v3114_v21 = vsel %vm287_vm1, 0.0, %v3113_v1  ;;  %v3285_v56 = vsel %vm287_vm1, %v3284_v11, %v3110_v50  ;;  %v3290_v13 = vsel %vm287_vm1, %v3115_v47, %v3104_v5 }
 0x3b2   :  { %v3289_v0 = vperm.slane %v3285_v56, %v4112_v42  ;;  %v3296_v37 = vsel %vm287_vm1, %v3295_v27, %v3114_v21  ;;  %v3303_v35 = vrot.slane %v3283_v17, 4  ;;  %v3271_v60 = vrot.slane %v3266_v12, 4  ;;  %v3763_v21 = vld [vmem:[%s5509_s0] sm:$0xff] }
 0x3b3   :  { %v3274_v7 = vsel %vm287_vm1, %v3266_v12, %v3273_v58  ;;  %v3278_v53 = vsel %vm287_vm1, %v3270_v9, %v3277_v14  ;;  %v3294_v2 = vperm.slane %v3290_v13, %v4112_v42  ;;  %v3300_v55 = vperm.slane %v3296_v37, %v4112_v42  ;;  %v3398_v42 = vld [vmem:[%s5516_s7 + $0x20] sm:$0xff]  ;;  %v3764_v13 = vld [vmem:[%s5509_s0 + $0x8] sm:$0xff] }
 0x3b4   :  { %3341 = vrot.lane.b32.xlu2 %v3274_v7, %s3908_s25  ;;  %3373 = vrot.lane.b32.xlu0 %v3278_v53, %s3907_s24  ;;  %v3304_v51 = vsel %vm287_vm1, %v3289_v0, %v3303_v35  ;;  %v3301_v16 = vrot.slane %v3289_v0, 4  ;;  %v3272_v4 = vsel %vm287_vm1, %v3271_v60, %v3254_v15  ;;  %v3765_v60 = vld [vmem:[%s5509_s0 + $0x10] sm:$0xff]  ;;  %v3909_v10 = vmov 32.0  }
 0x3b5   :  { %v3312_v38 = vperm.slane %v3304_v51, %v4136_v3  ;;  %v3315_v62 = vrot.slane %v3294_v2, 4  ;;  %v3313_v31 = vrot.slane %v3300_v55, 4  ;;  %3426 = vmatpush.msra.mxu3 %v3398_v42  ;;  %3753 = vrcp.f32 %v3909_v10 }
 0x3b6   :  { %v3302_v41 = vsel %vm287_vm1, %v3301_v16, %v3283_v17 }
 0x3b7   :  { %v3316_v40 = vsel %vm287_vm1, %v3300_v55, %v3315_v62  ;;  %v3331_v59 = vrot.slane %v3312_v38, 4  ;;  %v3308_v23 = vperm.slane %v3302_v41, %v4136_v3  ;;  %v3314_v8 = vsel %vm287_vm1, %v3313_v31, %v3294_v2  ;;  %v3766_v55 = vld [vmem:[%s5509_s0 + $0x18] sm:$0xff] }
 0x3b8   :  { %v3324_v48 = vperm.slane %v3316_v40, %v4136_v3  ;;  %v3320_v39 = vperm.slane %v3314_v8, %v4136_v3  ;;  %v3397_v3 = vld [vmem:[%s5516_s7 + $0x18] sm:$0xff] }
 0x3b9   :  { %v3327_v46 = vrot.slane %v3308_v23, 4  ;;  %3427 = vmatpush.msra.mxu3 %v3397_v3 }
 0x3ba   :  { %v3332_v61 = vsel %vm287_vm1, %v3324_v48, %v3331_v59  ;;  %v3329_v28 = vrot.slane %v3324_v48, 4  ;;  %v3325_v57 = vrot.slane %v3320_v39, 4 }
 0x3bb   :  { %v3328_v25 = vsel %vm287_vm1, %v3320_v39, %v3327_v46  ;;  %3428 = vmatpush.msra.mxu3 %v3396_v44 }
 0x3bc   :  { %3375 = vrot.lane.b32.xlu0 %v3332_v61, %s3907_s24  ;;  %v3330_v6 = vsel %vm287_vm1, %v3329_v28, %v3312_v38  ;;  %3343 = vrot.lane.b32.xlu2 %v3328_v25, %s3908_s25  ;;  %v3326_v43 = vsel %vm287_vm1, %v3325_v57, %v3308_v23  ;;  %vm3389_vm1 = vcmask 392192   ;;  %v3754_v38 = vpop.eup %3753 }
 0x3bd   :  { %3359 = vrot.lane.b32.xlu1 %v3330_v6, %s3906_s10  ;;  %3429 = vmatpush.msra.mxu3 %v3395_v22  ;;  %v3457_v62 = vmul.f32 32.0, %v3754_v38 }
 0x3bf   :  { %3430 = vmatpush.msra.mxu3 %v3394_v30 }
 0x3d1   :  { %v3370_v33 = vpop.permute.xlu2 %3369 }
 0x3e7   :  { %v3354_v52 = vpop.permute.xlu1 %3353 }
 0x3eb   :  { %v3338_v18 = vpop.permute.xlu0 %3337 }
 0x3ec   :  { %v3381_v9 = vsel %vm1687_vm2, %v5279_v34, %v3338_v18 }
 0x3ed   :  { %v3385_v36 = vsel %vm106_vm0, %v3381_v9, %v3354_v52 }
 0x3ee   :  { %v3390_v5 = vsel %vm3389_vm1, %v3385_v36, %v3370_v33 }
 0x3ef   :  { %3639 = vmatmul.msk.f32.vlgmr.msra.gmra.mxu3 %vm3402_vm3, %v3390_v5 }
 0x407   :  { %v3340_v54 = vpop.permute.xlu0 %3339  ;;  %v3356_v47 = vpop.permute.xlu1 %3355 }
 0x408   :  { %v3382_v29 = vsel %vm1687_vm2, %v5325_v49, %v3340_v54 }
 0x409   :  { %v3386_v11 = vsel %vm106_vm0, %v3382_v29, %v3356_v47 }
 0x40e   :  { %v3342_v34 = vpop.permute.xlu2 %3341 }
 0x40f   :  { %v3372_v63 = vpop.permute.xlu0 %3371  ;;  %v3383_v15 = vsel %vm1687_vm2, %v3272_v4, %v3342_v34  ;;  %v3458_v4 = vsub.f32 1.0, %v3457_v62 }
 0x410   :  { %v3391_v19 = vsel %vm3389_vm1, %v3386_v11, %v3372_v63  ;;  %v3539_v11 = vld [vmem:[%s5517_s8] sm:$0x3]  ;;  %s3910_s8 = smov [#allocation10]  }
 0x411   :  { %3640 = vmatmul.msk.f32.gmra.mxu3 %vm3402_vm3, %v3391_v19  ;;  %v3459_v41 = vmul.f32 %v3754_v38, %v3458_v4  ;;  %s3558_s25 = sshll.u32 %s3910_s8, 4  ;;  %s3559_s25 = int_to_ptr.vmem [resolvable:$true] %s3558_s25 }
 0x413   :  { %v3460_v31 = vadd.f32 %v3754_v38, %v3459_v41 }
 0x416   :  { %v3344_v49 = vpop.permute.xlu2 %3343 }
 0x417   :  { %v3384_v27 = vsel %vm1687_vm2, %v3326_v43, %v3344_v49  ;;  %vm3461_vm2 = vweird.f32 %v3754_v38 }
 0x418   :  { %v5472_v42 = vsel %vm3461_vm2, %v3754_v38, %v3460_v31 }
 0x423   :  { %v3358_v50 = vpop.permute.xlu1 %3357 }
 0x424   :  { %v3387_v1 = vsel %vm106_vm0, %v3383_v15, %v3358_v50  ;;  %v3540_v15 = vperm.slane %v3539_v11, 0 }
 0x426   :  { %v3374_v24 = vpop.permute.xlu0 %3373 }
 0x427   :  { %v3392_v17 = vsel %vm3389_vm1, %v3387_v1, %v3374_v24  ;;  %v3545_v1 = vperm.slane %v3539_v11, 1 }
 0x428   :  { %3641 = vmatmul.msk.f32.gmra.mxu3 %vm3402_vm3, %v3392_v17 }
 0x42e   :  { %v3376_v20 = vpop.permute.xlu0 %3375 }
 0x42f   :  { %v3360_v32 = vpop.permute.xlu1 %3359 }
 0x430   :  { %v3388_v58 = vsel %vm106_vm0, %v3384_v27, %v3360_v32 }
 0x431   :  { %v3393_v12 = vsel %vm3389_vm1, %v3388_v58, %v3376_v20 }
 0x432   :  { %3642 = vmatmul.msk.f32.gmra.mxu3 %vm3402_vm3, %v3393_v12 }
 0x472   :  { %v3432_v14 = vpop.f32.mrf.mxu3 }
 0x473   :  { %v3433_v56 = vadd.f32 %v3763_v21, %v3432_v14 }
 0x475   :  { %v3444_v26 = vsel %vm106_vm0, %v3433_v56, 0.0 }
 0x476   :  { %3445 = vadd.xlane.f32.xlu2 %v3444_v26 }
 0x494   :  { %v3435_v0 = vpop.f32.mrf.mxu3 }
 0x495   :  { %v3436_v37 = vadd.f32 %v3764_v13, %v3435_v0 }
 0x497   :  { %v3447_v35 = vsel %vm106_vm0, %v3436_v37, 0.0 }
 0x498   :  { %3448 = vadd.xlane.f32.xlu1 %v3447_v35 }
 0x4ab   :  { %v3438_v45 = vpop.f32.mrf.mxu3 }
 0x4ac   :  { %v3439_v7 = vadd.f32 %v3765_v60, %v3438_v45 }
 0x4ae   :  { %v3450_v53 = vsel %vm106_vm0, %v3439_v7, 0.0 }
 0x4af   :  { %3451 = vadd.xlane.f32.xlu0 %v3450_v53 }
 0x4b5   :  { %v3441_v2 = vpop.f32.mrf.mxu3 }
 0x4b6   :  { %v3442_v51 = vadd.f32 %v3766_v55, %v3441_v2 }
 0x4b8   :  { %v3453_v16 = vsel %vm106_vm0, %v3442_v51, 0.0 }
 0x4b9   :  { %3454 = vadd.xlane.f32.xlu2 %v3453_v16 }
 0x4e9   :  { %v3446_v40 = vpop.xlane.xlu2 %3445 }
 0x4ea   :  { %v3463_v59 = vmul.f32 %v5472_v42, %v3446_v40 }
 0x4ec   :  { %v3467_v23 = vsub.f32 %v3433_v56, %v3463_v59 }
 0x4ee   :  { %v3471_v48 = vmul.f32 %v3467_v23, %v3467_v23 }
 0x4f0   :  { %v3475_v8 = vsel %vm106_vm0, %v3471_v48, 0.0 }
 0x4f1   :  { %3476 = vadd.xlane.f32.xlu1 %v3475_v8 }
 0x50b   :  { %v3449_v39 = vpop.xlane.xlu1 %3448 }
 0x50c   :  { %v3464_v46 = vmul.f32 %v5472_v42, %v3449_v39 }
 0x50e   :  { %v3468_v61 = vsub.f32 %v3436_v37, %v3464_v46 }
 0x510   :  { %v3472_v28 = vmul.f32 %v3468_v61, %v3468_v61 }
 0x512   :  { %v3478_v57 = vsel %vm106_vm0, %v3472_v28, 0.0 }
 0x513   :  { %3479 = vadd.xlane.f32.xlu0 %v3478_v57 }
 0x522   :  { %v3452_v25 = vpop.xlane.xlu0 %3451 }
 0x523   :  { %v3465_v6 = vmul.f32 %v5472_v42, %v3452_v25 }
 0x525   :  { %v5479_v43 = vsub.f32 %v3439_v7, %v3465_v6 }
 0x527   :  { %v3473_v3 = vmul.f32 %v5479_v43, %v5479_v43 }
 0x529   :  { %v3481_v44 = vsel %vm106_vm0, %v3473_v3, 0.0 }
 0x52a   :  { %3482 = vadd.xlane.f32.xlu2 %v3481_v44 }
 0x52c   :  { %v3455_v22 = vpop.xlane.xlu2 %3454 }
 0x52d   :  { %v3466_v30 = vmul.f32 %v5472_v42, %v3455_v22 }
 0x52f   :  { %v5485_v18 = vsub.f32 %v3442_v51, %v3466_v30 }
 0x531   :  { %v3474_v52 = vmul.f32 %v5485_v18, %v5485_v18 }
 0x533   :  { %v3484_v9 = vsel %vm106_vm0, %v3474_v52, 0.0 }
 0x534   :  { %3485 = vadd.xlane.f32.xlu1 %v3484_v9 }
 0x564   :  { %v3477_v33 = vpop.xlane.xlu1 %3476 }
 0x565   :  { %v3487_v36 = vmul.f32 %v3477_v33, %v5472_v42 }
 0x567   :  { %v3491_v5 = vadd.f32 1e-05, %v3487_v36 }
 0x569   :  { %3755 = vrsqrt.f32 %v3491_v5  ;;  %vm3501_vm9 = vweird.f32 %v3491_v5 }
 0x56f   :  { %v3756_v54 = vpop.eup %3755 }
 0x570   :  { %v3496_v29 = vmul.f32 %v3756_v54, %v3491_v5  ;;  %vm3502_vm8 = vweird.f32 %v3756_v54 }
 0x571   :  { %vm3503_vm10 = vmor %vm3501_vm9, %vm3502_vm8 }
 0x572   :  { %v3497_v47 = vmul.f32 %v3756_v54, %v3496_v29 }
 0x574   :  { %v3498_v63 = vmul.f32 0.5, %v3497_v47 }
 0x576   :  { %v3499_v19 = vsub.f32 1.5, %v3498_v63 }
 0x578   :  { %v3500_v34 = vmul.f32 %v3756_v54, %v3499_v19 }
 0x57a   :  { %v3504_v50 = vsel %vm3503_vm10, %v3756_v54, %v3500_v34 }
 0x57b   :  { %v3535_v24 = vmul.f32 %v3504_v50, %v3467_v23 }
 0x57d   :  { %v3541_v17 = vmul.f32 %v3540_v15, %v3535_v24 }
 0x57f   :  { %v3546_v49 = vadd.f32 %v3545_v1, %v3541_v17 }
 0x581   :  { %3550 = vst.msk [vmem:[#allocation10] sm:$0xff] %vm106_vm0, %v3546_v49 }
 0x586   :  { %v3480_v27 = vpop.xlane.xlu0 %3479 }
 0x587   :  { %v3488_v32 = vmul.f32 %v3480_v27, %v5472_v42 }
 0x589   :  { %v3492_v20 = vadd.f32 1e-05, %v3488_v32 }
 0x58b   :  { %3757 = vrsqrt.f32 %v3492_v20  ;;  %vm3511_vm12 = vweird.f32 %v3492_v20 }
 0x591   :  { %v3758_v58 = vpop.eup %3757 }
 0x592   :  { %v3506_v12 = vmul.f32 %v3758_v58, %v3492_v20  ;;  %vm3512_vm11 = vweird.f32 %v3758_v58 }
 0x593   :  { %vm3513_vm13 = vmor %vm3511_vm12, %vm3512_vm11 }
 0x594   :  { %v3507_v14 = vmul.f32 %v3758_v58, %v3506_v12 }
 0x596   :  { %v3508_v21 = vmul.f32 0.5, %v3507_v14 }
 0x598   :  { %v3509_v56 = vsub.f32 1.5, %v3508_v21 }
 0x59a   :  { %v3510_v26 = vmul.f32 %v3758_v58, %v3509_v56 }
 0x59c   :  { %v3514_v0 = vsel %vm3513_vm13, %v3758_v58, %v3510_v26 }
 0x59d   :  { %v3483_v13 = vpop.xlane.xlu2 %3482  ;;  %v3536_v37 = vmul.f32 %v3514_v0, %v3468_v61 }
 0x59e   :  { %v3489_v35 = vmul.f32 %v3483_v13, %v5472_v42 }
 0x59f   :  { %v3542_v45 = vmul.f32 %v3540_v15, %v3536_v37 }
 0x5a0   :  { %v3493_v60 = vadd.f32 1e-05, %v3489_v35 }
 0x5a1   :  { %v3547_v7 = vadd.f32 %v3545_v1, %v3542_v45 }
 0x5a2   :  { %3759 = vrsqrt.f32 %v3493_v60  ;;  %vm3521_vm15 = vweird.f32 %v3493_v60 }
 0x5a3   :  { %3551 = vst.msk [vmem:[#allocation10 + $0x8] sm:$0xff] %vm106_vm0, %v3547_v7 }
 0x5a7   :  { %v3486_v53 = vpop.xlane.xlu1 %3485 }
 0x5a8   :  { %v3760_v2 = vpop.eup %3759  ;;  %v3490_v55 = vmul.f32 %v3486_v53, %v5472_v42 }
 0x5a9   :  { %v3516_v51 = vmul.f32 %v3760_v2, %v3493_v60  ;;  %vm3522_vm14 = vweird.f32 %v3760_v2 }
 0x5aa   :  { %v3494_v16 = vadd.f32 1e-05, %v3490_v55  ;;  %vm3523_vm4 = vmor %vm3521_vm15, %vm3522_vm14 }
 0x5ab   :  { %v3517_v10 = vmul.f32 %v3760_v2, %v3516_v51 }
 0x5ac   :  { %3761 = vrsqrt.f32 %v3494_v16  ;;  %vm3531_vm6 = vweird.f32 %v3494_v16 }
 0x5ad   :  { %v3518_v38 = vmul.f32 0.5, %v3517_v10 }
 0x5af   :  { %v3519_v62 = vsub.f32 1.5, %v3518_v38 }
 0x5b1   :  { %v3520_v4 = vmul.f32 %v3760_v2, %v3519_v62 }
 0x5b2   :  { %v3762_v41 = vpop.eup %3761 }
 0x5b3   :  { %v3524_v31 = vsel %vm3523_vm4, %v3760_v2, %v3520_v4  ;;  %v3526_v40 = vmul.f32 %v3762_v41, %v3494_v16  ;;  %vm3532_vm5 = vweird.f32 %v3762_v41 }
 0x5b4   :  { %v3537_v59 = vmul.f32 %v3524_v31, %v5479_v43  ;;  %vm3533_vm7 = vmor %vm3531_vm6, %vm3532_vm5 }
 0x5b5   :  { %v3527_v23 = vmul.f32 %v3762_v41, %v3526_v40 }
 0x5b6   :  { %v3543_v48 = vmul.f32 %v3540_v15, %v3537_v59 }
 0x5b7   :  { %v3528_v8 = vmul.f32 0.5, %v3527_v23 }
 0x5b8   :  { %v3548_v39 = vadd.f32 %v3545_v1, %v3543_v48 }
 0x5b9   :  { %v3529_v42 = vsub.f32 1.5, %v3528_v8 }
 0x5ba   :  { %3552 = vst.msk [vmem:[#allocation10 + $0x10] sm:$0xff] %vm106_vm0, %v3548_v39 }
 0x5bb   :  { %v3530_v46 = vmul.f32 %v3762_v41, %v3529_v42 }
 0x5bd   :  { %v3534_v61 = vsel %vm3533_vm7, %v3762_v41, %v3530_v46 }
 0x5be   :  { %v3538_v28 = vmul.f32 %v3534_v61, %v5485_v18 }
 0x5c0   :  { %v3544_v57 = vmul.f32 %v3540_v15, %v3538_v28 }
 0x5c2   :  { %v3549_v25 = vadd.f32 %v3545_v1, %v3544_v57 }
 0x5c4   :  { %3553 = vst.msk [vmem:[#allocation10 + $0x18] sm:$0xff] %vm106_vm0, %v3549_v25 }
 0x5c5   :  { %3566 = dma.vmem_to_hbm [thread:$0]  %s3559_s25, 512, %s3561_s3, [#allocation4], %s3896_s21, %s3896_s21, %s3897_s22  }
 0x5c6   :  { %3893 = dma.done.wait [#allocation4], 512  }
 0x5c7   :  { %3894 = vsyncadd [#allocation4], 4294966784 }
 0x5c8   :  { %3575 = vsyncpa [#allocation3], 1 }
 0x5c9   :  { %3576 = vsyncpa [#allocation6], 1 }
 0x5ca   :  { %3577 = vsyncpa [#allocation9], 1 }
 0x5cb   :  { %3578 = vsyncpa [#allocation4], 1 }

</bundles_post_ra>
